<compile_context>
chip_gen: v5e
topology: v5e:2x2
jax: 0.10.0
libtpu: 0.0.40
codegen_flags: <defaults>
</compile_context>

<pallas_src>
import math
from functools import partial

import jax
import jax.numpy as jnp
from jax.experimental import pallas as pl
from jax.experimental.pallas import tpu as pltpu

SELU_ALPHA = 1.6732632423543772848170429916717
SELU_SCALE = 1.0507009873554804934193349852946


def _selu_unscaled(x):
    # SELU with the outer `scale` folded into the NEXT layer's weights at pack time.
    # exp(x)-1 (not expm1): abs error < ~1.2e-7, far below bf16 matmul quantization.
    return jnp.where(x > 0, x, SELU_ALPHA * (jnp.exp(x) - 1.0))


# --------------------------------- kernels -----------------------------------

def _fused_heads_kernel(x_ref, w0_ref, b0_ref, w1_ref, b1_ref, w2_ref, b2_ref,
                        w3_ref, b3_ref, out_ref):
    """actor||critic fused along N; hidden layers are 2Hx2H block-diagonal weights
    (one 256-wide MXU pass per layer -- exactly fills the v6e/v7x MXU)."""
    bf = jnp.bfloat16
    x = x_ref[...].astype(bf)                                              # [TB, P+O]

    # Layer 0 (state_enc folded in, single merged matmul), N = 2H.
    h = _selu_unscaled(
        jnp.dot(x, w0_ref[...], preferred_element_type=jnp.float32) + b0_ref[...])

    # Hidden layers 1, 2 (block-diagonal actor|critic; SELU scale pre-folded).
    h = _selu_unscaled(
        jnp.dot(h.astype(bf), w1_ref[...], preferred_element_type=jnp.float32)
        + b1_ref[...])
    h = _selu_unscaled(
        jnp.dot(h.astype(bf), w2_ref[...], preferred_element_type=jnp.float32)
        + b2_ref[...])

    # Fused final layer -> lane-dense [TB, 128]: lanes [0,A) = mean, lane A = value.
    out_ref[...] = (
        jnp.dot(h.astype(bf), w3_ref[...], preferred_element_type=jnp.float32)
        + b3_ref[...])


def _split_heads_kernel(x_ref, w0_ref, b0_ref, w1_ref, b1_ref, w2_ref, b2_ref,
                        w3_ref, b3_ref, out_ref, *, hdim):
    """v5e variant: 128-wide MXU, so each hidden layer is issued as two clean
    [128,128] dots (actor and critic) instead of one 256-wide block-diag pass."""
    bf = jnp.bfloat16
    H = hdim
    x = x_ref[...].astype(bf)

    z0 = jnp.dot(x, w0_ref[...], preferred_element_type=jnp.float32) + b0_ref[...]
    ha = _selu_unscaled(z0[:, :H])
    hc = _selu_unscaled(z0[:, H:])

    def hidden(h_a, h_c, w_ref, b_ref):
        za = (jnp.dot(h_a.astype(bf), w_ref[:H, :H],
                      preferred_element_type=jnp.float32) + b_ref[:, :H])
        zc = (jnp.dot(h_c.astype(bf), w_ref[H:, H:],
                      preferred_element_type=jnp.float32) + b_ref[:, H:])
        return _selu_unscaled(za), _selu_unscaled(zc)

    ha, hc = hidden(ha, hc, w1_ref, b1_ref)
    ha, hc = hidden(ha, hc, w2_ref, b2_ref)

    out_ref[...] = (
        jnp.dot(ha.astype(bf), w3_ref[:H, :], preferred_element_type=jnp.float32)
        + jnp.dot(hc.astype(bf), w3_ref[H:, :], preferred_element_type=jnp.float32)
        + b3_ref[...])


# --------------------------------- wrapper ------------------------------------

def actor_critic_forward(state, obs_emb, packed, actions, *,
                         tb=None, core_parallel=False, split_heads=False):
    """state: [B, prop] f32, obs_emb: [B, 2*emb] f32 -> (mean [B, A], value [B, 1]).

    tb=None -> grid=(1,) (best on single-TC v5e/v6e; fine for B up to ~512).
    On v7x pass tb=B//2, core_parallel=True so the two halves land on both TCs.
    """
    B, P = state.shape
    O = obs_emb.shape[1]
    out_w = packed["w3"].shape[1]
    H2 = packed["w1"].shape[0]

    # Merged layer-0 operand: one [B, P+O] input -> a single MXU pass for layer 0.
    x = jnp.concatenate([state, obs_emb], axis=1)

    TB = B if (tb is None or tb >= B) else tb
    if TB != B:
        assert B % TB == 0 and TB % 8 == 0, "batch tiling needs B % TB == 0, TB % 8 == 0"
    grid = (B // TB,)

    kernel = (partial(_split_heads_kernel, hdim=H2 // 2) if split_heads
              else _fused_heads_kernel)

    weights = [packed[k] for k in ("w0", "b0", "w1", "b1", "w2", "b2", "w3", "b3")]

    in_specs = [pl.BlockSpec((TB, P + O), lambda i: (i, 0))]
    # Constant index_map: weights/biases DMA'd once, VMEM-resident across grid steps.
    in_specs += [pl.BlockSpec(w.shape, lambda i: (0, 0)) for w in weights]

    if grid[0] == 1:
        semantics = ("arbitrary",)
    elif core_parallel:
        semantics = (getattr(pltpu, "CORE_PARALLEL", "parallel"),)
    else:
        semantics = ("parallel",)

    out = pl.pallas_call(
        kernel,
        out_shape=jax.ShapeDtypeStruct((B, out_w), jnp.float32),
        grid=grid,
        in_specs=in_specs,
        out_specs=pl.BlockSpec((TB, out_w), lambda i: (i, 0)),
        compiler_params=pltpu.CompilerParams(dimension_semantics=semantics),
    )(x, *weights)

    return out[:, :actions], out[:, actions:actions + 1]


# --------------------------- parameter construction ---------------------------

def make_raw_params(key, prop_dim, emb_dim, hidden, actions, initial_std):
    """'torch-like' parameters: state_enc default-init, actor/critic orthogonal weights."""
    keys = list(jax.random.split(key, 64))
    kit = iter(keys)

    def unif(k, fan_in, shape):
        bound = 1.0 / math.sqrt(fan_in)
        return jax.random.uniform(k, shape, jnp.float32, -bound, bound)

    def orth_w(k, in_dim, out_dim, gain):
        # stored transposed w.r.t. torch nn.Linear: [in, out]
        return jax.nn.initializers.orthogonal(scale=gain)(k, (in_dim, out_dim), jnp.float32)

    p = {}
    # state_enc: torch default init (not orthogonalized in the source module)
    p["se_w"] = unif(next(kit), prop_dim, (prop_dim, emb_dim))
    p["se_b"] = unif(next(kit), prop_dim, (1, emb_dim))

    joint = 3 * emb_dim

    def head(prefix, out_last, final_gain):
        dims = [joint] + list(hidden) + [out_last]
        gains = [math.sqrt(2.0)] * len(hidden) + [final_gain]
        for li in range(len(dims) - 1):
            p[f"{prefix}{li}w"] = orth_w(next(kit), dims[li], dims[li + 1], gains[li])
            p[f"{prefix}{li}b"] = unif(next(kit), dims[li], (1, dims[li + 1]))

    head("a", actions, 0.01)   # actor
    head("c", 1, 1.0)          # critic

    p["log_std"] = math.log(initial_std) * jnp.ones((actions,), jnp.float32)
    return p


def _block_diag(aw, cw):
    ha, wa = aw.shape
    hc, wc = cw.shape
    top = jnp.concatenate([aw, jnp.zeros((ha, wc), jnp.float32)], axis=1)
    bot = jnp.concatenate([jnp.zeros((hc, wa), jnp.float32), cw], axis=1)
    return jnp.concatenate([top, bot], axis=0)


def pack_params(raw, prop_dim, emb_dim, hidden, actions, out_width=128):
    """Host-side algebraic folding + fusion + bf16 cast (weights); biases kept f32.

    - state_enc folded into layer 0 (no nonlinearity in between)
    - actor & critic fused along N (layer 0 + lane-dense final layer)
    - hidden layers packed as block-diagonal [2H, 2H]
    - SELU_SCALE folded into w1/w2/w3 (kernel uses the unscaled SELU branch only)
    """
    assert len(hidden) == 3 and hidden[0] == hidden[1] == hidden[2], \
        "packed kernel assumes 3 equal hidden widths (as in the default config)"
    H = hidden[0]
    A = actions
    assert out_width >= A + 1 and out_width % 128 == 0

    # split layer-0 weights into the state_emb part and the obs_emb part
    a0ws, a0wo = raw["a0w"][:emb_dim], raw["a0w"][emb_dim:]
    c0ws, c0wo = raw["c0w"][:emb_dim], raw["c0w"][emb_dim:]

    # merged layer-0 weight over the concatenated [state | obs_emb] input,
    # with state_enc folded into the state rows
    w0 = jnp.concatenate([
        jnp.concatenate([raw["se_w"] @ a0ws, raw["se_w"] @ c0ws], axis=1),  # [prop,  2H]
        jnp.concatenate([a0wo, c0wo], axis=1),                              # [2*emb, 2H]
    ], axis=0)                                                              # [prop+2emb, 2H]
    b0 = jnp.concatenate([raw["se_b"] @ a0ws + raw["a0b"],
                          raw["se_b"] @ c0ws + raw["c0b"]], axis=1)         # [1, 2H]

    s = SELU_SCALE  # folded into the layer that consumes the SELU output
    w1 = _block_diag(raw["a1w"], raw["c1w"]) * s
    b1 = jnp.concatenate([raw["a1b"], raw["c1b"]], axis=1)
    w2 = _block_diag(raw["a2w"], raw["c2w"]) * s
    b2 = jnp.concatenate([raw["a2b"], raw["c2b"]], axis=1)

    # fused, lane-padded final layer: mean -> lanes [0, A), value -> lane A
    w3 = jnp.zeros((2 * H, out_width), jnp.float32)
    w3 = w3.at[:H, :A].set(raw["a3w"]).at[H:, A:A + 1].set(raw["c3w"])
    w3 = w3 * s
    b3 = jnp.zeros((1, out_width), jnp.float32)
    b3 = b3.at[:, :A].set(raw["a3b"]).at[:, A:A + 1].set(raw["c3b"])

    bf = jnp.bfloat16
    return {"w0": w0.astype(bf), "b0": b0,
            "w1": w1.astype(bf), "b1": b1,
            "w2": w2.astype(bf), "b2": b2,
            "w3": w3.astype(bf), "b3": b3}


# ------------------------------ pure-JAX ref -----------------------------------

def reference(state, obs_emb, raw):
    """f32 reference with the ORIGINAL (unfused, unfolded) layer structure."""
    state_emb = state @ raw["se_w"] + raw["se_b"]
    joint = jnp.concatenate([state_emb, obs_emb], axis=1)

    def mlp(x, prefix, nlayers):
        h = x
        for li in range(nlayers - 1):
            h = jax.nn.selu(h @ raw[f"{prefix}{li}w"] + raw[f"{prefix}{li}b"])
        return h @ raw[f"{prefix}{nlayers - 1}w"] + raw[f"{prefix}{nlayers - 1}b"]

    return mlp(joint, "a", 4), mlp(joint, "c", 4)


# ----------------------------------- main ---------------------------------------

if __name__ == "__main__":
    key = jax.random.PRNGKey(0)
    B = 256          # batched envs
    PROP = 16        # env_cfg['obs_dim']['prop']
    EMB = 32         # encoder_cfg['emb_dim']  (obs_emb width = 2*EMB)
    HIDDEN = [128, 128, 128]
    ACTIONS = 8
    INITIAL_STD = 1.0

    kp, ks, ko = jax.random.split(key, 3)
    raw = make_raw_params(kp, PROP, EMB, HIDDEN, ACTIONS, INITIAL_STD)
    packed = pack_params(raw, PROP, EMB, HIDDEN, ACTIONS)

    state = jax.random.normal(ks, (B, PROP), jnp.float32)
    # obs_emb stands in for Encoder2((img, tac)) output of width 2*emb_dim.
    obs_emb = jax.random.normal(ko, (B, 2 * EMB), jnp.float32)

    # Chip-aware configuration (safe fallback = single grid step, fused heads).
    kind = ""
    try:
        kind = jax.devices()[0].device_kind.lower()
    except Exception:
        pass
    split_heads = "v5" in kind                        # 128-wide MXU: two 128x128 dots/layer
    two_cores = ("7" in kind) and (B % 16 == 0)       # v7x: 2 TensorCores per chip
    tb = (B // 2) if two_cores else None              # single-TC chips: grid=(1,)

    actions_mean, value = actor_critic_forward(
        state, obs_emb, packed, ACTIONS,
        tb=tb, core_parallel=two_cores, split_heads=split_heads)
    jax.block_until_ready((actions_mean, value))

    ref_mean, ref_value = reference(state, obs_emb, raw)
    assert actions_mean.shape == (B, ACTIONS)
    assert value.shape == (B, 1)
    # bf16 matmul path (with folded state_enc / SELU scale) vs. f32 reference.
    assert jnp.allclose(actions_mean, ref_mean, atol=1e-1, rtol=5e-2), \
        float(jnp.max(jnp.abs(actions_mean - ref_mean)))
    assert jnp.allclose(value, ref_value, atol=1e-1, rtol=5e-2), \
        float(jnp.max(jnp.abs(value - ref_value)))

    print("KERNEL_OK")
</pallas_src>

<mosaic_0001>
module attributes {stable_mosaic.version = 11 : i64} {
  func.func @_fused_heads_kernel(%arg0: i32, %arg1: memref<256x80xf32, #tpu.memory_space<vmem>>, %arg2: memref<80x256xbf16, #tpu.memory_space<vmem>>, %arg3: memref<1x256xf32, #tpu.memory_space<vmem>>, %arg4: memref<256x256xbf16, #tpu.memory_space<vmem>>, %arg5: memref<1x256xf32, #tpu.memory_space<vmem>>, %arg6: memref<256x256xbf16, #tpu.memory_space<vmem>>, %arg7: memref<1x256xf32, #tpu.memory_space<vmem>>, %arg8: memref<256x128xbf16, #tpu.memory_space<vmem>>, %arg9: memref<1x128xf32, #tpu.memory_space<vmem>>, %arg10: memref<256x128xf32, #tpu.memory_space<vmem>>) attributes {dimension_semantics = [#tpu.dimension_semantics<arbitrary>], iteration_bounds = array<i64: 1>, scalar_prefetch = 0 : i64, scratch_operands = 0 : i64, tpu.core_type = #tpu.core_type<tc>, window_params = [{transform_indices = @transform_0, window_bounds = array<i64: 256, 80>}, {pipeline_mode = #tpu.pipeline_mode<synchronous>, transform_indices = @transform_1, window_bounds = array<i64: 80, 256>}, {pipeline_mode = #tpu.pipeline_mode<synchronous>, transform_indices = @transform_2, window_bounds = array<i64: 1, 256>}, {pipeline_mode = #tpu.pipeline_mode<synchronous>, transform_indices = @transform_3, window_bounds = array<i64: 256, 256>}, {pipeline_mode = #tpu.pipeline_mode<synchronous>, transform_indices = @transform_4, window_bounds = array<i64: 1, 256>}, {pipeline_mode = #tpu.pipeline_mode<synchronous>, transform_indices = @transform_5, window_bounds = array<i64: 256, 256>}, {pipeline_mode = #tpu.pipeline_mode<synchronous>, transform_indices = @transform_6, window_bounds = array<i64: 1, 256>}, {pipeline_mode = #tpu.pipeline_mode<synchronous>, transform_indices = @transform_7, window_bounds = array<i64: 256, 128>}, {pipeline_mode = #tpu.pipeline_mode<synchronous>, transform_indices = @transform_8, window_bounds = array<i64: 1, 128>}, {transform_indices = @transform_9, window_bounds = array<i64: 256, 128>}]} {
    %c0 = arith.constant 0 : index
    %c0_0 = arith.constant 0 : index
    %0 = vector.load %arg1[%c0, %c0_0] : memref<256x80xf32, #tpu.memory_space<vmem>>, vector<256x80xf32>
    %1 = arith.truncf %0 : vector<256x80xf32> to vector<256x80xbf16>
    %c0_1 = arith.constant 0 : index
    %c0_2 = arith.constant 0 : index
    %2 = vector.load %arg2[%c0_1, %c0_2] : memref<80x256xbf16, #tpu.memory_space<vmem>>, vector<80x256xbf16>
    %cst = arith.constant dense<0.000000e+00> : vector<256x256xf32>
    %3 = tpu.matmul %1, %2, %cst {dimension_numbers = #tpu.dot_dimension_numbers<[1], [0], [0], [1], [0, 0, 1, 1], [], []>} : vector<256x80xbf16>, vector<80x256xbf16>, vector<256x256xf32> -> vector<256x256xf32>
    %c0_3 = arith.constant 0 : index
    %c0_4 = arith.constant 0 : index
    %4 = vector.load %arg3[%c0_3, %c0_4] : memref<1x256xf32, #tpu.memory_space<vmem>>, vector<1x256xf32>
    %5 = vector.broadcast %4 : vector<1x256xf32> to vector<256x256xf32>
    %6 = arith.addf %3, %5 : vector<256x256xf32>
    %cst_5 = arith.constant 0.000000e+00 : f32
    %7 = vector.broadcast %cst_5 : f32 to vector<256x256xf32>
    %8 = arith.cmpf ogt, %6, %7 : vector<256x256xf32>
    %9 = math.exp %6 : vector<256x256xf32>
    %cst_6 = arith.constant 1.000000e+00 : f32
    %10 = vector.broadcast %cst_6 : f32 to vector<256x256xf32>
    %11 = arith.subf %9, %10 : vector<256x256xf32>
    %cst_7 = arith.constant 1.67326319 : f32
    %12 = vector.broadcast %cst_7 : f32 to vector<256x256xf32>
    %13 = arith.mulf %12, %11 : vector<256x256xf32>
    %14 = arith.select %8, %6, %13 : vector<256x256xi1>, vector<256x256xf32>
    %15 = arith.truncf %14 : vector<256x256xf32> to vector<256x256xbf16>
    %c0_8 = arith.constant 0 : index
    %c0_9 = arith.constant 0 : index
    %16 = vector.load %arg4[%c0_8, %c0_9] : memref<256x256xbf16, #tpu.memory_space<vmem>>, vector<256x256xbf16>
    %cst_10 = arith.constant dense<0.000000e+00> : vector<256x256xf32>
    %17 = tpu.matmul %15, %16, %cst_10 {dimension_numbers = #tpu.dot_dimension_numbers<[1], [0], [0], [1], [0, 0, 1, 1], [], []>} : vector<256x256xbf16>, vector<256x256xbf16>, vector<256x256xf32> -> vector<256x256xf32>
    %c0_11 = arith.constant 0 : index
    %c0_12 = arith.constant 0 : index
    %18 = vector.load %arg5[%c0_11, %c0_12] : memref<1x256xf32, #tpu.memory_space<vmem>>, vector<1x256xf32>
    %19 = vector.broadcast %18 : vector<1x256xf32> to vector<256x256xf32>
    %20 = arith.addf %17, %19 : vector<256x256xf32>
    %cst_13 = arith.constant 0.000000e+00 : f32
    %21 = vector.broadcast %cst_13 : f32 to vector<256x256xf32>
    %22 = arith.cmpf ogt, %20, %21 : vector<256x256xf32>
    %23 = math.exp %20 : vector<256x256xf32>
    %cst_14 = arith.constant 1.000000e+00 : f32
    %24 = vector.broadcast %cst_14 : f32 to vector<256x256xf32>
    %25 = arith.subf %23, %24 : vector<256x256xf32>
    %cst_15 = arith.constant 1.67326319 : f32
    %26 = vector.broadcast %cst_15 : f32 to vector<256x256xf32>
    %27 = arith.mulf %26, %25 : vector<256x256xf32>
    %28 = arith.select %22, %20, %27 : vector<256x256xi1>, vector<256x256xf32>
    %29 = arith.truncf %28 : vector<256x256xf32> to vector<256x256xbf16>
    %c0_16 = arith.constant 0 : index
    %c0_17 = arith.constant 0 : index
    %30 = vector.load %arg6[%c0_16, %c0_17] : memref<256x256xbf16, #tpu.memory_space<vmem>>, vector<256x256xbf16>
    %cst_18 = arith.constant dense<0.000000e+00> : vector<256x256xf32>
    %31 = tpu.matmul %29, %30, %cst_18 {dimension_numbers = #tpu.dot_dimension_numbers<[1], [0], [0], [1], [0, 0, 1, 1], [], []>} : vector<256x256xbf16>, vector<256x256xbf16>, vector<256x256xf32> -> vector<256x256xf32>
    %c0_19 = arith.constant 0 : index
    %c0_20 = arith.constant 0 : index
    %32 = vector.load %arg7[%c0_19, %c0_20] : memref<1x256xf32, #tpu.memory_space<vmem>>, vector<1x256xf32>
    %33 = vector.broadcast %32 : vector<1x256xf32> to vector<256x256xf32>
    %34 = arith.addf %31, %33 : vector<256x256xf32>
    %cst_21 = arith.constant 0.000000e+00 : f32
    %35 = vector.broadcast %cst_21 : f32 to vector<256x256xf32>
    %36 = arith.cmpf ogt, %34, %35 : vector<256x256xf32>
    %37 = math.exp %34 : vector<256x256xf32>
    %cst_22 = arith.constant 1.000000e+00 : f32
    %38 = vector.broadcast %cst_22 : f32 to vector<256x256xf32>
    %39 = arith.subf %37, %38 : vector<256x256xf32>
    %cst_23 = arith.constant 1.67326319 : f32
    %40 = vector.broadcast %cst_23 : f32 to vector<256x256xf32>
    %41 = arith.mulf %40, %39 : vector<256x256xf32>
    %42 = arith.select %36, %34, %41 : vector<256x256xi1>, vector<256x256xf32>
    %43 = arith.truncf %42 : vector<256x256xf32> to vector<256x256xbf16>
    %c0_24 = arith.constant 0 : index
    %c0_25 = arith.constant 0 : index
    %44 = vector.load %arg8[%c0_24, %c0_25] : memref<256x128xbf16, #tpu.memory_space<vmem>>, vector<256x128xbf16>
    %cst_26 = arith.constant dense<0.000000e+00> : vector<256x128xf32>
    %45 = tpu.matmul %43, %44, %cst_26 {dimension_numbers = #tpu.dot_dimension_numbers<[1], [0], [0], [1], [0, 0, 1, 1], [], []>} : vector<256x256xbf16>, vector<256x128xbf16>, vector<256x128xf32> -> vector<256x128xf32>
    %c0_27 = arith.constant 0 : index
    %c0_28 = arith.constant 0 : index
    %46 = vector.load %arg9[%c0_27, %c0_28] : memref<1x128xf32, #tpu.memory_space<vmem>>, vector<1x128xf32>
    %47 = vector.broadcast %46 : vector<1x128xf32> to vector<256x128xf32>
    %48 = arith.addf %45, %47 : vector<256x128xf32>
    %c0_29 = arith.constant 0 : index
    %c0_30 = arith.constant 0 : index
    %49 = vector.load %arg10[%c0_29, %c0_30] : memref<256x128xf32, #tpu.memory_space<vmem>>, vector<256x128xf32>
    tpu.vector_store %arg10[%c0_29, %c0_30], %48 {strides = array<i32>} : memref<256x128xf32, #tpu.memory_space<vmem>>, vector<256x128xf32>,
    return
  }
  func.func @transform_0(%arg0: i32) -> (i32, i32) {
    %c0_i32 = arith.constant 0 : i32
    %c0_i32_0 = arith.constant 0 : i32
    return %arg0, %c0_i32 : i32, i32
  }
  func.func @transform_1(%arg0: i32) -> (i32, i32) {
    %c0_i32 = arith.constant 0 : i32
    %c0_i32_0 = arith.constant 0 : i32
    %c0_i32_1 = arith.constant 0 : i32
    return %c0_i32, %c0_i32_0 : i32, i32
  }
  func.func @transform_2(%arg0: i32) -> (i32, i32) {
    %c0_i32 = arith.constant 0 : i32
    %c0_i32_0 = arith.constant 0 : i32
    %c0_i32_1 = arith.constant 0 : i32
    return %c0_i32, %c0_i32_0 : i32, i32
  }
  func.func @transform_3(%arg0: i32) -> (i32, i32) {
    %c0_i32 = arith.constant 0 : i32
    %c0_i32_0 = arith.constant 0 : i32
    %c0_i32_1 = arith.constant 0 : i32
    return %c0_i32, %c0_i32_0 : i32, i32
  }
  func.func @transform_4(%arg0: i32) -> (i32, i32) {
    %c0_i32 = arith.constant 0 : i32
    %c0_i32_0 = arith.constant 0 : i32
    %c0_i32_1 = arith.constant 0 : i32
    return %c0_i32, %c0_i32_0 : i32, i32
  }
  func.func @transform_5(%arg0: i32) -> (i32, i32) {
    %c0_i32 = arith.constant 0 : i32
    %c0_i32_0 = arith.constant 0 : i32
    %c0_i32_1 = arith.constant 0 : i32
    return %c0_i32, %c0_i32_0 : i32, i32
  }
  func.func @transform_6(%arg0: i32) -> (i32, i32) {
    %c0_i32 = arith.constant 0 : i32
    %c0_i32_0 = arith.constant 0 : i32
    %c0_i32_1 = arith.constant 0 : i32
    return %c0_i32, %c0_i32_0 : i32, i32
  }
  func.func @transform_7(%arg0: i32) -> (i32, i32) {
    %c0_i32 = arith.constant 0 : i32
    %c0_i32_0 = arith.constant 0 : i32
    %c0_i32_1 = arith.constant 0 : i32
    return %c0_i32, %c0_i32_0 : i32, i32
  }
  func.func @transform_8(%arg0: i32) -> (i32, i32) {
    %c0_i32 = arith.constant 0 : i32
    %c0_i32_0 = arith.constant 0 : i32
    %c0_i32_1 = arith.constant 0 : i32
    return %c0_i32, %c0_i32_0 : i32, i32
  }
  func.func @transform_9(%arg0: i32) -> (i32, i32) {
    %c0_i32 = arith.constant 0 : i32
    %c0_i32_0 = arith.constant 0 : i32
    return %arg0, %c0_i32 : i32, i32
  }
}

</mosaic_0001>

<bundles_post_ra>
// kernel: tpu_custom_call.1
= control target key start
LH: loop header
LB: loop body
LE: loop exit
PB: predicated region body
PF: predicated region fallthrough
CT: control target
= control target key end

     0   :  { %14 = vsyncpa [#allocation3], 0  ;;  %s6018_s0 = inlined_call_operand.vmem [shape: f32[256,80], index: 0, kind: input, shape index: {}]   ;;  %s6019_s1 = inlined_call_operand.hbm [shape: bf16[80,256], index: 1, kind: input, shape index: {}]   ;;  %s6020_s2 = inlined_call_operand.vmem [shape: f32[1,256], index: 2, kind: input, shape index: {}]   ;;  %s6021_s3 = inlined_call_operand.vmem [shape: bf16[256,256], index: 3, kind: input, shape index: {}]   ;;  %s6022_s4 = inlined_call_operand.vmem [shape: f32[1,256], index: 4, kind: input, shape index: {}]   ;;  %s6023_s5 = inlined_call_operand.hbm [shape: bf16[256,256], index: 5, kind: input, shape index: {}]   ;;  %s6024_s6 = inlined_call_operand.vmem [shape: f32[1,256], index: 6, kind: input, shape index: {}]   ;;  %s6025_s7 = inlined_call_operand.vmem [shape: bf16[256,128], index: 7, kind: input, shape index: {}]   ;;  %s6026_s8 = inlined_call_operand.vmem [shape: f32[1,128], index: 8, kind: input, shape index: {}]   ;;  %s6027_s9 = inlined_call_operand.hbm [shape: f32[256,128], index: 9, kind: output, shape index: {}]  }
   0x1   :  { %15 = vsyncpa [#allocation6], 0 }
   0x2   :  { %16 = vsyncpa [#allocation4], 0  ;;  %s23_s11 = sshll.u32 %s6019_s1, 4  ;;  %s4267_s12 = smov [#allocation2]   ;;  %s24_s11 = int_to_ptr.hbm [resolvable:$true] %s23_s11 }
   0x3   :  { %s25_s13 = sshll.u32 %s4267_s12, 4  ;;  %s42_s16 = sshll.u32 %s6023_s5, 4  ;;  %s26_s13 = int_to_ptr.vmem [resolvable:$true] %s25_s13  ;;  %s43_s16 = int_to_ptr.hbm [resolvable:$true] %s42_s16 }
   0x4   :  { %s4268_s17 = smov 128   ;;  %s4269_s18 = smov 8  }
   0x5   :  { %31 = dma.hbm_to_vmem [thread:$0]  %s24_s11, 1280, %s26_s13, [#allocation3], %s4268_s17, %s4268_s17, %s4269_s18  }
   0x6   :  { %s4270_s19 = smov [#allocation5]  }
   0x7   :  { %s44_s20 = sshll.u32 %s4270_s19, 4  ;;  %s45_s20 = int_to_ptr.vmem [resolvable:$true] %s44_s20 }
   0x8   :  { %50 = dma.hbm_to_vmem [thread:$0]  %s43_s16, 4096, %s45_s20, [#allocation6], %s4268_s17, %s4268_s17, %s4269_s18  }
   0x9   :  { %4261 = dma.done.wait [#allocation3], 1280  }
   0xa   :  { %4262 = vsyncadd [#allocation3], 4294966016 }
   0xb   :  { %4263 = dma.done.wait [#allocation6], 4096  }
   0xc   :  { %4264 = vsyncadd [#allocation6], 4294963200  ;;  %v3159_v0 = vld [vmem:[#allocation2 + $0x40] sm:$0xf]  ;;  %v3718_v1 = vld [vmem:[#allocation2 + $0x44] sm:$0xf0] }
   0xd   :  { %v3717_v2 = vld [vmem:[#allocation2 + $0x44] sm:$0xf]  ;;  %v3160_v3 = vor.u32 %v3718_v1, %v3159_v0  ;;  %v3161_v4 = vld [vmem:[#allocation2 + $0x48] sm:$0xf0]  ;;  %v3151_v5 = vld [vmem:[#allocation2 + $0x30] sm:$0xf] }
   0xe   :  { %v3716_v6 = vld [vmem:[#allocation2 + $0x34] sm:$0xf0]  ;;  %v3164_v7 = vor.u32 %v3717_v2, %v3161_v4  ;;  %v3715_v8 = vld [vmem:[#allocation2 + $0x34] sm:$0xf]  ;;  %v3153_v9 = vld [vmem:[#allocation2 + $0x38] sm:$0xf0] }
   0xf   :  { %232 = vmatpush.bf16.msra.mxu0 %v3160_v3  ;;  %v3152_v10 = vor.u32 %v3716_v6, %v3151_v5  ;;  %v3156_v11 = vor.u32 %v3715_v8, %v3153_v9  ;;  %v3143_v12 = vld [vmem:[#allocation2 + $0x20] sm:$0xf]  ;;  %v3714_v13 = vld [vmem:[#allocation2 + $0x24] sm:$0xf0]  ;;  %v3713_v14 = vld [vmem:[#allocation2 + $0x24] sm:$0xf] }
  0x10   :  { %321 = vmatpush.bf16.msra.mxu1 %v3164_v7  ;;  %v3145_v15 = vld [vmem:[#allocation2 + $0x28] sm:$0xf0]  ;;  %v3144_v16 = vor.u32 %v3714_v13, %v3143_v12  ;;  %v3135_v18 = vld [vmem:[#allocation2 + $0x10] sm:$0xf]  ;;  %v3712_v19 = vld [vmem:[#allocation2 + $0x14] sm:$0xf0] }
  0x11   :  { %v3148_v17 = vor.u32 %v3713_v14, %v3145_v15  ;;  %v3711_v20 = vld [vmem:[#allocation2 + $0x14] sm:$0xf]  ;;  %v3137_v21 = vld [vmem:[#allocation2 + $0x18] sm:$0xf0]  ;;  %v3136_v22 = vor.u32 %v3712_v19, %v3135_v18  ;;  %v3127_v24 = vld [vmem:[#allocation2] sm:$0xf] }
  0x12   :  { %v3140_v23 = vor.u32 %v3711_v20, %v3137_v21  ;;  %v3710_v25 = vld [vmem:[#allocation2 + $0x4] sm:$0xf0]  ;;  %v3709_v26 = vld [vmem:[#allocation2 + $0x4] sm:$0xf]  ;;  %v3129_v27 = vld [vmem:[#allocation2 + $0x8] sm:$0xf0] }
  0x13   :  { %233 = vmatpush.bf16.msra.mxu0 %v3152_v10  ;;  %v3733_v28 = vld [vmem:[%s6021_s3 + $0x74] sm:$0xf]  ;;  %v3321_v29 = vld [vmem:[%s6021_s3 + $0x78] sm:$0xf0]  ;;  %v3128_v32 = vor.u32 %v3710_v25, %v3127_v24  ;;  %v66_v33 = vld [vmem:[%s6018_s0] sm:$0xff]  ;;  %v3132_v35 = vor.u32 %v3709_v26, %v3129_v27  ;;  %vm180_vm0 = vcmask 654336  }
  0x14   :  { %322 = vmatpush.bf16.msra.mxu1 %v3156_v11  ;;  %v3749_v30 = vld [vmem:[%s6021_s3 + $0xf4] sm:$0xf]  ;;  %v3385_v31 = vld [vmem:[%s6021_s3 + $0xf8] sm:$0xf0]  ;;  %v67_v34 = vld [vmem:[%s6018_s0 + $0x8] sm:$0xff]  ;;  %v3324_v36 = vor.u32 %v3733_v28, %v3321_v29  ;;  %s3111_s11 = sshll.u32 %s6027_s9, 4  ;;  %s3112_s11 = int_to_ptr.hbm [resolvable:$true] %s3111_s11 }
  0x15   :  { %v3388_v37 = vor.u32 %v3749_v30, %v3385_v31  ;;  %v98_v38 = vpack.c.bf16 %v67_v34, %v66_v33  ;;  %v3731_v39 = vld [vmem:[%s6021_s3 + $0x64] sm:$0xf]  ;;  %v3313_v40 = vld [vmem:[%s6021_s3 + $0x68] sm:$0xf0]  ;;  %v68_v45 = vld [vmem:[%s6018_s0 + $0x10] sm:$0xff] }
  0x16   :  { %v3747_v41 = vld [vmem:[%s6021_s3 + $0xe4] sm:$0xf]  ;;  %v3316_v42 = vor.u32 %v3731_v39, %v3313_v40  ;;  %v3377_v43 = vld [vmem:[%s6021_s3 + $0xe8] sm:$0xf0]  ;;  %v69_v46 = vld [vmem:[%s6018_s0 + $0x18] sm:$0xff] }
  0x17   :  { %234 = vmatpush.bf16.msra.mxu0 %v3144_v16  ;;  %v3380_v44 = vor.u32 %v3747_v41, %v3377_v43  ;;  %v99_v47 = vpack.c.bf16 %v69_v46, %v68_v45  ;;  %v70_v48 = vld [vmem:[%s6018_s0 + $0x20] sm:$0xff]  ;;  %v71_v49 = vld [vmem:[%s6018_s0 + $0x28] sm:$0xff]  ;;  %v3729_v51 = vld [vmem:[%s6021_s3 + $0x54] sm:$0xf] }
  0x18   :  { %323 = vmatpush.bf16.msra.mxu1 %v3148_v17  ;;  %v100_v50 = vpack.c.bf16 %v71_v49, %v70_v48  ;;  %v3305_v52 = vld [vmem:[%s6021_s3 + $0x58] sm:$0xf0]  ;;  %v3745_v53 = vld [vmem:[%s6021_s3 + $0xd4] sm:$0xf]  ;;  %v74_v60 = vld [vmem:[%s6018_s0 + $0x40] sm:$0xff] }
  0x19   :  { %v3308_v54 = vor.u32 %v3729_v51, %v3305_v52  ;;  %v3369_v55 = vld [vmem:[%s6021_s3 + $0xd8] sm:$0xf0]  ;;  %v72_v57 = vld [vmem:[%s6018_s0 + $0x30] sm:$0xff]  ;;  %v75_v61 = vld [vmem:[%s6018_s0 + $0x48] sm:$0xff] }
  0x1a   :  { %v3372_v56 = vor.u32 %v3745_v53, %v3369_v55  ;;  %v73_v58 = vld [vmem:[%s6018_s0 + $0x38] sm:$0xff]  ;;  %v102_v62 = vpack.c.bf16 %v75_v61, %v74_v60  ;;  %v3727_v63 = vld [vmem:[%s6021_s3 + $0x44] sm:$0xf]  ;;  %v3297_v0 = vld [vmem:[%s6021_s3 + $0x48] sm:$0xf0] }
  0x1b   :  { %235 = vmatpush.bf16.msra.mxu0 %v3136_v22  ;;  %v101_v59 = vpack.c.bf16 %v73_v58, %v72_v57  ;;  %v3743_v1 = vld [vmem:[%s6021_s3 + $0xc4] sm:$0xf]  ;;  %v3300_v2 = vor.u32 %v3727_v63, %v3297_v0  ;;  %v3361_v3 = vld [vmem:[%s6021_s3 + $0xc8] sm:$0xf0]  ;;  %v76_v5 = vld [vmem:[%s6018_s0 + $0x50] sm:$0xff] }
  0x1c   :  { %324 = vmatpush.bf16.msra.mxu1 %v3140_v23  ;;  %v3364_v4 = vor.u32 %v3743_v1, %v3361_v3  ;;  %v77_v6 = vld [vmem:[%s6018_s0 + $0x58] sm:$0xff]  ;;  %v3319_v8 = vld [vmem:[%s6021_s3 + $0x70] sm:$0xf]  ;;  %v78_v14 = vld [vmem:[%s6018_s0 + $0x60] sm:$0xff] }
  0x1d   :  { %v103_v7 = vpack.c.bf16 %v77_v6, %v76_v5  ;;  %v3734_v9 = vld [vmem:[%s6021_s3 + $0x74] sm:$0xf0]  ;;  %v3383_v10 = vld [vmem:[%s6021_s3 + $0xf0] sm:$0xf]  ;;  %v79_v15 = vld [vmem:[%s6018_s0 + $0x68] sm:$0xff] }
  0x1e   :  { %v3320_v11 = vor.u32 %v3734_v9, %v3319_v8  ;;  %v3750_v12 = vld [vmem:[%s6021_s3 + $0xf4] sm:$0xf0]  ;;  %v3311_v16 = vld [vmem:[%s6021_s3 + $0x60] sm:$0xf]  ;;  %v3732_v17 = vld [vmem:[%s6021_s3 + $0x64] sm:$0xf0]  ;;  %v104_v19 = vpack.c.bf16 %v79_v15, %v78_v14 }
  0x1f   :  { %236 = vmatpush.bf16.msra.mxu0 %v3128_v32  ;;  %v3384_v13 = vor.u32 %v3750_v12, %v3383_v10  ;;  %v3375_v18 = vld [vmem:[%s6021_s3 + $0xe0] sm:$0xf]  ;;  %v3312_v20 = vor.u32 %v3732_v17, %v3311_v16  ;;  %v3748_v21 = vld [vmem:[%s6021_s3 + $0xe4] sm:$0xf0]  ;;  %v3303_v23 = vld [vmem:[%s6021_s3 + $0x50] sm:$0xf] }
  0x20   :  { %325 = vmatpush.bf16.msra.mxu1 %v3132_v35  ;;  %1021 = vmatpush.bf16.msra.mxu2 %v3320_v11  ;;  %v3376_v22 = vor.u32 %v3748_v21, %v3375_v18  ;;  %v3730_v24 = vld [vmem:[%s6021_s3 + $0x54] sm:$0xf0]  ;;  %v3367_v25 = vld [vmem:[%s6021_s3 + $0xd0] sm:$0xf]  ;;  %v3295_v29 = vld [vmem:[%s6021_s3 + $0x40] sm:$0xf] }
  0x21   :  { %1110 = vmatpush.bf16.msra.mxu3 %v3384_v13  ;;  %v3304_v26 = vor.u32 %v3730_v24, %v3303_v23  ;;  %v3746_v27 = vld [vmem:[%s6021_s3 + $0xd4] sm:$0xf0]  ;;  %v3728_v30 = vld [vmem:[%s6021_s3 + $0x44] sm:$0xf0]  ;;  %v3359_v31 = vld [vmem:[%s6021_s3 + $0xc0] sm:$0xf] }
  0x22   :  { %3165 = vmatmul.msk.bf16.vlgmr.msra.gmra.mxu0 %vm180_vm0, %v98_v38  ;;  %v3368_v28 = vor.u32 %v3746_v27, %v3367_v25  ;;  %v3296_v32 = vor.u32 %v3728_v30, %v3295_v29  ;;  %v3744_v33 = vld [vmem:[%s6021_s3 + $0xc4] sm:$0xf0]  ;;  %v3287_v35 = vld [vmem:[%s6021_s3 + $0x30] sm:$0xf]  ;;  %v3742_v39 = vld [vmem:[%s6021_s3 + $0xb4] sm:$0xf0] }
  0x23   :  { %1199 = vmatpush.bf16.msrb.mxu0 %v3324_v36  ;;  %3181 = vmatmul.msk.bf16.vlgmr.msra.gmra.mxu1 %vm180_vm0, %v98_v38  ;;  %v3360_v34 = vor.u32 %v3744_v33, %v3359_v31  ;;  %v3726_v36 = vld [vmem:[%s6021_s3 + $0x34] sm:$0xf0]  ;;  %v80_v40 = vld [vmem:[%s6018_s0 + $0x70] sm:$0xff]  ;;  %v3279_v48 = vld [vmem:[%s6021_s3 + $0x20] sm:$0xf] }
  0x24   :  { %1288 = vmatpush.bf16.msrb.mxu1 %v3388_v37  ;;  %1022 = vmatpush.bf16.msra.mxu2 %v3312_v20  ;;  %v3351_v37 = vld [vmem:[%s6021_s3 + $0xb0] sm:$0xf]  ;;  %v3288_v38 = vor.u32 %v3726_v36, %v3287_v35  ;;  %v81_v41 = vld [vmem:[%s6018_s0 + $0x78] sm:$0xff]  ;;  %v3725_v43 = vld [vmem:[%s6021_s3 + $0x34] sm:$0xf] }
  0x25   :  { %1111 = vmatpush.bf16.msra.mxu3 %v3376_v22  ;;  %v3741_v45 = vld [vmem:[%s6021_s3 + $0xb4] sm:$0xf]  ;;  %v3724_v49 = vld [vmem:[%s6021_s3 + $0x24] sm:$0xf0]  ;;  %v3343_v53 = vld [vmem:[%s6021_s3 + $0xa0] sm:$0xf] }
  0x26   :  { %v3280_v52 = vor.u32 %v3724_v49, %v3279_v48  ;;  %v3722_v57 = vld [vmem:[%s6021_s3 + $0x14] sm:$0xf0]  ;;  %v3335_v58 = vld [vmem:[%s6021_s3 + $0x90] sm:$0xf]  ;;  %v3720_v63 = vld [vmem:[%s6021_s3 + $0x4] sm:$0xf0] }
  0x27   :  { %1200 = vmatpush.bf16.msrb.mxu0 %v3316_v42  ;;  %v3352_v42 = vor.u32 %v3742_v39, %v3351_v37  ;;  %v3738_v60 = vld [vmem:[%s6021_s3 + $0x94] sm:$0xf0]  ;;  %v3327_v0 = vld [vmem:[%s6021_s3 + $0x80] sm:$0xf]  ;;  %v83_v6 = vld [vmem:[%s6018_s0 + $0x88] sm:$0xff] }
  0x28   :  { %1289 = vmatpush.bf16.msrb.mxu1 %v3380_v44  ;;  %1023 = vmatpush.bf16.msra.mxu2 %v3304_v26  ;;  %v3289_v44 = vld [vmem:[%s6021_s3 + $0x38] sm:$0xf0]  ;;  %v3336_v61 = vor.u32 %v3738_v60, %v3335_v58  ;;  %v82_v5 = vld [vmem:[%s6018_s0 + $0x80] sm:$0xff]  ;;  %v3766_v10 = vld [vmem:[#allocation5 + $0x74] sm:$0xf0] }
  0x29   :  { %1112 = vmatpush.bf16.msra.mxu3 %v3368_v28  ;;  %v3292_v46 = vor.u32 %v3725_v43, %v3289_v44  ;;  %v3511_v9 = vld [vmem:[#allocation5 + $0x70] sm:$0xf]  ;;  %v106_v12 = vpack.c.bf16 %v83_v6, %v82_v5  ;;  %v3782_v14 = vld [vmem:[#allocation5 + $0xf4] sm:$0xf0]  ;;  %v84_v28 = vld [vmem:[%s6018_s0 + $0x90] sm:$0xff] }
  0x2a   :  { %v3575_v11 = vld [vmem:[#allocation5 + $0xf0] sm:$0xf]  ;;  %v3512_v13 = vor.u32 %v3766_v10, %v3511_v9  ;;  %v85_v29 = vld [vmem:[%s6018_s0 + $0x98] sm:$0xff]  ;;  %v3723_v31 = vld [vmem:[%s6021_s3 + $0x24] sm:$0xf] }
  0x2b   :  { %1201 = vmatpush.bf16.msrb.mxu0 %v3308_v54  ;;  %v3740_v54 = vld [vmem:[%s6021_s3 + $0xa4] sm:$0xf0]  ;;  %v3576_v16 = vor.u32 %v3782_v14, %v3575_v11  ;;  %v3739_v35 = vld [vmem:[%s6021_s3 + $0xa4] sm:$0xf]  ;;  %v3345_v36 = vld [vmem:[%s6021_s3 + $0xa8] sm:$0xf0]  ;;  %v107_v37 = vpack.c.bf16 %v85_v29, %v84_v28 }
  0x2c   :  { %1290 = vmatpush.bf16.msrb.mxu1 %v3372_v56  ;;  %1024 = vmatpush.bf16.msra.mxu2 %v3296_v32  ;;  %v3344_v55 = vor.u32 %v3740_v54, %v3343_v53  ;;  %v3271_v56 = vld [vmem:[%s6021_s3 + $0x10] sm:$0xf]  ;;  %v3281_v32 = vld [vmem:[%s6021_s3 + $0x28] sm:$0xf0]  ;;  %v3764_v10 = vld [vmem:[#allocation5 + $0x64] sm:$0xf0] }
  0x2d   :  { %1113 = vmatpush.bf16.msra.mxu3 %v3360_v34  ;;  %v3284_v34 = vor.u32 %v3723_v31, %v3281_v32  ;;  %v3503_v9 = vld [vmem:[#allocation5 + $0x60] sm:$0xf]  ;;  %v3780_v14 = vld [vmem:[#allocation5 + $0xe4] sm:$0xf0] }
  0x2f   :  { %1202 = vmatpush.bf16.msrb.mxu0 %v3300_v2  ;;  %v3736_v2 = vld [vmem:[%s6021_s3 + $0x84] sm:$0xf0] }
  0x30   :  { %1291 = vmatpush.bf16.msrb.mxu1 %v3364_v4  ;;  %1025 = vmatpush.bf16.msra.mxu2 %v3288_v38  ;;  %v3328_v3 = vor.u32 %v3736_v2, %v3327_v0  ;;  %v124_v4 = vld [vmem:[%s6020_s2] sm:$0x3]  ;;  %v3348_v38 = vor.u32 %v3739_v35, %v3345_v36 }
  0x31   :  { %1114 = vmatpush.bf16.msra.mxu3 %v3352_v42  ;;  %v4565_v8 = vperm.slane %v124_v4, 1 }
  0x32   :  { %3166 = vmatmul.msk.bf16.gmra.mxu0 %vm180_vm0, %v99_v47 }
  0x33   :  { %3182 = vmatmul.msk.bf16.gmra.mxu1 %vm180_vm0, %v99_v47  ;;  %v3353_v47 = vld [vmem:[%s6021_s3 + $0xb8] sm:$0xf0]  ;;  %1203 = vmatpush.bf16.msrb.mxu0 %v3292_v46 }
  0x34   :  { %v3356_v51 = vor.u32 %v3741_v45, %v3353_v47  ;;  %1026 = vmatpush.bf16.msra.mxu2 %v3280_v52 }
  0x35   :  { %1115 = vmatpush.bf16.msra.mxu3 %v3344_v55 }
  0x36   :  { %1292 = vmatpush.bf16.msrb.mxu1 %v3356_v51 }
  0x37   :  { %1204 = vmatpush.bf16.msrb.mxu0 %v3284_v34 }
  0x39   :  { %1116 = vmatpush.bf16.msra.mxu3 %v3336_v61 }
  0x3a   :  { %1293 = vmatpush.bf16.msrb.mxu1 %v3348_v38 }
  0x3d   :  { %1117 = vmatpush.bf16.msra.mxu3 %v3328_v3  ;;  %v86_v3 = vld [vmem:[%s6018_s0 + $0xa0] sm:$0xff] }
  0x41   :  { %2080 = vmatpush.bf16.msrb.mxu3 %v3576_v16 }
  0x42   :  { %3167 = vmatmul.msk.bf16.gmra.mxu0 %vm180_vm0, %v100_v50 }
  0x43   :  { %3183 = vmatmul.msk.bf16.gmra.mxu1 %vm180_vm0, %v100_v50  ;;  %v105_v50 = vpack.c.bf16 %v81_v41, %v80_v40 }
  0x52   :  { %3168 = vmatmul.msk.bf16.gmra.mxu0 %vm180_vm0, %v101_v59 }
  0x53   :  { %3184 = vmatmul.msk.bf16.gmra.mxu1 %vm180_vm0, %v101_v59  ;;  %v3272_v59 = vor.u32 %v3722_v57, %v3271_v56 }
  0x55   :  { %1027 = vmatpush.bf16.msra.mxu2 %v3272_v59 }
  0x62   :  { %3169 = vmatmul.msk.bf16.gmra.mxu0 %vm180_vm0, %v102_v62 }
  0x63   :  { %3185 = vmatmul.msk.bf16.gmra.mxu1 %vm180_vm0, %v102_v62  ;;  %v3263_v62 = vld [vmem:[%s6021_s3] sm:$0xf] }
  0x64   :  { %v3264_v1 = vor.u32 %v3720_v63, %v3263_v62 }
  0x66   :  { %1028 = vmatpush.bf16.msra.mxu2 %v3264_v1 }
  0x6a   :  { %1991 = vmatpush.bf16.msrb.mxu2 %v3512_v13  ;;  %v3567_v13 = vld [vmem:[#allocation5 + $0xe0] sm:$0xf] }
  0x72   :  { %3170 = vmatmul.msk.bf16.gmra.mxu0 %vm180_vm0, %v103_v7 }
  0x73   :  { %3186 = vmatmul.msk.bf16.gmra.mxu1 %vm180_vm0, %v103_v7  ;;  %v4563_v7 = vperm.slane %v124_v4, 0  ;;  %v87_v4 = vld [vmem:[%s6018_s0 + $0xa8] sm:$0xff] }
  0x74   :  { %v108_v11 = vpack.c.bf16 %v87_v4, %v86_v3 }
  0x82   :  { %3171 = vmatmul.msk.bf16.gmra.mxu0 %vm180_vm0, %v104_v19 }
  0x83   :  { %3187 = vmatmul.msk.bf16.gmra.mxu1 %vm180_vm0, %v104_v19 }
  0x92   :  { %3172 = vmatmul.msk.bf16.gmra.mxu0 %vm180_vm0, %v105_v50 }
  0x93   :  { %3188 = vmatmul.msk.bf16.gmra.mxu1 %vm180_vm0, %v105_v50 }
  0x9f   :  { %v238_v15 = vpop.f32.mrf.mxu0 }
  0xa0   :  { %v239_v17 = vadd.f32 %v238_v15, %v4563_v7  ;;  %v327_v18 = vpop.f32.mrf.mxu1 }
  0xa1   :  { %v328_v19 = vadd.f32 %v327_v18, %v4565_v8 }
  0xa2   :  { %v471_v20 = vmul.f32 1.442695, %v239_v17  ;;  %3173 = vmatmul.msk.bf16.gmra.mxu0 %vm180_vm0, %v106_v12  ;;  %vm407_vm1 = vcmp.gt.f32.partialorder %v239_v17, 0.0 }
  0xa3   :  { %v473_v21 = vmul.f32 1.442695, %v328_v19  ;;  %3189 = vmatmul.msk.bf16.gmra.mxu1 %vm180_vm0, %v106_v12  ;;  %vm408_vm3 = vcmp.gt.f32.partialorder %v328_v19, 0.0  ;;  %v3504_v12 = vor.u32 %v3764_v10, %v3503_v9 }
  0xa4   :  { %3805 = vpow2.f32 %v471_v20 }
  0xa5   :  { %3807 = vpow2.f32 %v473_v21  ;;  %1992 = vmatpush.bf16.msrb.mxu2 %v3504_v12 }
  0xa7   :  { %v240_v22 = vpop.f32.mrf.mxu0 }
  0xa8   :  { %v241_v23 = vadd.f32 %v240_v22, %v4563_v7  ;;  %v329_v24 = vpop.f32.mrf.mxu1 }
  0xa9   :  { %v330_v25 = vadd.f32 %v329_v24, %v4565_v8 }
  0xaa   :  { %v475_v26 = vmul.f32 1.442695, %v241_v23  ;;  %v3806_v30 = vpop.eup %3805  ;;  %vm409_vm2 = vcmp.gt.f32.partialorder %v241_v23, 0.0 }
  0xab   :  { %v477_v27 = vmul.f32 1.442695, %v330_v25  ;;  %v3808_v33 = vpop.eup %3807  ;;  %v3197_v39 = vadd.f32 -1.0, %v3806_v30  ;;  %vm410_vm4 = vcmp.gt.f32.partialorder %v330_v25, 0.0 }
  0xac   :  { %3809 = vpow2.f32 %v475_v26  ;;  %v3198_v41 = vadd.f32 -1.0, %v3808_v33 }
  0xad   :  { %3811 = vpow2.f32 %v477_v27  ;;  %v663_v50 = vmul.f32 1.6732632, %v3197_v39 }
  0xae   :  { %v664_v52 = vmul.f32 1.6732632, %v3198_v41 }
  0xaf   :  { %v243_v40 = vpop.f32.mrf.mxu0  ;;  %v727_v56 = vsel %vm407_vm1, %v239_v17, %v663_v50  ;;  %v3568_v17 = vor.u32 %v3780_v14, %v3567_v13 }
  0xb0   :  { %v4592_v42 = vadd.f32 %v243_v40, %v4563_v7  ;;  %v332_v43 = vpop.f32.mrf.mxu1  ;;  %v728_v61 = vsel %vm408_vm3, %v328_v19, %v664_v52  ;;  %v3337_v52 = vld [vmem:[%s6021_s3 + $0x98] sm:$0xf0] }
  0xb1   :  { %v4595_v44 = vadd.f32 %v332_v43, %v4565_v8  ;;  %2081 = vmatpush.bf16.msrb.mxu3 %v3568_v17 }
  0xb2   :  { %v3810_v45 = vpop.eup %3809  ;;  %v479_v46 = vmul.f32 1.442695, %v4592_v42  ;;  %3174 = vmatmul.msk.bf16.gmra.mxu0 %vm180_vm0, %v107_v37  ;;  %vm411_vm5 = vcmp.gt.f32.partialorder %v4592_v42, 0.0 }
  0xb3   :  { %v3812_v47 = vpop.eup %3811  ;;  %v481_v48 = vmul.f32 1.442695, %v4595_v44  ;;  %3190 = vmatmul.msk.bf16.gmra.mxu1 %vm180_vm0, %v107_v37  ;;  %v3199_v49 = vadd.f32 -1.0, %v3810_v45  ;;  %vm412_vm7 = vcmp.gt.f32.partialorder %v4595_v44, 0.0 }
  0xb4   :  { %v3200_v51 = vadd.f32 -1.0, %v3812_v47  ;;  %3813 = vpow2.f32 %v479_v46  ;;  %v89_v46 = vld [vmem:[%s6018_s0 + $0xb8] sm:$0xff]  ;;  %v3721_v47 = vld [vmem:[%s6021_s3 + $0x14] sm:$0xf] }
  0xb5   :  { %v665_v53 = vmul.f32 1.6732632, %v3199_v49  ;;  %3815 = vpow2.f32 %v481_v48  ;;  %v3273_v48 = vld [vmem:[%s6021_s3 + $0x18] sm:$0xf0] }
  0xb6   :  { %v666_v54 = vmul.f32 1.6732632, %v3200_v51  ;;  %v3276_v50 = vor.u32 %v3721_v47, %v3273_v48  ;;  %v3737_v51 = vld [vmem:[%s6021_s3 + $0x94] sm:$0xf] }
  0xb7   :  { %v245_v55 = vpop.f32.mrf.mxu0  ;;  %v729_v57 = vsel %vm409_vm2, %v241_v23, %v665_v53 }
  0xb8   :  { %v246_v58 = vadd.f32 %v245_v55, %v4563_v7  ;;  %v334_v59 = vpop.f32.mrf.mxu1  ;;  %v4602_v60 = vpack.c.bf16 %v729_v57, %v727_v56  ;;  %v730_v62 = vsel %vm410_vm4, %v330_v25, %v666_v54  ;;  %v3340_v54 = vor.u32 %v3737_v51, %v3337_v52  ;;  %1205 = vmatpush.bf16.msrb.mxu0 %v3276_v50 }
  0xb9   :  { %v335_v63 = vadd.f32 %v334_v59, %v4565_v8  ;;  %v4605_v0 = vpack.c.bf16 %v730_v62, %v728_v61 }
  0xba   :  { %v483_v1 = vmul.f32 1.442695, %v246_v58  ;;  %1029 = vmatmul.bf16.vlgmr.msra.gmra.mxu2 %v4602_v60  ;;  %v3814_v5 = vpop.eup %3813  ;;  %vm413_vm6 = vcmp.gt.f32.partialorder %v246_v58, 0.0  ;;  %1294 = vmatpush.bf16.msrb.mxu1 %v3340_v54 }
  0xbb   :  { %v485_v2 = vmul.f32 1.442695, %v335_v63  ;;  %1118 = vmatmul.bf16.vlgmr.msra.gmra.mxu3 %v4605_v0  ;;  %v3816_v6 = vpop.eup %3815  ;;  %v3201_v15 = vadd.f32 -1.0, %v3814_v5  ;;  %vm414_vm8 = vcmp.gt.f32.partialorder %v335_v63, 0.0 }
  0xbc   :  { %3817 = vpow2.f32 %v483_v1  ;;  %v3202_v18 = vadd.f32 -1.0, %v3816_v6 }
  0xbd   :  { %3819 = vpow2.f32 %v485_v2  ;;  %v667_v27 = vmul.f32 1.6732632, %v3201_v15 }
  0xbe   :  { %v668_v29 = vmul.f32 1.6732632, %v3202_v18 }
  0xbf   :  { %v248_v16 = vpop.f32.mrf.mxu0  ;;  %v731_v33 = vsel %vm411_vm5, %v4592_v42, %v667_v27  ;;  %v88_v42 = vld [vmem:[%s6018_s0 + $0xb0] sm:$0xff]  ;;  %v3495_v27 = vld [vmem:[#allocation5 + $0x50] sm:$0xf] }
  0xc0   :  { %v4616_v19 = vadd.f32 %v248_v16, %v4563_v7  ;;  %v337_v20 = vpop.f32.mrf.mxu1  ;;  %v732_v38 = vsel %vm412_vm7, %v4595_v44, %v668_v29  ;;  %v109_v53 = vpack.c.bf16 %v89_v46, %v88_v42 }
  0xc1   :  { %v4619_v21 = vadd.f32 %v337_v20, %v4565_v8 }
  0xc2   :  { %v3818_v22 = vpop.eup %3817  ;;  %v487_v23 = vmul.f32 1.442695, %v4616_v19  ;;  %3175 = vmatmul.msk.bf16.gmra.mxu0 %vm180_vm0, %v108_v11  ;;  %vm415_vm9 = vcmp.gt.f32.partialorder %v4616_v19, 0.0 }
  0xc3   :  { %v3820_v24 = vpop.eup %3819  ;;  %v489_v25 = vmul.f32 1.442695, %v4619_v21  ;;  %3191 = vmatmul.msk.bf16.gmra.mxu1 %vm180_vm0, %v108_v11  ;;  %v3203_v26 = vadd.f32 -1.0, %v3818_v22  ;;  %vm416_vm11 = vcmp.gt.f32.partialorder %v4619_v21, 0.0 }
  0xc4   :  { %v3204_v28 = vadd.f32 -1.0, %v3820_v24  ;;  %3821 = vpow2.f32 %v487_v23 }
  0xc5   :  { %v669_v30 = vmul.f32 1.6732632, %v3203_v26  ;;  %3823 = vpow2.f32 %v489_v25  ;;  %v91_v25 = vld [vmem:[%s6018_s0 + $0xc8] sm:$0xff] }
  0xc6   :  { %v670_v31 = vmul.f32 1.6732632, %v3204_v28  ;;  %v3762_v28 = vld [vmem:[#allocation5 + $0x54] sm:$0xf0] }
  0xc7   :  { %v250_v32 = vpop.f32.mrf.mxu0  ;;  %v733_v34 = vsel %vm413_vm6, %v246_v58, %v669_v30  ;;  %v3496_v30 = vor.u32 %v3762_v28, %v3495_v27 }
  0xc8   :  { %v251_v35 = vadd.f32 %v250_v32, %v4563_v7  ;;  %v339_v36 = vpop.f32.mrf.mxu1  ;;  %v4629_v37 = vpack.c.bf16 %v733_v34, %v731_v33  ;;  %v734_v39 = vsel %vm414_vm8, %v335_v63, %v670_v31  ;;  %v3559_v31 = vld [vmem:[#allocation5 + $0xd0] sm:$0xf]  ;;  %v3778_v32 = vld [vmem:[#allocation5 + $0xd4] sm:$0xf0] }
  0xc9   :  { %v340_v40 = vadd.f32 %v339_v36, %v4565_v8  ;;  %v4633_v41 = vpack.c.bf16 %v734_v39, %v732_v38  ;;  %1993 = vmatpush.bf16.msrb.mxu2 %v3496_v30 }
  0xca   :  { %v491_v43 = vmul.f32 1.442695, %v251_v35  ;;  %1034 = vmatmul.bf16.gmra.mxu2 %v4629_v37  ;;  %v3822_v44 = vpop.eup %3821  ;;  %vm417_vm10 = vcmp.gt.f32.partialorder %v251_v35, 0.0 }
  0xcb   :  { %v493_v45 = vmul.f32 1.442695, %v340_v40  ;;  %1123 = vmatmul.bf16.gmra.mxu3 %v4633_v41  ;;  %v3824_v49 = vpop.eup %3823  ;;  %v3205_v55 = vadd.f32 -1.0, %v3822_v44  ;;  %vm418_vm12 = vcmp.gt.f32.partialorder %v340_v40, 0.0 }
  0xcc   :  { %3825 = vpow2.f32 %v491_v43  ;;  %v3206_v57 = vadd.f32 -1.0, %v3824_v49 }
  0xcd   :  { %3827 = vpow2.f32 %v493_v45  ;;  %v671_v4 = vmul.f32 1.6732632, %v3205_v55 }
  0xce   :  { %v672_v6 = vmul.f32 1.6732632, %v3206_v57 }
  0xcf   :  { %v253_v56 = vpop.f32.mrf.mxu0  ;;  %v735_v12 = vsel %vm415_vm9, %v4616_v19, %v671_v4  ;;  %v90_v19 = vld [vmem:[%s6018_s0 + $0xc0] sm:$0xff]  ;;  %v93_v4 = vld [vmem:[%s6018_s0 + $0xd8] sm:$0xff] }
  0xd0   :  { %v4656_v58 = vadd.f32 %v253_v56, %v4563_v7  ;;  %v342_v59 = vpop.f32.mrf.mxu1  ;;  %v736_v17 = vsel %vm416_vm11, %v4619_v21, %v672_v6  ;;  %v110_v29 = vpack.c.bf16 %v91_v25, %v90_v19  ;;  %v3265_v6 = vld [vmem:[%s6021_s3 + $0x8] sm:$0xf0] }
  0xd1   :  { %v4659_v61 = vadd.f32 %v342_v59, %v4565_v8 }
  0xd2   :  { %v3826_v62 = vpop.eup %3825  ;;  %v495_v63 = vmul.f32 1.442695, %v4656_v58  ;;  %3176 = vmatmul.msk.bf16.gmra.mxu0 %vm180_vm0, %v109_v53  ;;  %vm419_vm13 = vcmp.gt.f32.partialorder %v4656_v58, 0.0 }
  0xd3   :  { %v3828_v1 = vpop.eup %3827  ;;  %v497_v2 = vmul.f32 1.442695, %v4659_v61  ;;  %3192 = vmatmul.msk.bf16.gmra.mxu1 %vm180_vm0, %v109_v53  ;;  %v3207_v3 = vadd.f32 -1.0, %v3826_v62  ;;  %vm420_vm15 = vcmp.gt.f32.partialorder %v4659_v61, 0.0 }
  0xd4   :  { %v3208_v5 = vadd.f32 -1.0, %v3828_v1  ;;  %3829 = vpow2.f32 %v495_v63 }
  0xd5   :  { %v673_v9 = vmul.f32 1.6732632, %v3207_v3  ;;  %3831 = vpow2.f32 %v497_v2 }
  0xd6   :  { %v674_v10 = vmul.f32 1.6732632, %v3208_v5  ;;  %v3719_v5 = vld [vmem:[%s6021_s3 + $0x4] sm:$0xf] }
  0xd7   :  { %v255_v11 = vpop.f32.mrf.mxu0  ;;  %v737_v13 = vsel %vm417_vm10, %v251_v35, %v673_v9  ;;  %v3560_v35 = vor.u32 %v3778_v32, %v3559_v31 }
  0xd8   :  { %v256_v14 = vadd.f32 %v255_v11, %v4563_v7  ;;  %v344_v15 = vpop.f32.mrf.mxu1  ;;  %v4669_v16 = vpack.c.bf16 %v737_v13, %v735_v12  ;;  %v738_v18 = vsel %vm418_vm12, %v340_v40, %v674_v10  ;;  %v3268_v10 = vor.u32 %v3719_v5, %v3265_v6  ;;  %v3735_v11 = vld [vmem:[%s6021_s3 + $0x84] sm:$0xf]  ;;  %v3329_v12 = vld [vmem:[%s6021_s3 + $0x88] sm:$0xf0] }
  0xd9   :  { %v345_v20 = vadd.f32 %v344_v15, %v4565_v8  ;;  %v4673_v22 = vpack.c.bf16 %v738_v18, %v736_v17  ;;  %2082 = vmatpush.bf16.msrb.mxu3 %v3560_v35 }
  0xda   :  { %v499_v23 = vmul.f32 1.442695, %v256_v14  ;;  %1039 = vmatmul.bf16.gmra.mxu2 %v4669_v16  ;;  %v3830_v21 = vpop.eup %3829  ;;  %vm421_vm14 = vcmp.gt.f32.partialorder %v256_v14, 0.0  ;;  %1206 = vmatpush.bf16.msrb.mxu0 %v3268_v10 }
  0xdb   :  { %v501_v24 = vmul.f32 1.442695, %v345_v20  ;;  %1128 = vmatmul.bf16.gmra.mxu3 %v4673_v22  ;;  %v3832_v26 = vpop.eup %3831  ;;  %v3209_v33 = vadd.f32 -1.0, %v3830_v21  ;;  %vm422_vm1 = vcmp.gt.f32.partialorder %v345_v20, 0.0 }
  0xdc   :  { %3833 = vpow2.f32 %v499_v23  ;;  %v3210_v36 = vadd.f32 -1.0, %v3832_v26 }
  0xdd   :  { %3835 = vpow2.f32 %v501_v24  ;;  %v675_v47 = vmul.f32 1.6732632, %v3209_v33 }
  0xde   :  { %v676_v49 = vmul.f32 1.6732632, %v3210_v36 }
  0xdf   :  { %v258_v34 = vpop.f32.mrf.mxu0  ;;  %v739_v53 = vsel %vm419_vm13, %v4656_v58, %v675_v47  ;;  %v92_v58 = vld [vmem:[%s6018_s0 + $0xd0] sm:$0xff] }
  0xe0   :  { %v4684_v38 = vadd.f32 %v258_v34, %v4563_v7  ;;  %v347_v39 = vpop.f32.mrf.mxu1  ;;  %v740_v59 = vsel %vm420_vm15, %v4659_v61, %v676_v49  ;;  %v111_v13 = vpack.c.bf16 %v93_v4, %v92_v58  ;;  %v95_v49 = vld [vmem:[%s6018_s0 + $0xe8] sm:$0xff] }
  0xe1   :  { %v4687_v40 = vadd.f32 %v347_v39, %v4565_v8 }
  0xe2   :  { %v3834_v43 = vpop.eup %3833  ;;  %v503_v45 = vmul.f32 1.442695, %v4684_v38  ;;  %3177 = vmatmul.msk.bf16.gmra.mxu0 %vm180_vm0, %v110_v29  ;;  %vm423_vm2 = vcmp.gt.f32.partialorder %v4684_v38, 0.0 }
  0xe3   :  { %v3836_v42 = vpop.eup %3835  ;;  %v505_v46 = vmul.f32 1.442695, %v4687_v40  ;;  %3193 = vmatmul.msk.bf16.gmra.mxu1 %vm180_vm0, %v110_v29  ;;  %v3211_v44 = vadd.f32 -1.0, %v3834_v43  ;;  %vm424_vm4 = vcmp.gt.f32.partialorder %v4687_v40, 0.0 }
  0xe4   :  { %v3212_v48 = vadd.f32 -1.0, %v3836_v42  ;;  %3837 = vpow2.f32 %v503_v45 }
  0xe5   :  { %v677_v50 = vmul.f32 1.6732632, %v3211_v44  ;;  %3839 = vpow2.f32 %v505_v46 }
  0xe6   :  { %v678_v51 = vmul.f32 1.6732632, %v3212_v48 }
  0xe7   :  { %v260_v52 = vpop.f32.mrf.mxu0  ;;  %v741_v54 = vsel %vm421_vm14, %v256_v14, %v677_v50  ;;  %v3332_v14 = vor.u32 %v3735_v11, %v3329_v12 }
  0xe8   :  { %v261_v55 = vadd.f32 %v260_v52, %v4563_v7  ;;  %v349_v56 = vpop.f32.mrf.mxu1  ;;  %v4697_v57 = vpack.c.bf16 %v741_v54, %v739_v53  ;;  %v742_v62 = vsel %vm422_vm1, %v345_v20, %v678_v51  ;;  %v3487_v51 = vld [vmem:[#allocation5 + $0x40] sm:$0xf]  ;;  %v3760_v52 = vld [vmem:[#allocation5 + $0x44] sm:$0xf0] }
  0xe9   :  { %v350_v63 = vadd.f32 %v349_v56, %v4565_v8  ;;  %v4701_v1 = vpack.c.bf16 %v742_v62, %v740_v59  ;;  %1295 = vmatpush.bf16.msrb.mxu1 %v3332_v14  ;;  %v3488_v54 = vor.u32 %v3760_v52, %v3487_v51  ;;  %v3776_v56 = vld [vmem:[#allocation5 + $0xc4] sm:$0xf0] }
  0xea   :  { %v507_v2 = vmul.f32 1.442695, %v261_v55  ;;  %1044 = vmatmul.bf16.gmra.mxu2 %v4697_v57  ;;  %v3838_v61 = vpop.eup %3837  ;;  %vm425_vm3 = vcmp.gt.f32.partialorder %v261_v55, 0.0 }
  0xeb   :  { %v509_v3 = vmul.f32 1.442695, %v350_v63  ;;  %1133 = vmatmul.bf16.gmra.mxu3 %v4701_v1  ;;  %v3840_v9 = vpop.eup %3839  ;;  %v3213_v15 = vadd.f32 -1.0, %v3838_v61  ;;  %vm426_vm5 = vcmp.gt.f32.partialorder %v350_v63, 0.0  ;;  %1994 = vmatpush.bf16.msrb.mxu2 %v3488_v54 }
  0xec   :  { %3841 = vpow2.f32 %v507_v2  ;;  %v3214_v18 = vadd.f32 -1.0, %v3840_v9 }
  0xed   :  { %3843 = vpow2.f32 %v509_v3  ;;  %v679_v28 = vmul.f32 1.6732632, %v3213_v15 }
  0xee   :  { %v680_v30 = vmul.f32 1.6732632, %v3214_v18 }
  0xef   :  { %v263_v17 = vpop.f32.mrf.mxu0  ;;  %v743_v34 = vsel %vm423_vm2, %v4684_v38, %v679_v28  ;;  %v94_v38 = vld [vmem:[%s6018_s0 + $0xe0] sm:$0xff] }
  0xf0   :  { %v4724_v20 = vadd.f32 %v263_v17, %v4563_v7  ;;  %v352_v23 = vpop.f32.mrf.mxu1  ;;  %v744_v45 = vsel %vm424_vm4, %v4687_v40, %v680_v30  ;;  %v112_v53 = vpack.c.bf16 %v95_v49, %v94_v38 }
  0xf1   :  { %v4727_v24 = vadd.f32 %v352_v23, %v4565_v8 }
  0xf2   :  { %v3842_v19 = vpop.eup %3841  ;;  %v511_v25 = vmul.f32 1.442695, %v4724_v20  ;;  %3178 = vmatmul.msk.bf16.gmra.mxu0 %vm180_vm0, %v111_v13  ;;  %vm427_vm6 = vcmp.gt.f32.partialorder %v4724_v20, 0.0 }
  0xf3   :  { %v3844_v21 = vpop.eup %3843  ;;  %v513_v26 = vmul.f32 1.442695, %v4727_v24  ;;  %3194 = vmatmul.msk.bf16.gmra.mxu1 %vm180_vm0, %v111_v13  ;;  %v3215_v27 = vadd.f32 -1.0, %v3842_v19  ;;  %vm428_vm8 = vcmp.gt.f32.partialorder %v4727_v24, 0.0 }
  0xf4   :  { %v3216_v29 = vadd.f32 -1.0, %v3844_v21  ;;  %3845 = vpow2.f32 %v511_v25 }
  0xf5   :  { %v681_v31 = vmul.f32 1.6732632, %v3215_v27  ;;  %3847 = vpow2.f32 %v513_v26 }
  0xf6   :  { %v682_v32 = vmul.f32 1.6732632, %v3216_v29 }
  0xf7   :  { %v265_v33 = vpop.f32.mrf.mxu0  ;;  %v745_v35 = vsel %vm425_vm3, %v261_v55, %v681_v31  ;;  %v3551_v55 = vld [vmem:[#allocation5 + $0xc0] sm:$0xf] }
  0xf8   :  { %v266_v36 = vadd.f32 %v265_v33, %v4563_v7  ;;  %v354_v39 = vpop.f32.mrf.mxu1  ;;  %v4737_v43 = vpack.c.bf16 %v745_v35, %v743_v34  ;;  %v746_v42 = vsel %vm426_vm5, %v350_v63, %v682_v32  ;;  %v3552_v63 = vor.u32 %v3776_v56, %v3551_v55  ;;  %v97_v32 = vld [vmem:[%s6018_s0 + $0xf8] sm:$0xff]  ;;  %v3765_v33 = vld [vmem:[#allocation5 + $0x74] sm:$0xf]  ;;  %v3513_v34 = vld [vmem:[#allocation5 + $0x78] sm:$0xf0] }
  0xf9   :  { %v355_v46 = vadd.f32 %v354_v39, %v4565_v8  ;;  %v4741_v44 = vpack.c.bf16 %v746_v42, %v744_v45  ;;  %v3781_v39 = vld [vmem:[#allocation5 + $0xf4] sm:$0xf]  ;;  %v3577_v45 = vld [vmem:[#allocation5 + $0xf8] sm:$0xf0] }
  0xfa   :  { %v515_v47 = vmul.f32 1.442695, %v266_v36  ;;  %1049 = vmatmul.bf16.gmra.mxu2 %v4737_v43  ;;  %v3846_v40 = vpop.eup %3845  ;;  %2083 = vmatpush.bf16.msrb.mxu3 %v3552_v63  ;;  %vm429_vm7 = vcmp.gt.f32.partialorder %v266_v36, 0.0 }
  0xfb   :  { %v517_v48 = vmul.f32 1.442695, %v355_v46  ;;  %1138 = vmatmul.bf16.gmra.mxu3 %v4741_v44  ;;  %v3848_v50 = vpop.eup %3847  ;;  %v3217_v59 = vadd.f32 -1.0, %v3846_v40  ;;  %vm430_vm9 = vcmp.gt.f32.partialorder %v355_v46, 0.0 }
  0xfc   :  { %3849 = vpow2.f32 %v515_v47  ;;  %v3218_v2 = vadd.f32 -1.0, %v3848_v50 }
  0xfd   :  { %3851 = vpow2.f32 %v517_v48  ;;  %v683_v11 = vmul.f32 1.6732632, %v3217_v59 }
  0xfe   :  { %v684_v13 = vmul.f32 1.6732632, %v3218_v2 }
  0xff   :  { %v268_v62 = vpop.f32.mrf.mxu0  ;;  %v747_v18 = vsel %vm427_vm6, %v4724_v20, %v683_v11  ;;  %v96_v20 = vld [vmem:[%s6018_s0 + $0xf0] sm:$0xff] }
 0x100   :  { %v4752_v3 = vadd.f32 %v268_v62, %v4563_v7  ;;  %v357_v58 = vpop.f32.mrf.mxu1  ;;  %v748_v26 = vsel %vm428_vm8, %v4727_v24, %v684_v13  ;;  %v113_v42 = vpack.c.bf16 %v97_v32, %v96_v20 }
 0x101   :  { %v4755_v4 = vadd.f32 %v357_v58, %v4565_v8 }
 0x102   :  { %v3850_v61 = vpop.eup %3849  ;;  %v519_v5 = vmul.f32 1.442695, %v4752_v3  ;;  %3179 = vmatmul.msk.bf16.gmra.mxu0 %vm180_vm0, %v112_v53  ;;  %vm431_vm10 = vcmp.gt.f32.partialorder %v4752_v3, 0.0 }
 0x103   :  { %v3852_v6 = vpop.eup %3851  ;;  %v521_v9 = vmul.f32 1.442695, %v4755_v4  ;;  %3195 = vmatmul.msk.bf16.gmra.mxu1 %vm180_vm0, %v112_v53  ;;  %v3219_v10 = vadd.f32 -1.0, %v3850_v61  ;;  %vm432_vm12 = vcmp.gt.f32.partialorder %v4755_v4, 0.0 }
 0x104   :  { %v3220_v12 = vadd.f32 -1.0, %v3852_v6  ;;  %3853 = vpow2.f32 %v519_v5 }
 0x105   :  { %v685_v14 = vmul.f32 1.6732632, %v3219_v10  ;;  %3855 = vpow2.f32 %v521_v9 }
 0x106   :  { %v686_v15 = vmul.f32 1.6732632, %v3220_v12 }
 0x107   :  { %v270_v17 = vpop.f32.mrf.mxu0  ;;  %v749_v23 = vsel %vm429_vm7, %v266_v36, %v685_v14  ;;  %v3516_v36 = vor.u32 %v3765_v33, %v3513_v34 }
 0x108   :  { %v271_v19 = vadd.f32 %v270_v17, %v4563_v7  ;;  %v359_v25 = vpop.f32.mrf.mxu1  ;;  %v4765_v21 = vpack.c.bf16 %v749_v23, %v747_v18  ;;  %v750_v27 = vsel %vm430_vm9, %v355_v46, %v686_v15  ;;  %v3580_v46 = vor.u32 %v3781_v39, %v3577_v45  ;;  %v3479_v23 = vld [vmem:[#allocation5 + $0x30] sm:$0xf] }
 0x109   :  { %v360_v28 = vadd.f32 %v359_v25, %v4565_v8  ;;  %v4769_v29 = vpack.c.bf16 %v750_v27, %v748_v26  ;;  %2169 = vmatpush.bf16.msra.mxu0 %v3516_v36  ;;  %v3543_v26 = vld [vmem:[#allocation5 + $0xb0] sm:$0xf] }
 0x10a   :  { %v523_v30 = vmul.f32 1.442695, %v271_v19  ;;  %1054 = vmatmul.bf16.gmra.mxu2 %v4765_v21  ;;  %v3854_v24 = vpop.eup %3853  ;;  %2258 = vmatpush.bf16.msra.mxu1 %v3580_v46  ;;  %vm433_vm11 = vcmp.gt.f32.partialorder %v271_v19, 0.0 }
 0x10b   :  { %v525_v31 = vmul.f32 1.442695, %v360_v28  ;;  %1143 = vmatmul.bf16.gmra.mxu3 %v4769_v29  ;;  %v3856_v35 = vpop.eup %3855  ;;  %v3221_v47 = vadd.f32 -1.0, %v3854_v24  ;;  %vm434_vm13 = vcmp.gt.f32.partialorder %v360_v28, 0.0 }
 0x10c   :  { %3857 = vpow2.f32 %v523_v30  ;;  %v3222_v38 = vadd.f32 -1.0, %v3856_v35 }
 0x10d   :  { %3859 = vpow2.f32 %v525_v31  ;;  %v687_v56 = vmul.f32 1.6732632, %v3221_v47 }
 0x10e   :  { %v688_v62 = vmul.f32 1.6732632, %v3222_v38 }
 0x10f   :  { %v273_v48 = vpop.f32.mrf.mxu0  ;;  %v751_v61 = vsel %vm431_vm10, %v4752_v3, %v687_v56 }
 0x110   :  { %v4780_v49 = vadd.f32 %v273_v48, %v4563_v7  ;;  %v362_v40 = vpop.f32.mrf.mxu1  ;;  %v752_v11 = vsel %vm432_vm12, %v4755_v4, %v688_v62  ;;  %v3774_v4 = vld [vmem:[#allocation5 + $0xb4] sm:$0xf0] }
 0x111   :  { %v4783_v50 = vadd.f32 %v362_v40, %v4565_v8  ;;  %v3544_v30 = vor.u32 %v3774_v4, %v3543_v26 }
 0x112   :  { %v3858_v51 = vpop.eup %3857  ;;  %v527_v52 = vmul.f32 1.442695, %v4780_v49  ;;  %3180 = vmatmul.msk.bf16.gmra.mxu0 %vm180_vm0, %v113_v42 }
 0x113   :  { %v3860_v53 = vpop.eup %3859  ;;  %v529_v54 = vmul.f32 1.442695, %v4783_v50  ;;  %3196 = vmatmul.msk.bf16.gmra.mxu1 %vm180_vm0, %v113_v42  ;;  %v3223_v55 = vadd.f32 -1.0, %v3858_v51  ;;  %2084 = vmatpush.bf16.msrb.mxu3 %v3544_v30  ;;  %vm435_vm0 = vcmp.gt.f32.partialorder %v4780_v49, 0.0  ;;  %vm436_vm15 = vcmp.gt.f32.partialorder %v4783_v50, 0.0 }
 0x114   :  { %v3224_v59 = vadd.f32 -1.0, %v3860_v53  ;;  %3861 = vpow2.f32 %v527_v52 }
 0x115   :  { %v689_v63 = vmul.f32 1.6732632, %v3223_v55  ;;  %3863 = vpow2.f32 %v529_v54 }
 0x116   :  { %v690_v2 = vmul.f32 1.6732632, %v3224_v59 }
 0x117   :  { %v275_v58 = vpop.f32.mrf.mxu0  ;;  %v753_v5 = vsel %vm433_vm11, %v271_v19, %v689_v63  ;;  %v3758_v19 = vld [vmem:[#allocation5 + $0x34] sm:$0xf0] }
 0x118   :  { %v276_v6 = vadd.f32 %v275_v58, %v4563_v7  ;;  %v364_v9 = vpop.f32.mrf.mxu1  ;;  %v4793_v10 = vpack.c.bf16 %v753_v5, %v751_v61  ;;  %v754_v12 = vsel %vm434_vm13, %v360_v28, %v690_v2  ;;  %v3480_v25 = vor.u32 %v3758_v19, %v3479_v23  ;;  %v3763_v61 = vld [vmem:[#allocation5 + $0x64] sm:$0xf]  ;;  %v3505_v5 = vld [vmem:[#allocation5 + $0x68] sm:$0xf0] }
 0x119   :  { %v365_v13 = vadd.f32 %v364_v9, %v4565_v8  ;;  %v4797_v14 = vpack.c.bf16 %v754_v12, %v752_v11  ;;  %v3508_v12 = vor.u32 %v3763_v61, %v3505_v5 }
 0x11a   :  { %v531_v15 = vmul.f32 1.442695, %v276_v6  ;;  %1059 = vmatmul.bf16.gmra.mxu2 %v4793_v10  ;;  %v3862_v3 = vpop.eup %3861  ;;  %vm437_vm14 = vcmp.gt.f32.partialorder %v276_v6, 0.0 }
 0x11b   :  { %v533_v17 = vmul.f32 1.442695, %v365_v13  ;;  %1148 = vmatmul.bf16.gmra.mxu3 %v4797_v14  ;;  %v3864_v18 = vpop.eup %3863  ;;  %v3225_v27 = vadd.f32 -1.0, %v3862_v3  ;;  %1995 = vmatpush.bf16.msrb.mxu2 %v3480_v25  ;;  %vm438_vm1 = vcmp.gt.f32.partialorder %v365_v13, 0.0 }
 0x11c   :  { %3865 = vpow2.f32 %v531_v15  ;;  %v3226_v31 = vadd.f32 -1.0, %v3864_v18  ;;  %2170 = vmatpush.bf16.msra.mxu0 %v3508_v12 }
 0x11d   :  { %3867 = vpow2.f32 %v533_v17  ;;  %v691_v45 = vmul.f32 1.6732632, %v3225_v27 }
 0x11e   :  { %v692_v46 = vmul.f32 1.6732632, %v3226_v31 }
 0x11f   :  { %v278_v28 = vpop.f32.mrf.mxu0 }
 0x120   :  { %v4802_v20 = vadd.f32 %v278_v28, %v4563_v7  ;;  %v367_v32 = vpop.f32.mrf.mxu1  ;;  %v756_v53 = vsel %vm436_vm15, %v4783_v50, %v692_v46  ;;  %v3779_v50 = vld [vmem:[#allocation5 + $0xe4] sm:$0xf] }
 0x121   :  { %v4805_v24 = vadd.f32 %v367_v32, %v4565_v8 }
 0x122   :  { %v3866_v33 = vpop.eup %3865  ;;  %v535_v34 = vmul.f32 1.442695, %v4802_v20  ;;  %1207 = vmatmul.bf16.vlgmr.msrb.gmra.mxu0 %v4602_v60  ;;  %v755_v60 = vsel %vm435_vm0, %v4780_v49, %v691_v45  ;;  %vm439_vm2 = vcmp.gt.f32.partialorder %v4802_v20, 0.0 }
 0x123   :  { %v3868_v35 = vpop.eup %3867  ;;  %v537_v36 = vmul.f32 1.442695, %v4805_v24  ;;  %1296 = vmatmul.bf16.vlgmr.msrb.gmra.mxu1 %v4605_v0  ;;  %v3227_v39 = vadd.f32 -1.0, %v3866_v33  ;;  %vm440_vm4 = vcmp.gt.f32.partialorder %v4805_v24, 0.0 }
 0x124   :  { %v3228_v42 = vadd.f32 -1.0, %v3868_v35  ;;  %3869 = vpow2.f32 %v535_v34 }
 0x125   :  { %v693_v47 = vmul.f32 1.6732632, %v3227_v39  ;;  %3871 = vpow2.f32 %v537_v36 }
 0x126   :  { %v694_v48 = vmul.f32 1.6732632, %v3228_v42 }
 0x127   :  { %v280_v38 = vpop.f32.mrf.mxu0  ;;  %v757_v40 = vsel %vm437_vm14, %v276_v6, %v693_v47 }
 0x128   :  { %v281_v0 = vadd.f32 %v280_v38, %v4563_v7  ;;  %v369_v51 = vpop.f32.mrf.mxu1  ;;  %v4815_v52 = vpack.c.bf16 %v757_v40, %v755_v60  ;;  %v758_v54 = vsel %vm438_vm1, %v365_v13, %v694_v48  ;;  %v3569_v13 = vld [vmem:[#allocation5 + $0xe8] sm:$0xf0] }
 0x129   :  { %v370_v55 = vadd.f32 %v369_v51, %v4565_v8  ;;  %v4819_v56 = vpack.c.bf16 %v758_v54, %v756_v53  ;;  %v3572_v17 = vor.u32 %v3779_v50, %v3569_v13 }
 0x12a   :  { %v539_v59 = vmul.f32 1.442695, %v281_v0  ;;  %1064 = vmatmul.bf16.gmra.mxu2 %v4815_v52  ;;  %v3870_v62 = vpop.eup %3869  ;;  %vm441_vm3 = vcmp.gt.f32.partialorder %v281_v0, 0.0 }
 0x12b   :  { %v541_v63 = vmul.f32 1.442695, %v370_v55  ;;  %1153 = vmatmul.bf16.gmra.mxu3 %v4819_v56  ;;  %v3872_v49 = vpop.eup %3871  ;;  %v3229_v2 = vadd.f32 -1.0, %v3870_v62  ;;  %2259 = vmatpush.bf16.msra.mxu1 %v3572_v17  ;;  %vm442_vm5 = vcmp.gt.f32.partialorder %v370_v55, 0.0  ;;  %v3471_v17 = vld [vmem:[#allocation5 + $0x20] sm:$0xf] }
 0x12c   :  { %3873 = vpow2.f32 %v539_v59  ;;  %v3230_v6 = vadd.f32 -1.0, %v3872_v49 }
 0x12d   :  { %3875 = vpow2.f32 %v541_v63  ;;  %v695_v26 = vmul.f32 1.6732632, %v3229_v2 }
 0x12e   :  { %v696_v27 = vmul.f32 1.6732632, %v3230_v6 }
 0x12f   :  { %v283_v58 = vpop.f32.mrf.mxu0 }
 0x130   :  { %v4824_v9 = vadd.f32 %v283_v58, %v4563_v7  ;;  %v372_v11 = vpop.f32.mrf.mxu1  ;;  %v760_v36 = vsel %vm440_vm4, %v4805_v24, %v696_v27 }
 0x131   :  { %v4827_v15 = vadd.f32 %v372_v11, %v4565_v8 }
 0x132   :  { %v3874_v3 = vpop.eup %3873  ;;  %v543_v18 = vmul.f32 1.442695, %v4824_v9  ;;  %1212 = vmatmul.bf16.gmra.mxu0 %v4629_v37  ;;  %v759_v37 = vsel %vm439_vm2, %v4802_v20, %v695_v26  ;;  %vm443_vm6 = vcmp.gt.f32.partialorder %v4824_v9, 0.0 }
 0x133   :  { %v3876_v23 = vpop.eup %3875  ;;  %v545_v19 = vmul.f32 1.442695, %v4827_v15  ;;  %1301 = vmatmul.bf16.gmra.mxu1 %v4633_v41  ;;  %v3231_v25 = vadd.f32 -1.0, %v3874_v3  ;;  %v4839_v41 = vld [vmem:[%s6022_s4] sm:$0x3]  ;;  %vm444_vm7 = vcmp.gt.f32.partialorder %v4827_v15, 0.0 }
 0x134   :  { %v3232_v4 = vadd.f32 -1.0, %v3876_v23  ;;  %3877 = vpow2.f32 %v543_v18  ;;  %v4850_v46 = vperm.slane %v4839_v41, 0  ;;  %v3756_v3 = vld [vmem:[#allocation5 + $0x24] sm:$0xf0] }
 0x135   :  { %v697_v28 = vmul.f32 1.6732632, %v3231_v25  ;;  %3879 = vpow2.f32 %v545_v19  ;;  %v3472_v19 = vor.u32 %v3756_v3, %v3471_v17  ;;  %v3772_v25 = vld [vmem:[#allocation5 + $0xa4] sm:$0xf0] }
 0x136   :  { %v698_v30 = vmul.f32 1.6732632, %v3232_v4 }
 0x137   :  { %v285_v31 = vpop.f32.mrf.mxu0  ;;  %v761_v32 = vsel %vm441_vm3, %v281_v0, %v697_v28  ;;  %1996 = vmatpush.bf16.msrb.mxu2 %v3472_v19 }
 0x138   :  { %v286_v33 = vadd.f32 %v285_v31, %v4563_v7  ;;  %v374_v34 = vpop.f32.mrf.mxu1  ;;  %v4842_v35 = vpack.c.bf16 %v761_v32, %v759_v37  ;;  %v762_v39 = vsel %vm442_vm5, %v370_v55, %v698_v30 }
 0x139   :  { %v375_v45 = vadd.f32 %v374_v34, %v4565_v8  ;;  %v4846_v20 = vpack.c.bf16 %v762_v39, %v760_v36 }
 0x13a   :  { %v547_v42 = vmul.f32 1.442695, %v286_v33  ;;  %1069 = vmatmul.bf16.gmra.mxu2 %v4842_v35  ;;  %v3878_v47 = vpop.eup %3877  ;;  %vm445_vm8 = vcmp.gt.f32.partialorder %v286_v33, 0.0 }
 0x13b   :  { %v549_v48 = vmul.f32 1.442695, %v375_v45  ;;  %1158 = vmatmul.bf16.gmra.mxu3 %v4846_v20  ;;  %v3880_v38 = vpop.eup %3879  ;;  %v3233_v24 = vadd.f32 -1.0, %v3878_v47  ;;  %vm446_vm9 = vcmp.gt.f32.partialorder %v375_v45, 0.0 }
 0x13c   :  { %3881 = vpow2.f32 %v547_v42  ;;  %v3234_v51 = vadd.f32 -1.0, %v3880_v38 }
 0x13d   :  { %3883 = vpow2.f32 %v549_v48  ;;  %v1030_v60 = vpop.f32.mrf.mxu2  ;;  %v699_v58 = vmul.f32 1.6732632, %v3233_v24 }
 0x13e   :  { %v1031_v40 = vadd.f32 %v1030_v60, %v4850_v46  ;;  %v1119_v0 = vpop.f32.mrf.mxu3  ;;  %v700_v6 = vmul.f32 1.6732632, %v3234_v51 }
 0x13f   :  { %v288_v53 = vpop.f32.mrf.mxu0  ;;  %v763_v4 = vsel %vm443_vm6, %v4824_v9, %v699_v58 }
 0x140   :  { %v4854_v54 = vadd.f32 %v1119_v0, %v1031_v40  ;;  %v4857_v55 = vadd.f32 %v288_v53, %v4563_v7  ;;  %v377_v59 = vpop.f32.mrf.mxu1  ;;  %v764_v28 = vsel %vm444_vm7, %v4827_v15, %v700_v6 }
 0x141   :  { %v4860_v62 = vadd.f32 %v377_v59, %v4565_v8  ;;  %v3761_v59 = vld [vmem:[#allocation5 + $0x54] sm:$0xf] }
 0x142   :  { %v3882_v63 = vpop.eup %3881  ;;  %v1441_v49 = vmul.f32 1.442695, %v4854_v54  ;;  %v551_v2 = vmul.f32 1.442695, %v4857_v55  ;;  %1217 = vmatmul.bf16.gmra.mxu0 %v4669_v16  ;;  %vm1377_vm10 = vcmp.gt.f32.partialorder %v4854_v54, 0.0  ;;  %vm447_vm11 = vcmp.gt.f32.partialorder %v4857_v55, 0.0 }
 0x143   :  { %v3884_v61 = vpop.eup %3883  ;;  %v553_v5 = vmul.f32 1.442695, %v4860_v62  ;;  %1306 = vmatmul.bf16.gmra.mxu1 %v4673_v22  ;;  %v3235_v50 = vadd.f32 -1.0, %v3882_v63  ;;  %v3535_v22 = vld [vmem:[#allocation5 + $0xa0] sm:$0xf]  ;;  %vm448_vm12 = vcmp.gt.f32.partialorder %v4860_v62, 0.0 }
 0x144   :  { %3885 = vpow2.f32 %v1441_v49  ;;  %v3236_v11 = vadd.f32 -1.0, %v3884_v61  ;;  %v3536_v30 = vor.u32 %v3772_v25, %v3535_v22  ;;  %v3497_v63 = vld [vmem:[#allocation5 + $0x58] sm:$0xf0] }
 0x145   :  { %3887 = vpow2.f32 %v551_v2  ;;  %v1032_v12 = vpop.f32.mrf.mxu2  ;;  %v701_v13 = vmul.f32 1.6732632, %v3235_v50  ;;  %v3500_v61 = vor.u32 %v3761_v59, %v3497_v63  ;;  %v3561_v50 = vld [vmem:[#allocation5 + $0xd8] sm:$0xf0] }
 0x146   :  { %3889 = vpow2.f32 %v553_v5  ;;  %v1033_v16 = vadd.f32 %v1032_v12, %v4850_v46  ;;  %v1121_v18 = vpop.f32.mrf.mxu3  ;;  %v702_v23 = vmul.f32 1.6732632, %v3236_v11  ;;  %2085 = vmatpush.bf16.msrb.mxu3 %v3536_v30  ;;  %v3777_v5 = vld [vmem:[#allocation5 + $0xd4] sm:$0xf] }
 0x147   :  { %v290_v26 = vpop.f32.mrf.mxu0  ;;  %v765_v27 = vsel %vm445_vm8, %v286_v33, %v701_v13  ;;  %v3564_v12 = vor.u32 %v3777_v5, %v3561_v50  ;;  %2171 = vmatpush.bf16.msra.mxu0 %v3500_v61 }
 0x148   :  { %v4877_v31 = vadd.f32 %v1121_v18, %v1033_v16  ;;  %v4880_v37 = vadd.f32 %v290_v26, %v4563_v7  ;;  %v379_v32 = vpop.f32.mrf.mxu1  ;;  %v4882_v34 = vpack.c.bf16 %v765_v27, %v763_v4  ;;  %v766_v36 = vsel %vm446_vm9, %v375_v45, %v702_v23 }
 0x149   :  { %v4886_v9 = vadd.f32 %v379_v32, %v4565_v8  ;;  %v4888_v33 = vpack.c.bf16 %v766_v36, %v764_v28  ;;  %2260 = vmatpush.bf16.msra.mxu1 %v3564_v12 }
 0x14a   :  { %v3886_v39 = vpop.eup %3885  ;;  %v1445_v15 = vmul.f32 1.442695, %v4877_v31  ;;  %v555_v42 = vmul.f32 1.442695, %v4880_v37  ;;  %1074 = vmatmul.bf16.gmra.mxu2 %v4882_v34  ;;  %vm1379_vm13 = vcmp.gt.f32.partialorder %v4877_v31, 0.0  ;;  %vm449_vm0 = vcmp.gt.f32.partialorder %v4880_v37, 0.0 }
 0x14b   :  { %v3888_v47 = vpop.eup %3887  ;;  %v557_v48 = vmul.f32 1.442695, %v4886_v9  ;;  %1163 = vmatmul.bf16.gmra.mxu3 %v4888_v33  ;;  %v3389_v38 = vadd.f32 -1.0, %v3886_v39  ;;  %vm450_vm14 = vcmp.gt.f32.partialorder %v4886_v9, 0.0 }
 0x14c   :  { %v3890_v45 = vpop.eup %3889  ;;  %3891 = vpow2.f32 %v1445_v15  ;;  %v3237_v24 = vadd.f32 -1.0, %v3888_v47 }
 0x14d   :  { %3893 = vpow2.f32 %v555_v42  ;;  %v1035_v60 = vpop.f32.mrf.mxu2  ;;  %v3238_v51 = vadd.f32 -1.0, %v3890_v45  ;;  %v1633_v6 = vmul.f32 1.6732632, %v3389_v38 }
 0x14e   :  { %3895 = vpow2.f32 %v557_v48  ;;  %v1036_v40 = vadd.f32 %v1035_v60, %v4850_v46  ;;  %v1124_v0 = vpop.f32.mrf.mxu3  ;;  %v703_v3 = vmul.f32 1.6732632, %v3237_v24 }
 0x14f   :  { %v293_v53 = vpop.f32.mrf.mxu0  ;;  %v704_v19 = vmul.f32 1.6732632, %v3238_v51 }
 0x150   :  { %v4896_v49 = vadd.f32 %v1124_v0, %v1036_v40  ;;  %v4899_v2 = vadd.f32 %v293_v53, %v4563_v7  ;;  %v382_v58 = vpop.f32.mrf.mxu1  ;;  %v767_v36 = vsel %vm447_vm11, %v4857_v55, %v703_v3 }
 0x151   :  { %v4902_v11 = vadd.f32 %v382_v58, %v4565_v8 }
 0x152   :  { %v3892_v13 = vpop.eup %3891  ;;  %v559_v17 = vmul.f32 1.442695, %v4899_v2  ;;  %1222 = vmatmul.bf16.gmra.mxu0 %v4697_v57  ;;  %v1449_v23 = vmul.f32 1.442695, %v4896_v49  ;;  %v1697_v57 = vsel %vm1377_vm10, %v4854_v54, %v1633_v6  ;;  %v768_v54 = vsel %vm448_vm12, %v4860_v62, %v704_v19 }
 0x153   :  { %v3894_v16 = vpop.eup %3893  ;;  %v3391_v18 = vadd.f32 -1.0, %v3892_v13  ;;  %1311 = vmatmul.bf16.gmra.mxu1 %v4701_v1  ;;  %v561_v1 = vmul.f32 1.442695, %v4902_v11  ;;  %vm451_vm15 = vcmp.gt.f32.partialorder %v4899_v2, 0.0  ;;  %vm452_vm1 = vcmp.gt.f32.partialorder %v4902_v11, 0.0 }
 0x154   :  { %v3896_v22 = vpop.eup %3895  ;;  %v3239_v25 = vadd.f32 -1.0, %v3894_v16  ;;  %3897 = vpow2.f32 %v559_v17  ;;  %vm1381_vm5 = vcmp.gt.f32.partialorder %v4896_v49, 0.0 }
 0x155   :  { %v1635_v26 = vmul.f32 1.6732632, %v3391_v18  ;;  %v1037_v4 = vpop.f32.mrf.mxu2  ;;  %v3240_v27 = vadd.f32 -1.0, %v3896_v22  ;;  %3899 = vpow2.f32 %v1449_v23 }
 0x156   :  { %v1038_v28 = vadd.f32 %v1037_v4, %v4850_v46  ;;  %v1126_v30 = vpop.f32.mrf.mxu3  ;;  %v705_v32 = vmul.f32 1.6732632, %v3239_v25  ;;  %3901 = vpow2.f32 %v561_v1 }
 0x157   :  { %v1699_v39 = vsel %vm1379_vm13, %v4877_v31, %v1635_v26  ;;  %v295_v15 = vpop.f32.mrf.mxu0  ;;  %v706_v42 = vmul.f32 1.6732632, %v3240_v27 }
 0x158   :  { %v4926_v47 = vpack.c.bf16 %v1699_v39, %v1697_v57  ;;  %v4928_v48 = vadd.f32 %v1126_v30, %v1038_v28  ;;  %v4931_v45 = vadd.f32 %v295_v15, %v4563_v7  ;;  %v384_v38 = vpop.f32.mrf.mxu1  ;;  %v769_v55 = vsel %vm449_vm0, %v4880_v37, %v705_v32 }
 0x159   :  { %v4937_v31 = vadd.f32 %v384_v38, %v4565_v8  ;;  %v4939_v60 = vpack.c.bf16 %v769_v55, %v767_v36  ;;  %v770_v62 = vsel %vm450_vm14, %v4886_v9, %v706_v42  ;;  %v3754_v38 = vld [vmem:[#allocation5 + $0x14] sm:$0xf0] }
 0x15a   :  { %v1453_v24 = vmul.f32 1.442695, %v4928_v48  ;;  %v563_v40 = vmul.f32 1.442695, %v4931_v45  ;;  %v4946_v0 = vpack.c.bf16 %v770_v62, %v768_v54  ;;  %v3898_v37 = vpop.eup %3897  ;;  %vm1383_vm2 = vcmp.gt.f32.partialorder %v4928_v48, 0.0 }
 0x15b   :  { %v565_v51 = vmul.f32 1.442695, %v4937_v31  ;;  %1079 = vmatmul.bf16.gmra.mxu2 %v4939_v60  ;;  %v3900_v53 = vpop.eup %3899  ;;  %v3241_v61 = vadd.f32 -1.0, %v3898_v37  ;;  %vm453_vm3 = vcmp.gt.f32.partialorder %v4931_v45, 0.0  ;;  %vm454_vm4 = vcmp.gt.f32.partialorder %v4937_v31, 0.0 }
 0x15c   :  { %3903 = vpow2.f32 %v1453_v24  ;;  %1168 = vmatmul.bf16.gmra.mxu3 %v4946_v0  ;;  %v3902_v58 = vpop.eup %3901  ;;  %v3393_v13 = vadd.f32 -1.0, %v3900_v53  ;;  %v3463_v54 = vld [vmem:[#allocation5 + $0x10] sm:$0xf] }
 0x15d   :  { %3905 = vpow2.f32 %v563_v40  ;;  %v1040_v59 = vpop.f32.mrf.mxu2  ;;  %v3242_v16 = vadd.f32 -1.0, %v3902_v58  ;;  %v707_v57 = vmul.f32 1.6732632, %v3241_v61  ;;  %v3464_v37 = vor.u32 %v3754_v38, %v3463_v54  ;;  %v3527_v53 = vld [vmem:[#allocation5 + $0x90] sm:$0xf] }
 0x15e   :  { %3907 = vpow2.f32 %v565_v51  ;;  %v1041_v9 = vadd.f32 %v1040_v59, %v4850_v46  ;;  %v1129_v63 = vpop.f32.mrf.mxu3 }
 0x15f   :  { %v298_v5 = vpop.f32.mrf.mxu0  ;;  %v708_v36 = vmul.f32 1.6732632, %v3242_v16  ;;  %v771_v15 = vsel %vm451_vm15, %v4899_v2, %v707_v57  ;;  %v3770_v2 = vld [vmem:[#allocation5 + $0x94] sm:$0xf0]  ;;  %1997 = vmatpush.bf16.msrb.mxu2 %v3464_v37 }
 0x160   :  { %v4952_v50 = vadd.f32 %v1129_v63, %v1041_v9  ;;  %v4955_v6 = vadd.f32 %v298_v5, %v4563_v7  ;;  %v387_v12 = vpop.f32.mrf.mxu1  ;;  %v3528_v63 = vor.u32 %v3770_v2, %v3527_v53 }
 0x161   :  { %v4958_v17 = vadd.f32 %v387_v12, %v4565_v8 }
 0x162   :  { %v3904_v3 = vpop.eup %3903  ;;  %v1457_v18 = vmul.f32 1.442695, %v4952_v50  ;;  %v567_v23 = vmul.f32 1.442695, %v4955_v6  ;;  %1227 = vmatmul.bf16.gmra.mxu0 %v4737_v43  ;;  %v1637_v43 = vmul.f32 1.6732632, %v3393_v13  ;;  %2086 = vmatpush.bf16.msrb.mxu3 %v3528_v63 }
 0x163   :  { %v3906_v19 = vpop.eup %3905  ;;  %v3395_v22 = vadd.f32 -1.0, %v3904_v3  ;;  %v569_v25 = vmul.f32 1.442695, %v4958_v17  ;;  %1316 = vmatmul.bf16.gmra.mxu1 %v4741_v44  ;;  %vm1385_vm6 = vcmp.gt.f32.partialorder %v4952_v50, 0.0  ;;  %vm455_vm7 = vcmp.gt.f32.partialorder %v4955_v6, 0.0 }
 0x164   :  { %v3908_v26 = vpop.eup %3907  ;;  %v3243_v1 = vadd.f32 -1.0, %v3906_v19  ;;  %3909 = vpow2.f32 %v1457_v18  ;;  %vm456_vm8 = vcmp.gt.f32.partialorder %v4958_v17, 0.0 }
 0x165   :  { %v1639_v4 = vmul.f32 1.6732632, %v3395_v22  ;;  %v1042_v27 = vpop.f32.mrf.mxu2  ;;  %v3244_v28 = vadd.f32 -1.0, %v3908_v26  ;;  %3911 = vpow2.f32 %v567_v23  ;;  %v3759_v26 = vld [vmem:[#allocation5 + $0x44] sm:$0xf] }
 0x166   :  { %v1043_v30 = vadd.f32 %v1042_v27, %v4850_v46  ;;  %v1131_v44 = vpop.f32.mrf.mxu3  ;;  %v709_v32 = vmul.f32 1.6732632, %v3243_v1  ;;  %3913 = vpow2.f32 %v569_v25  ;;  %v3489_v1 = vld [vmem:[#allocation5 + $0x48] sm:$0xf0] }
 0x167   :  { %v300_v39 = vpop.f32.mrf.mxu0  ;;  %v710_v42 = vmul.f32 1.6732632, %v3244_v28  ;;  %v1703_v55 = vsel %vm1383_vm2, %v4928_v48, %v1639_v4  ;;  %v3492_v28 = vor.u32 %v3759_v26, %v3489_v1 }
 0x168   :  { %v4977_v62 = vadd.f32 %v1131_v44, %v1043_v30  ;;  %v4980_v24 = vadd.f32 %v300_v39, %v4563_v7  ;;  %v389_v40 = vpop.f32.mrf.mxu1  ;;  %v773_v51 = vsel %vm453_vm3, %v4931_v45, %v709_v32  ;;  %v772_v45 = vsel %vm452_vm1, %v4902_v11, %v708_v36  ;;  %v3775_v30 = vld [vmem:[#allocation5 + $0xc4] sm:$0xf]  ;;  %v3553_v44 = vld [vmem:[#allocation5 + $0xc8] sm:$0xf0] }
 0x169   :  { %v4986_v59 = vadd.f32 %v389_v40, %v4565_v8  ;;  %v4988_v9 = vpack.c.bf16 %v773_v51, %v771_v15  ;;  %v774_v48 = vsel %vm454_vm4, %v4937_v31, %v710_v42  ;;  %v1701_v31 = vsel %vm1381_vm5, %v4896_v49, %v1637_v43  ;;  %2172 = vmatpush.bf16.msra.mxu0 %v3492_v28 }
 0x16a   :  { %v1461_v58 = vmul.f32 1.442695, %v4977_v62  ;;  %v571_v61 = vmul.f32 1.442695, %v4980_v24  ;;  %v3910_v5 = vpop.eup %3909  ;;  %v5001_v13 = vpack.c.bf16 %v774_v48, %v772_v45  ;;  %v5004_v16 = vpack.c.bf16 %v1703_v55, %v1701_v31 }
 0x16b   :  { %v573_v12 = vmul.f32 1.442695, %v4986_v59  ;;  %1084 = vmatmul.bf16.gmra.mxu2 %v4988_v9  ;;  %v3912_v3 = vpop.eup %3911  ;;  %v3397_v23 = vadd.f32 -1.0, %v3910_v5  ;;  %v3556_v36 = vor.u32 %v3775_v30, %v3553_v44  ;;  %vm1387_vm9 = vcmp.gt.f32.partialorder %v4977_v62, 0.0 }
 0x16c   :  { %3915 = vpow2.f32 %v1461_v58  ;;  %v3914_v18 = vpop.eup %3913  ;;  %1173 = vmatmul.bf16.gmra.mxu3 %v5001_v13  ;;  %v3245_v25 = vadd.f32 -1.0, %v3912_v3  ;;  %vm457_vm10 = vcmp.gt.f32.partialorder %v4980_v24, 0.0  ;;  %vm458_vm11 = vcmp.gt.f32.partialorder %v4986_v59, 0.0 }
 0x16d   :  { %3917 = vpow2.f32 %v571_v61  ;;  %v1045_v11 = vpop.f32.mrf.mxu2  ;;  %v3246_v4 = vadd.f32 -1.0, %v3914_v18  ;;  %v1641_v15 = vmul.f32 1.6732632, %v3397_v23  ;;  %2261 = vmatpush.bf16.msra.mxu1 %v3556_v36 }
 0x16e   :  { %3919 = vpow2.f32 %v573_v12  ;;  %v1046_v19 = vadd.f32 %v1045_v11, %v4850_v46  ;;  %v1134_v22 = vpop.f32.mrf.mxu3  ;;  %v711_v38 = vmul.f32 1.6732632, %v3245_v25 }
 0x16f   :  { %v303_v57 = vpop.f32.mrf.mxu0  ;;  %v712_v37 = vmul.f32 1.6732632, %v3246_v4  ;;  %v1705_v45 = vsel %vm1385_vm6, %v4952_v50, %v1641_v15 }
 0x170   :  { %v5008_v49 = vadd.f32 %v1134_v22, %v1046_v19  ;;  %v5011_v43 = vadd.f32 %v303_v57, %v4563_v7  ;;  %v392_v27 = vpop.f32.mrf.mxu1  ;;  %v775_v31 = vsel %vm455_vm7, %v4955_v6, %v711_v38 }
 0x171   :  { %v5014_v32 = vadd.f32 %v392_v27, %v4565_v8 }
 0x172   :  { %v3916_v39 = vpop.eup %3915  ;;  %v575_v42 = vmul.f32 1.442695, %v5011_v43  ;;  %1232 = vmatmul.bf16.gmra.mxu0 %v4765_v21  ;;  %v1465_v40 = vmul.f32 1.442695, %v5008_v49  ;;  %vm459_vm12 = vcmp.gt.f32.partialorder %v5011_v43, 0.0  ;;  %vm1389_vm1 = vcmp.gt.f32.partialorder %v5008_v49, 0.0 }
 0x173   :  { %v3918_v54 = vpop.eup %3917  ;;  %v3399_v55 = vadd.f32 -1.0, %v3916_v39  ;;  %1321 = vmatmul.bf16.gmra.mxu1 %v4769_v29  ;;  %v577_v48 = vmul.f32 1.442695, %v5014_v32  ;;  %vm460_vm13 = vcmp.gt.f32.partialorder %v5014_v32, 0.0 }
 0x174   :  { %v3920_v51 = vpop.eup %3919  ;;  %v3247_v53 = vadd.f32 -1.0, %v3918_v54  ;;  %3921 = vpow2.f32 %v575_v42 }
 0x175   :  { %v1643_v2 = vmul.f32 1.6732632, %v3399_v55  ;;  %v3248_v21 = vadd.f32 -1.0, %v3920_v51  ;;  %v1047_v63 = vpop.f32.mrf.mxu2  ;;  %3923 = vpow2.f32 %v1465_v40 }
 0x176   :  { %v713_v58 = vmul.f32 1.6732632, %v3247_v53  ;;  %v1048_v29 = vadd.f32 %v1047_v63, %v4850_v46  ;;  %v1136_v61 = vpop.f32.mrf.mxu3  ;;  %3925 = vpow2.f32 %v577_v48 }
 0x177   :  { %v714_v5 = vmul.f32 1.6732632, %v3248_v21  ;;  %v305_v12 = vpop.f32.mrf.mxu0  ;;  %v1707_v3 = vsel %vm1387_vm9, %v4977_v62, %v1643_v2 }
 0x178   :  { %v5037_v18 = vadd.f32 %v1136_v61, %v1048_v29  ;;  %v5040_v11 = vadd.f32 %v305_v12, %v4563_v7  ;;  %v394_v23 = vpop.f32.mrf.mxu1  ;;  %v777_v50 = vsel %vm457_vm10, %v4980_v24, %v713_v58  ;;  %v5045_v19 = vpack.c.bf16 %v1707_v3, %v1705_v45 }
 0x179   :  { %v5048_v22 = vadd.f32 %v394_v23, %v4565_v8  ;;  %v5050_v6 = vpack.c.bf16 %v777_v50, %v775_v31  ;;  %v778_v62 = vsel %vm458_vm11, %v4986_v59, %v714_v5  ;;  %v776_v24 = vsel %vm456_vm8, %v4958_v17, %v712_v37 }
 0x17a   :  { %v1469_v25 = vmul.f32 1.442695, %v5037_v18  ;;  %v579_v57 = vmul.f32 1.442695, %v5040_v11  ;;  %v5062_v1 = vpack.c.bf16 %v778_v62, %v776_v24  ;;  %v3922_v4 = vpop.eup %3921  ;;  %vm1391_vm0 = vcmp.gt.f32.partialorder %v5037_v18, 0.0 }
 0x17b   :  { %v581_v26 = vmul.f32 1.442695, %v5048_v22  ;;  %1089 = vmatmul.bf16.gmra.mxu2 %v5050_v6  ;;  %v3924_v27 = vpop.eup %3923  ;;  %v3249_v36 = vadd.f32 -1.0, %v3922_v4  ;;  %vm461_vm14 = vcmp.gt.f32.partialorder %v5040_v11, 0.0  ;;  %vm462_vm15 = vcmp.gt.f32.partialorder %v5048_v22, 0.0 }
 0x17c   :  { %3927 = vpow2.f32 %v1469_v25  ;;  %1178 = vmatmul.bf16.gmra.mxu3 %v5062_v1  ;;  %v3926_v44 = vpop.eup %3925  ;;  %v3401_v55 = vadd.f32 -1.0, %v3924_v27  ;;  %v3455_v62 = vld [vmem:[#allocation5] sm:$0xf]  ;;  %v3752_v25 = vld [vmem:[#allocation5 + $0x4] sm:$0xf0] }
 0x17d   :  { %3929 = vpow2.f32 %v579_v57  ;;  %v1050_v59 = vpop.f32.mrf.mxu2  ;;  %v3250_v40 = vadd.f32 -1.0, %v3926_v44  ;;  %v715_v2 = vmul.f32 1.6732632, %v3249_v36 }
 0x17e   :  { %3931 = vpow2.f32 %v581_v26  ;;  %v1051_v28 = vadd.f32 %v1050_v59, %v4850_v46  ;;  %v1139_v30 = vpop.f32.mrf.mxu3  ;;  %v1645_v45 = vmul.f32 1.6732632, %v3401_v55  ;;  %v3456_v59 = vor.u32 %v3752_v25, %v3455_v62 }
 0x17f   :  { %v308_v17 = vpop.f32.mrf.mxu0  ;;  %v716_v5 = vmul.f32 1.6732632, %v3250_v40  ;;  %v779_v50 = vsel %vm459_vm12, %v5011_v43, %v715_v2 }
 0x180   :  { %v5066_v39 = vadd.f32 %v1139_v30, %v1051_v28  ;;  %v5069_v15 = vadd.f32 %v308_v17, %v4563_v7  ;;  %v397_v42 = vpop.f32.mrf.mxu1  ;;  %v3519_v28 = vld [vmem:[#allocation5 + $0x80] sm:$0xf]  ;;  %v3768_v30 = vld [vmem:[#allocation5 + $0x84] sm:$0xf0]  ;;  %1998 = vmatpush.bf16.msrb.mxu2 %v3456_v59  ;;  %v3545_v59 = vld [vmem:[#allocation5 + $0xb8] sm:$0xf0] }
 0x181   :  { %v5073_v54 = vadd.f32 %v397_v42, %v4565_v8  ;;  %v3520_v36 = vor.u32 %v3768_v30, %v3519_v28 }
 0x182   :  { %v3928_v38 = vpop.eup %3927  ;;  %v1473_v51 = vmul.f32 1.442695, %v5066_v39  ;;  %v583_v37 = vmul.f32 1.442695, %v5069_v15  ;;  %1237 = vmatmul.bf16.gmra.mxu0 %v4793_v10  ;;  %vm1393_vm2 = vcmp.gt.f32.partialorder %v5066_v39, 0.0  ;;  %vm463_vm3 = vcmp.gt.f32.partialorder %v5069_v15, 0.0 }
 0x183   :  { %v3930_v53 = vpop.eup %3929  ;;  %v3403_v21 = vadd.f32 -1.0, %v3928_v38  ;;  %v585_v48 = vmul.f32 1.442695, %v5073_v54  ;;  %1326 = vmatmul.bf16.gmra.mxu1 %v4797_v14  ;;  %v780_v38 = vsel %vm460_vm13, %v5014_v32, %v716_v5  ;;  %2087 = vmatpush.bf16.msrb.mxu3 %v3520_v36  ;;  %vm464_vm7 = vcmp.gt.f32.partialorder %v5073_v54, 0.0 }
 0x184   :  { %v3932_v63 = vpop.eup %3931  ;;  %v3251_v58 = vadd.f32 -1.0, %v3930_v53  ;;  %3933 = vpow2.f32 %v1473_v51 }
 0x185   :  { %v1647_v29 = vmul.f32 1.6732632, %v3403_v21  ;;  %v3252_v10 = vadd.f32 -1.0, %v3932_v63  ;;  %3935 = vpow2.f32 %v583_v37  ;;  %v1052_v61 = vpop.f32.mrf.mxu2 }
 0x186   :  { %v717_v12 = vmul.f32 1.6732632, %v3251_v58  ;;  %v1053_v31 = vadd.f32 %v1052_v61, %v4850_v46  ;;  %v1141_v3 = vpop.f32.mrf.mxu3  ;;  %3937 = vpow2.f32 %v585_v48 }
 0x187   :  { %v718_v14 = vmul.f32 1.6732632, %v3252_v10  ;;  %v310_v23 = vpop.f32.mrf.mxu0  ;;  %v1711_v57 = vsel %vm1391_vm0, %v5037_v18, %v1647_v29 }
 0x188   :  { %v5091_v24 = vadd.f32 %v1141_v3, %v1053_v31  ;;  %v5094_v26 = vadd.f32 %v310_v23, %v4563_v7  ;;  %v399_v4 = vpop.f32.mrf.mxu1  ;;  %v781_v27 = vsel %vm461_vm14, %v5040_v11, %v717_v12  ;;  %v3757_v12 = vld [vmem:[#allocation5 + $0x34] sm:$0xf]  ;;  %v3481_v31 = vld [vmem:[#allocation5 + $0x38] sm:$0xf0] }
 0x189   :  { %v5100_v43 = vadd.f32 %v399_v4, %v4565_v8  ;;  %v5102_v44 = vpack.c.bf16 %v781_v27, %v779_v50  ;;  %v782_v18 = vsel %vm462_vm15, %v5048_v22, %v718_v14  ;;  %v1709_v22 = vsel %vm1389_vm1, %v5008_v49, %v1645_v45  ;;  %v3773_v3 = vld [vmem:[#allocation5 + $0xb4] sm:$0xf] }
 0x18a   :  { %v3934_v17 = vpop.eup %3933  ;;  %v1477_v42 = vmul.f32 1.442695, %v5091_v24  ;;  %v587_v11 = vmul.f32 1.442695, %v5094_v26  ;;  %v5115_v51 = vpack.c.bf16 %v782_v18, %v780_v38  ;;  %v5118_v53 = vpack.c.bf16 %v1711_v57, %v1709_v22 }
 0x18b   :  { %v3936_v55 = vpop.eup %3935  ;;  %v589_v40 = vmul.f32 1.442695, %v5100_v43  ;;  %1094 = vmatmul.bf16.gmra.mxu2 %v5102_v44  ;;  %v3405_v37 = vadd.f32 -1.0, %v3934_v17  ;;  %vm1395_vm4 = vcmp.gt.f32.partialorder %v5091_v24, 0.0  ;;  %v3484_v27 = vor.u32 %v3757_v12, %v3481_v31 }
 0x18c   :  { %3939 = vpow2.f32 %v1477_v42  ;;  %v3938_v2 = vpop.eup %3937  ;;  %1183 = vmatmul.bf16.gmra.mxu3 %v5115_v51  ;;  %v3253_v21 = vadd.f32 -1.0, %v3936_v55  ;;  %vm465_vm5 = vcmp.gt.f32.partialorder %v5094_v26, 0.0  ;;  %vm466_vm6 = vcmp.gt.f32.partialorder %v5100_v43, 0.0 }
 0x18d   :  { %3941 = vpow2.f32 %v587_v11  ;;  %v1055_v32 = vpop.f32.mrf.mxu2  ;;  %v1649_v49 = vmul.f32 1.6732632, %v3405_v37  ;;  %v3254_v29 = vadd.f32 -1.0, %v3938_v2  ;;  %v3548_v18 = vor.u32 %v3773_v3, %v3545_v59  ;;  %2173 = vmatpush.bf16.msra.mxu0 %v3484_v27 }
 0x18e   :  { %3943 = vpow2.f32 %v589_v40  ;;  %v1056_v48 = vadd.f32 %v1055_v32, %v4850_v46  ;;  %v1144_v63 = vpop.f32.mrf.mxu3  ;;  %v719_v23 = vmul.f32 1.6732632, %v3253_v21  ;;  %v5177_v31 = vperm.slane %v4839_v41, 1 }
 0x18f   :  { %v313_v58 = vpop.f32.mrf.mxu0  ;;  %v720_v36 = vmul.f32 1.6732632, %v3254_v29  ;;  %2262 = vmatpush.bf16.msra.mxu1 %v3548_v18  ;;  %v1713_v55 = vsel %vm1393_vm2, %v5066_v39, %v1649_v49 }
 0x190   :  { %v5124_v10 = vadd.f32 %v1144_v63, %v1056_v48  ;;  %v5127_v61 = vadd.f32 %v313_v58, %v4563_v7  ;;  %v402_v45 = vpop.f32.mrf.mxu1  ;;  %v783_v37 = vsel %vm463_vm3, %v5069_v15, %v719_v23 }
 0x191   :  { %v5130_v5 = vadd.f32 %v402_v45, %v4565_v8  ;;  %v784_v29 = vsel %vm464_vm7, %v5073_v54, %v720_v36 }
 0x192   :  { %v3940_v14 = vpop.eup %3939  ;;  %v1481_v50 = vmul.f32 1.442695, %v5124_v10  ;;  %v591_v62 = vmul.f32 1.442695, %v5127_v61  ;;  %1242 = vmatmul.bf16.gmra.mxu0 %v4815_v52  ;;  %vm1397_vm8 = vcmp.gt.f32.partialorder %v5124_v10, 0.0  ;;  %vm467_vm9 = vcmp.gt.f32.partialorder %v5127_v61, 0.0 }
 0x193   :  { %v3942_v25 = vpop.eup %3941  ;;  %v3407_v57 = vadd.f32 -1.0, %v3940_v14  ;;  %v593_v4 = vmul.f32 1.442695, %v5130_v5  ;;  %1331 = vmatmul.bf16.gmra.mxu1 %v4819_v56  ;;  %vm468_vm10 = vcmp.gt.f32.partialorder %v5130_v5, 0.0 }
 0x194   :  { %v3944_v28 = vpop.eup %3943  ;;  %v3255_v30 = vadd.f32 -1.0, %v3942_v25  ;;  %3945 = vpow2.f32 %v1481_v50 }
 0x195   :  { %v1651_v17 = vmul.f32 1.6732632, %v3407_v57  ;;  %v3256_v52 = vadd.f32 -1.0, %v3944_v28  ;;  %v1057_v42 = vpop.f32.mrf.mxu2  ;;  %3947 = vpow2.f32 %v591_v62 }
 0x196   :  { %v721_v11 = vmul.f32 1.6732632, %v3255_v30  ;;  %v1058_v38 = vadd.f32 %v1057_v42, %v4850_v46  ;;  %v1146_v56 = vpop.f32.mrf.mxu3  ;;  %3949 = vpow2.f32 %v593_v4 }
 0x197   :  { %v722_v40 = vmul.f32 1.6732632, %v3256_v52  ;;  %v315_v22 = vpop.f32.mrf.mxu0  ;;  %v1715_v2 = vsel %vm1395_vm4, %v5091_v24, %v1651_v17 }
 0x198   :  { %v5150_v32 = vadd.f32 %v1146_v56, %v1058_v38  ;;  %v5153_v21 = vadd.f32 %v315_v22, %v4563_v7  ;;  %v404_v48 = vpop.f32.mrf.mxu1  ;;  %v785_v39 = vsel %vm465_vm5, %v5094_v26, %v721_v11  ;;  %v5158_v63 = vpack.c.bf16 %v1715_v2, %v1713_v55 }
 0x199   :  { %v5162_v15 = vadd.f32 %v404_v48, %v4565_v8  ;;  %v5164_v58 = vpack.c.bf16 %v785_v39, %v783_v37  ;;  %v786_v24 = vsel %vm466_vm6, %v5100_v43, %v722_v40 }
 0x19a   :  { %v1485_v7 = vmul.f32 1.442695, %v5150_v32  ;;  %v595_v49 = vmul.f32 1.442695, %v5153_v21  ;;  %v3946_v26 = vpop.eup %3945  ;;  %v5174_v12 = vpack.c.bf16 %v786_v24, %v784_v29  ;;  %vm1399_vm11 = vcmp.gt.f32.partialorder %v5150_v32, 0.0  ;;  %v3790_v24 = vld [vmem:[%s6025_s7 + $0x38] sm:$0xff] }
 0x19b   :  { %v597_v45 = vmul.f32 1.442695, %v5162_v15  ;;  %1099 = vmatmul.bf16.gmra.mxu2 %v5164_v58  ;;  %v3948_v8 = vpop.eup %3947  ;;  %v3409_v14 = vadd.f32 -1.0, %v3946_v26  ;;  %vm469_vm12 = vcmp.gt.f32.partialorder %v5153_v21, 0.0  ;;  %vm470_vm13 = vcmp.gt.f32.partialorder %v5162_v15, 0.0 }
 0x19c   :  { %3951 = vpow2.f32 %v1485_v7  ;;  %v3950_v3 = vpop.eup %3949  ;;  %1188 = vmatmul.bf16.gmra.mxu3 %v5174_v12  ;;  %v3257_v50 = vadd.f32 -1.0, %v3948_v8  ;;  %v3798_v7 = vld [vmem:[%s6025_s7 + $0x78] sm:$0xff]  ;;  %2895 = vmatpush.bf16.msra.mxu2 %v3790_v24 }
 0x19d   :  { %3953 = vpow2.f32 %v595_v49  ;;  %v1060_v43 = vpop.f32.mrf.mxu2  ;;  %v3258_v27 = vadd.f32 -1.0, %v3950_v3  ;;  %v1653_v59 = vmul.f32 1.6732632, %v3409_v14  ;;  %2984 = vmatpush.bf16.msra.mxu3 %v3798_v7 }
 0x19e   :  { %3955 = vpow2.f32 %v597_v45  ;;  %v1061_v54 = vadd.f32 %v1060_v43, %v4850_v46  ;;  %v1149_v23 = vpop.f32.mrf.mxu3  ;;  %v723_v36 = vmul.f32 1.6732632, %v3257_v50 }
 0x19f   :  { %v1208_v62 = vpop.f32.mrf.mxu0  ;;  %v724_v38 = vmul.f32 1.6732632, %v3258_v27  ;;  %v3755_v27 = vld [vmem:[#allocation5 + $0x24] sm:$0xf] }
 0x1a0   :  { %v5181_v25 = vadd.f32 %v1149_v23, %v1061_v54  ;;  %v1209_v57 = vadd.f32 %v1208_v62, %v5177_v31  ;;  %v1297_v4 = vpop.f32.mrf.mxu1  ;;  %v787_v39 = vsel %vm467_vm9, %v5127_v61, %v723_v36 }
 0x1a1   :  { %v788_v3 = vsel %vm468_vm10, %v5130_v5, %v724_v38 }
 0x1a2   :  { %v3952_v41 = vpop.eup %3951  ;;  %v1489_v28 = vmul.f32 1.442695, %v5181_v25  ;;  %v5186_v30 = vadd.f32 %v1297_v4, %v1209_v57  ;;  %1247 = vmatmul.bf16.gmra.mxu0 %v4842_v35  ;;  %vm1401_vm0 = vcmp.gt.f32.partialorder %v5181_v25, 0.0 }
 0x1a3   :  { %v3954_v18 = vpop.eup %3953  ;;  %v3411_v17 = vadd.f32 -1.0, %v3952_v41  ;;  %1336 = vmatmul.bf16.gmra.mxu1 %v4846_v20  ;;  %v1717_v20 = vsel %vm1397_vm8, %v5124_v10, %v1653_v59  ;;  %v3473_v41 = vld [vmem:[#allocation5 + $0x28] sm:$0xf0] }
 0x1a4   :  { %v3956_v52 = vpop.eup %3955  ;;  %v3259_v42 = vadd.f32 -1.0, %v3954_v18  ;;  %v1443_v11 = vmul.f32 1.442695, %v5186_v30  ;;  %3957 = vpow2.f32 %v1489_v28  ;;  %v3476_v36 = vor.u32 %v3755_v27, %v3473_v41 }
 0x1a5   :  { %v1655_v56 = vmul.f32 1.6732632, %v3411_v17  ;;  %v3260_v35 = vadd.f32 -1.0, %v3956_v52  ;;  %v1062_v55 = vpop.f32.mrf.mxu2  ;;  %v3771_v17 = vld [vmem:[#allocation5 + $0xa4] sm:$0xf]  ;;  %vm1378_vm14 = vcmp.gt.f32.partialorder %v5186_v30, 0.0 }
 0x1a6   :  { %v725_v40 = vmul.f32 1.6732632, %v3259_v42  ;;  %v1063_v22 = vadd.f32 %v1062_v55, %v4850_v46  ;;  %v1151_v37 = vpop.f32.mrf.mxu3  ;;  %3959 = vpow2.f32 %v1443_v11  ;;  %v3537_v52 = vld [vmem:[#allocation5 + $0xa8] sm:$0xf0]  ;;  %2174 = vmatpush.bf16.msra.mxu0 %v3476_v36 }
 0x1a7   :  { %v726_v2 = vmul.f32 1.6732632, %v3260_v35  ;;  %v1210_v48 = vpop.f32.mrf.mxu0  ;;  %v1719_v49 = vsel %vm1399_vm11, %v5150_v32, %v1655_v56  ;;  %v3540_v11 = vor.u32 %v3771_v17, %v3537_v52 }
 0x1a8   :  { %v1152_v10 = vadd.f32 %v1151_v37, %v1063_v22  ;;  %v1211_v29 = vadd.f32 %v1210_v48, %v5177_v31  ;;  %v1299_v26 = vpop.f32.mrf.mxu1  ;;  %v789_v61 = vsel %vm469_vm12, %v5153_v21, %v725_v40  ;;  %v5216_v45 = vpack.c.bf16 %v1719_v49, %v1717_v20 }
 0x1a9   :  { %v5218_v8 = vpack.c.bf16 %v789_v61, %v787_v39  ;;  %v790_v32 = vsel %vm470_vm13, %v5162_v15, %v726_v2  ;;  %2263 = vmatpush.bf16.msra.mxu1 %v3540_v11 }
 0x1aa   :  { %v1493_v43 = vmul.f32 1.442695, %v1152_v10  ;;  %v1300_v14 = vadd.f32 %v1299_v26, %v1211_v29  ;;  %v5226_v54 = vpack.c.bf16 %v790_v32, %v788_v3  ;;  %v3958_v21 = vpop.eup %3957  ;;  %vm1403_vm15 = vcmp.gt.f32.partialorder %v1152_v10, 0.0 }
 0x1ab   :  { %1104 = vmatmul.bf16.gmra.mxu2 %v5218_v8  ;;  %v3413_v15 = vadd.f32 -1.0, %v3958_v21 }
 0x1ac   :  { %3961 = vpow2.f32 %v1493_v43  ;;  %v1447_v23 = vmul.f32 1.442695, %v1300_v14  ;;  %v3960_v50 = vpop.eup %3959  ;;  %1193 = vmatmul.bf16.gmra.mxu3 %v5226_v54  ;;  %vm1380_vm1 = vcmp.gt.f32.partialorder %v1300_v14, 0.0 }
 0x1ad   :  { %v1065_v62 = vpop.f32.mrf.mxu2  ;;  %v3390_v42 = vadd.f32 -1.0, %v3960_v50  ;;  %v1657_v55 = vmul.f32 1.6732632, %v3413_v15 }
 0x1ae   :  { %3963 = vpow2.f32 %v1447_v23  ;;  %v1066_v5 = vadd.f32 %v1065_v62, %v4850_v46  ;;  %v1154_v57 = vpop.f32.mrf.mxu3 }
 0x1af   :  { %v1213_v4 = vpop.f32.mrf.mxu0  ;;  %v1634_v20 = vmul.f32 1.6732632, %v3390_v42  ;;  %v1721_v49 = vsel %vm1401_vm0, %v5181_v25, %v1657_v55 }
 0x1b0   :  { %v5231_v59 = vadd.f32 %v1154_v57, %v1066_v5  ;;  %v1214_v28 = vadd.f32 %v1213_v4, %v5177_v31  ;;  %v1302_v18 = vpop.f32.mrf.mxu1 }
 0x1b1   :  { %v1698_v43 = vsel %vm1378_vm14, %v5186_v30, %v1634_v20 }
 0x1b2   :  { %v3962_v38 = vpop.eup %3961  ;;  %v1497_v56 = vmul.f32 1.442695, %v5231_v59  ;;  %v5235_v35 = vadd.f32 %v1302_v18, %v1214_v28  ;;  %1252 = vmatmul.bf16.gmra.mxu0 %v4882_v34  ;;  %vm1405_vm2 = vcmp.gt.f32.partialorder %v5231_v59, 0.0 }
 0x1b3   :  { %v3415_v40 = vadd.f32 -1.0, %v3962_v38  ;;  %1341 = vmatmul.bf16.gmra.mxu1 %v4888_v33 }
 0x1b4   :  { %v3964_v22 = vpop.eup %3963  ;;  %v1451_v37 = vmul.f32 1.442695, %v5235_v35  ;;  %3965 = vpow2.f32 %v1497_v56  ;;  %vm1382_vm3 = vcmp.gt.f32.partialorder %v5235_v35, 0.0 }
 0x1b5   :  { %v1659_v2 = vmul.f32 1.6732632, %v3415_v40  ;;  %v3392_v48 = vadd.f32 -1.0, %v3964_v22  ;;  %v1067_v39 = vpop.f32.mrf.mxu2 }
 0x1b6   :  { %v1068_v34 = vadd.f32 %v1067_v39, %v4850_v46  ;;  %v1156_v24 = vpop.f32.mrf.mxu3  ;;  %3967 = vpow2.f32 %v1451_v37  ;;  %v3797_v39 = vld [vmem:[%s6025_s7 + $0x70] sm:$0xff] }
 0x1b7   :  { %v1636_v33 = vmul.f32 1.6732632, %v3392_v48  ;;  %v1215_v7 = vpop.f32.mrf.mxu0  ;;  %v1723_v29 = vsel %vm1403_vm15, %v1152_v10, %v1659_v2  ;;  %2985 = vmatpush.bf16.msra.mxu3 %v3797_v39 }
 0x1b8   :  { %v1157_v26 = vadd.f32 %v1156_v24, %v1068_v34  ;;  %v1216_v61 = vadd.f32 %v1215_v7, %v5177_v31  ;;  %v1304_v3 = vpop.f32.mrf.mxu1  ;;  %v5245_v32 = vpack.c.bf16 %v1723_v29, %v1721_v49 }
 0x1b9   :  { %v1700_v21 = vsel %vm1380_vm1, %v1300_v14, %v1636_v33 }
 0x1ba   :  { %v5248_v23 = vpack.c.bf16 %v1700_v21, %v1698_v43  ;;  %v1501_v50 = vmul.f32 1.442695, %v1157_v26  ;;  %v1305_v62 = vadd.f32 %v1304_v3, %v1216_v61  ;;  %v3966_v5 = vpop.eup %3965  ;;  %vm1407_vm4 = vcmp.gt.f32.partialorder %v1157_v26, 0.0 }
 0x1bb   :  { %1999 = vmatmul.bf16.vlgmr.msrb.gmra.mxu2 %v4926_v47  ;;  %v3417_v27 = vadd.f32 -1.0, %v3966_v5 }
 0x1bc   :  { %3969 = vpow2.f32 %v1501_v50  ;;  %v1455_v25 = vmul.f32 1.442695, %v1305_v62  ;;  %2088 = vmatmul.bf16.vlgmr.msrb.gmra.mxu3 %v5248_v23  ;;  %v3968_v57 = vpop.eup %3967  ;;  %vm1384_vm5 = vcmp.gt.f32.partialorder %v1305_v62, 0.0 }
 0x1bd   :  { %v1070_v10 = vpop.f32.mrf.mxu2  ;;  %v3394_v18 = vadd.f32 -1.0, %v3968_v57  ;;  %v1661_v42 = vmul.f32 1.6732632, %v3417_v27 }
 0x1be   :  { %3971 = vpow2.f32 %v1455_v25  ;;  %v1071_v15 = vadd.f32 %v1070_v10, %v4850_v46  ;;  %v1159_v4 = vpop.f32.mrf.mxu3 }
 0x1bf   :  { %v1218_v30 = vpop.f32.mrf.mxu0  ;;  %v1638_v55 = vmul.f32 1.6732632, %v3394_v18  ;;  %v1725_v34 = vsel %vm1405_vm2, %v5231_v59, %v1661_v42  ;;  %v3769_v18 = vld [vmem:[#allocation5 + $0x94] sm:$0xf] }
 0x1c0   :  { %v5253_v14 = vadd.f32 %v1159_v4, %v1071_v15  ;;  %v1219_v41 = vadd.f32 %v1218_v30, %v5177_v31  ;;  %v1307_v28 = vpop.f32.mrf.mxu1  ;;  %v3753_v15 = vld [vmem:[#allocation5 + $0x14] sm:$0xf]  ;;  %v3465_v4 = vld [vmem:[#allocation5 + $0x18] sm:$0xf0] }
 0x1c1   :  { %v1702_v61 = vsel %vm1382_vm3, %v5235_v35, %v1638_v55 }
 0x1c2   :  { %v3970_v36 = vpop.eup %3969  ;;  %v1505_v17 = vmul.f32 1.442695, %v5253_v14  ;;  %v5257_v52 = vadd.f32 %v1307_v28, %v1219_v41  ;;  %1257 = vmatmul.bf16.gmra.mxu0 %v4939_v60  ;;  %v3468_v28 = vor.u32 %v3753_v15, %v3465_v4  ;;  %vm1409_vm6 = vcmp.gt.f32.partialorder %v5253_v14, 0.0 }
 0x1c3   :  { %v3419_v11 = vadd.f32 -1.0, %v3970_v36  ;;  %1346 = vmatmul.bf16.gmra.mxu1 %v4946_v0  ;;  %v3789_v0 = vld [vmem:[%s6025_s7 + $0x30] sm:$0xff]  ;;  %v3529_v36 = vld [vmem:[#allocation5 + $0x98] sm:$0xf0] }
 0x1c4   :  { %v3972_v38 = vpop.eup %3971  ;;  %v1459_v56 = vmul.f32 1.442695, %v5257_v52  ;;  %3973 = vpow2.f32 %v1505_v17  ;;  %2896 = vmatpush.bf16.msra.mxu2 %v3789_v0  ;;  %v3532_v42 = vor.u32 %v3769_v18, %v3529_v36  ;;  %2175 = vmatpush.bf16.msra.mxu0 %v3468_v28  ;;  %vm1386_vm7 = vcmp.gt.f32.partialorder %v5257_v52, 0.0 }
 0x1c5   :  { %v1663_v40 = vmul.f32 1.6732632, %v3419_v11  ;;  %v3396_v22 = vadd.f32 -1.0, %v3972_v38  ;;  %v1072_v37 = vpop.f32.mrf.mxu2 }
 0x1c6   :  { %v1073_v20 = vadd.f32 %v1072_v37, %v4850_v46  ;;  %v1161_v60 = vpop.f32.mrf.mxu3  ;;  %3975 = vpow2.f32 %v1459_v56  ;;  %2264 = vmatpush.bf16.msra.mxu1 %v3532_v42 }
 0x1c7   :  { %v1640_v2 = vmul.f32 1.6732632, %v3396_v22  ;;  %v1220_v48 = vpop.f32.mrf.mxu0  ;;  %v1727_v24 = vsel %vm1407_vm4, %v1157_v26, %v1663_v40 }
 0x1c8   :  { %v1162_v33 = vadd.f32 %v1161_v60, %v1073_v20  ;;  %v1221_v7 = vadd.f32 %v1220_v48, %v5177_v31  ;;  %v1309_v49 = vpop.f32.mrf.mxu1  ;;  %v5273_v29 = vpack.c.bf16 %v1727_v24, %v1725_v34 }
 0x1c9   :  { %v1704_v3 = vsel %vm1384_vm5, %v1305_v62, %v1640_v2 }
 0x1ca   :  { %v1509_v43 = vmul.f32 1.442695, %v1162_v33  ;;  %v1310_v21 = vadd.f32 %v1309_v49, %v1221_v7  ;;  %v5278_v50 = vpack.c.bf16 %v1704_v3, %v1702_v61  ;;  %v3974_v59 = vpop.eup %3973  ;;  %vm1411_vm8 = vcmp.gt.f32.partialorder %v1162_v33, 0.0 }
 0x1cb   :  { %2004 = vmatmul.bf16.gmra.mxu2 %v5004_v16  ;;  %v3421_v62 = vadd.f32 -1.0, %v3974_v59 }
 0x1cc   :  { %3977 = vpow2.f32 %v1509_v43  ;;  %v1463_v26 = vmul.f32 1.442695, %v1310_v21  ;;  %2093 = vmatmul.bf16.gmra.mxu3 %v5278_v50  ;;  %v3976_v25 = vpop.eup %3975  ;;  %vm1388_vm9 = vcmp.gt.f32.partialorder %v1310_v21, 0.0 }
 0x1cd   :  { %v1075_v5 = vpop.f32.mrf.mxu2  ;;  %v3398_v17 = vadd.f32 -1.0, %v3976_v25  ;;  %v1665_v55 = vmul.f32 1.6732632, %v3421_v62 }
 0x1ce   :  { %3979 = vpow2.f32 %v1463_v26  ;;  %v1076_v10 = vadd.f32 %v1075_v5, %v4850_v46  ;;  %v1164_v35 = vpop.f32.mrf.mxu3 }
 0x1cf   :  { %v1223_v57 = vpop.f32.mrf.mxu0  ;;  %v1642_v20 = vmul.f32 1.6732632, %v3398_v17  ;;  %v1729_v34 = vsel %vm1409_vm6, %v5253_v14, %v1665_v55 }
 0x1d0   :  { %v5283_v27 = vadd.f32 %v1164_v35, %v1076_v10  ;;  %v1224_v30 = vadd.f32 %v1223_v57, %v5177_v31  ;;  %v1312_v41 = vpop.f32.mrf.mxu1 }
 0x1d1   :  { %v1706_v43 = vsel %vm1386_vm7, %v5257_v52, %v1642_v20 }
 0x1d2   :  { %v3978_v11 = vpop.eup %3977  ;;  %v1513_v38 = vmul.f32 1.442695, %v5283_v27  ;;  %v5287_v56 = vadd.f32 %v1312_v41, %v1224_v30  ;;  %1262 = vmatmul.bf16.gmra.mxu0 %v4988_v9  ;;  %vm1413_vm10 = vcmp.gt.f32.partialorder %v5283_v27, 0.0 }
 0x1d3   :  { %v3423_v40 = vadd.f32 -1.0, %v3978_v11  ;;  %1351 = vmatmul.bf16.gmra.mxu1 %v5001_v13 }
 0x1d4   :  { %v3980_v22 = vpop.eup %3979  ;;  %v1467_v37 = vmul.f32 1.442695, %v5287_v56  ;;  %3981 = vpow2.f32 %v1513_v38  ;;  %vm1390_vm11 = vcmp.gt.f32.partialorder %v5287_v56, 0.0 }
 0x1d5   :  { %v1667_v60 = vmul.f32 1.6732632, %v3423_v40  ;;  %v3400_v2 = vadd.f32 -1.0, %v3980_v22  ;;  %v1077_v48 = vpop.f32.mrf.mxu2 }
 0x1d6   :  { %v1078_v9 = vadd.f32 %v1077_v48, %v4850_v46  ;;  %v1166_v0 = vpop.f32.mrf.mxu3  ;;  %3983 = vpow2.f32 %v1467_v37  ;;  %v3788_v48 = vld [vmem:[%s6025_s7 + $0x28] sm:$0xff] }
 0x1d7   :  { %v1644_v13 = vmul.f32 1.6732632, %v3400_v2  ;;  %v1225_v39 = vpop.f32.mrf.mxu0  ;;  %v1731_v24 = vsel %vm1411_vm8, %v1162_v33, %v1667_v60  ;;  %2897 = vmatpush.bf16.msra.mxu2 %v3788_v48 }
 0x1d8   :  { %v1167_v7 = vadd.f32 %v1166_v0, %v1078_v9  ;;  %v1226_v49 = vadd.f32 %v1225_v39, %v5177_v31  ;;  %v1314_v61 = vpop.f32.mrf.mxu1  ;;  %v5297_v3 = vpack.c.bf16 %v1731_v24, %v1729_v34  ;;  %v3796_v9 = vld [vmem:[%s6025_s7 + $0x68] sm:$0xff] }
 0x1d9   :  { %v1708_v59 = vsel %vm1388_vm9, %v1310_v21, %v1644_v13  ;;  %2986 = vmatpush.bf16.msra.mxu3 %v3796_v9 }
 0x1da   :  { %v1517_v26 = vmul.f32 1.442695, %v1167_v7  ;;  %v1315_v5 = vadd.f32 %v1314_v61, %v1226_v49  ;;  %v5300_v25 = vpack.c.bf16 %v1708_v59, %v1706_v43  ;;  %v3982_v10 = vpop.eup %3981  ;;  %vm1415_vm12 = vcmp.gt.f32.partialorder %v1167_v7, 0.0 }
 0x1db   :  { %2009 = vmatmul.bf16.gmra.mxu2 %v5045_v19  ;;  %v3425_v35 = vadd.f32 -1.0, %v3982_v10 }
 0x1dc   :  { %3985 = vpow2.f32 %v1517_v26  ;;  %v1471_v14 = vmul.f32 1.442695, %v1315_v5  ;;  %2098 = vmatmul.bf16.gmra.mxu3 %v5300_v25  ;;  %v3984_v33 = vpop.eup %3983  ;;  %vm1392_vm13 = vcmp.gt.f32.partialorder %v1315_v5, 0.0 }
 0x1dd   :  { %v3402_v30 = vadd.f32 -1.0, %v3984_v33  ;;  %v1669_v18 = vmul.f32 1.6732632, %v3425_v35  ;;  %v3457_v35 = vld [vmem:[#allocation5 + $0x8] sm:$0xf0] }
 0x1de   :  { %3987 = vpow2.f32 %v1471_v14  ;;  %v1080_v62 = vpop.f32.mrf.mxu2 }
 0x1df   :  { %v1081_v57 = vadd.f32 %v1080_v62, %v4850_v46  ;;  %v1169_v15 = vpop.f32.mrf.mxu3  ;;  %v1228_v52 = vpop.f32.mrf.mxu0  ;;  %v1646_v55 = vmul.f32 1.6732632, %v3402_v30  ;;  %v1733_v20 = vsel %vm1413_vm10, %v5283_v27, %v1669_v18  ;;  %v3521_v30 = vld [vmem:[#allocation5 + $0x88] sm:$0xf0] }
 0x1e0   :  { %v1229_v21 = vadd.f32 %v1228_v52, %v5177_v31  ;;  %v1317_v4 = vpop.f32.mrf.mxu1 }
 0x1e1   :  { %v5306_v41 = vadd.f32 %v1169_v15, %v1081_v57  ;;  %v1710_v24 = vsel %vm1390_vm11, %v5287_v56, %v1646_v55 }
 0x1e2   :  { %v3986_v28 = vpop.eup %3985  ;;  %v5308_v36 = vadd.f32 %v1317_v4, %v1229_v21  ;;  %1267 = vmatmul.bf16.gmra.mxu0 %v5050_v6  ;;  %v3767_v4 = vld [vmem:[#allocation5 + $0x84] sm:$0xf] }
 0x1e3   :  { %v3427_v17 = vadd.f32 -1.0, %v3986_v28  ;;  %v1521_v42 = vmul.f32 1.442695, %v5306_v41  ;;  %1356 = vmatmul.bf16.gmra.mxu1 %v5062_v1  ;;  %vm1417_vm0 = vcmp.gt.f32.partialorder %v5306_v41, 0.0 }
 0x1e4   :  { %v3988_v11 = vpop.eup %3987  ;;  %v1475_v38 = vmul.f32 1.442695, %v5308_v36  ;;  %vm1394_vm14 = vcmp.gt.f32.partialorder %v5308_v36, 0.0 }
 0x1e5   :  { %v1671_v40 = vmul.f32 1.6732632, %v3427_v17  ;;  %v3404_v22 = vadd.f32 -1.0, %v3988_v11  ;;  %3989 = vpow2.f32 %v1521_v42  ;;  %v3524_v17 = vor.u32 %v3767_v4, %v3521_v30 }
 0x1e6   :  { %v1082_v37 = vpop.f32.mrf.mxu2  ;;  %3991 = vpow2.f32 %v1475_v38 }
 0x1e7   :  { %v1648_v6 = vmul.f32 1.6732632, %v3404_v22  ;;  %v1083_v60 = vadd.f32 %v1082_v37, %v4850_v46  ;;  %v1171_v2 = vpop.f32.mrf.mxu3  ;;  %v1230_v1 = vpop.f32.mrf.mxu0  ;;  %v1735_v0 = vsel %vm1415_vm12, %v1167_v7, %v1671_v40  ;;  %2265 = vmatpush.bf16.msra.mxu1 %v3524_v17 }
 0x1e8   :  { %v1231_v13 = vadd.f32 %v1230_v1, %v5177_v31  ;;  %v1319_v27 = vpop.f32.mrf.mxu1  ;;  %v5325_v39 = vpack.c.bf16 %v1735_v0, %v1733_v20 }
 0x1e9   :  { %v1172_v34 = vadd.f32 %v1171_v2, %v1083_v60  ;;  %v1712_v49 = vsel %vm1392_vm13, %v1315_v5, %v1648_v6  ;;  %v3751_v5 = vld [vmem:[#allocation5 + $0x4] sm:$0xf] }
 0x1ea   :  { %v1320_v61 = vadd.f32 %v1319_v27, %v1231_v13  ;;  %v5330_v43 = vpack.c.bf16 %v1712_v49, %v1710_v24  ;;  %v3460_v21 = vor.u32 %v3751_v5, %v3457_v35 }
 0x1eb   :  { %v1525_v59 = vmul.f32 1.442695, %v1172_v34  ;;  %2014 = vmatmul.bf16.gmra.mxu2 %v5118_v53  ;;  %v3990_v26 = vpop.eup %3989  ;;  %vm1419_vm15 = vcmp.gt.f32.partialorder %v1172_v34, 0.0 }
 0x1ec   :  { %v1479_v7 = vmul.f32 1.442695, %v1320_v61  ;;  %2103 = vmatmul.bf16.gmra.mxu3 %v5330_v43  ;;  %v3992_v10 = vpop.eup %3991  ;;  %v3429_v62 = vadd.f32 -1.0, %v3990_v26  ;;  %2176 = vmatpush.bf16.msra.mxu0 %v3460_v21  ;;  %vm1396_vm1 = vcmp.gt.f32.partialorder %v1320_v61, 0.0 }
 0x1ed   :  { %3993 = vpow2.f32 %v1525_v59  ;;  %v3406_v28 = vadd.f32 -1.0, %v3992_v10 }
 0x1ee   :  { %3995 = vpow2.f32 %v1479_v7  ;;  %v1085_v14 = vpop.f32.mrf.mxu2  ;;  %v1673_v40 = vmul.f32 1.6732632, %v3429_v62 }
 0x1ef   :  { %v1086_v33 = vadd.f32 %v1085_v14, %v4850_v46  ;;  %v1233_v56 = vpop.f32.mrf.mxu0  ;;  %v1174_v57 = vpop.f32.mrf.mxu3  ;;  %v1650_v20 = vmul.f32 1.6732632, %v3406_v28 }
 0x1f0   :  { %v1234_v15 = vadd.f32 %v1233_v56, %v5177_v31  ;;  %v1322_v52 = vpop.f32.mrf.mxu1  ;;  %v1737_v13 = vsel %vm1417_vm0, %v5306_v41, %v1673_v40 }
 0x1f1   :  { %v5336_v18 = vadd.f32 %v1174_v57, %v1086_v33  ;;  %v1714_v49 = vsel %vm1394_vm14, %v5308_v36, %v1650_v20 }
 0x1f2   :  { %v5338_v42 = vadd.f32 %v1322_v52, %v1234_v15  ;;  %1272 = vmatmul.bf16.gmra.mxu0 %v5102_v44 }
 0x1f3   :  { %v3994_v11 = vpop.eup %3993  ;;  %v1529_v38 = vmul.f32 1.442695, %v5336_v18  ;;  %1361 = vmatmul.bf16.gmra.mxu1 %v5115_v51  ;;  %vm1421_vm2 = vcmp.gt.f32.partialorder %v5336_v18, 0.0 }
 0x1f4   :  { %v3996_v55 = vpop.eup %3995  ;;  %v3431_v22 = vadd.f32 -1.0, %v3994_v11  ;;  %v1483_v37 = vmul.f32 1.442695, %v5338_v42  ;;  %vm1398_vm3 = vcmp.gt.f32.partialorder %v5338_v42, 0.0 }
 0x1f5   :  { %v3408_v6 = vadd.f32 -1.0, %v3996_v55  ;;  %3997 = vpow2.f32 %v1529_v38 }
 0x1f6   :  { %v1675_v60 = vmul.f32 1.6732632, %v3431_v22  ;;  %v1087_v44 = vpop.f32.mrf.mxu2  ;;  %3999 = vpow2.f32 %v1483_v37 }
 0x1f7   :  { %v1652_v2 = vmul.f32 1.6732632, %v3408_v6  ;;  %v1088_v51 = vadd.f32 %v1087_v44, %v4850_v46  ;;  %v1235_v1 = vpop.f32.mrf.mxu0  ;;  %v1176_v48 = vpop.f32.mrf.mxu3 }
 0x1f8   :  { %v1236_v9 = vadd.f32 %v1235_v1, %v5177_v31  ;;  %v1324_v0 = vpop.f32.mrf.mxu1  ;;  %v1739_v27 = vsel %vm1419_vm15, %v1172_v34, %v1675_v60  ;;  %v3795_v60 = vld [vmem:[%s6025_s7 + $0x60] sm:$0xff] }
 0x1f9   :  { %v1177_v24 = vadd.f32 %v1176_v48, %v1088_v51  ;;  %v1716_v59 = vsel %vm1396_vm1, %v1320_v61, %v1652_v2  ;;  %v5352_v7 = vpack.c.bf16 %v1739_v27, %v1737_v13  ;;  %2987 = vmatpush.bf16.msra.mxu3 %v3795_v60 }
 0x1fa   :  { %v1325_v26 = vadd.f32 %v1324_v0, %v1236_v9  ;;  %v5354_v10 = vpack.c.bf16 %v1716_v59, %v1714_v49 }
 0x1fb   :  { %v1533_v14 = vmul.f32 1.442695, %v1177_v24  ;;  %2019 = vmatmul.bf16.gmra.mxu2 %v5158_v63  ;;  %v3998_v33 = vpop.eup %3997  ;;  %vm1423_vm4 = vcmp.gt.f32.partialorder %v1177_v24, 0.0 }
 0x1fc   :  { %v1487_v56 = vmul.f32 1.442695, %v1325_v26  ;;  %v4000_v5 = vpop.eup %3999  ;;  %2108 = vmatmul.bf16.gmra.mxu3 %v5354_v10  ;;  %v3433_v34 = vadd.f32 -1.0, %v3998_v33  ;;  %vm1400_vm5 = vcmp.gt.f32.partialorder %v1325_v26, 0.0 }
 0x1fd   :  { %4001 = vpow2.f32 %v1533_v14  ;;  %v3410_v35 = vadd.f32 -1.0, %v4000_v5 }
 0x1fe   :  { %4003 = vpow2.f32 %v1487_v56  ;;  %v1090_v41 = vpop.f32.mrf.mxu2  ;;  %v1677_v30 = vmul.f32 1.6732632, %v3433_v34 }
 0x1ff   :  { %v1091_v36 = vadd.f32 %v1090_v41, %v4850_v46  ;;  %v1238_v61 = vpop.f32.mrf.mxu0  ;;  %v1179_v62 = vpop.f32.mrf.mxu3  ;;  %v1654_v11 = vmul.f32 1.6732632, %v3410_v35 }
 0x200   :  { %v1239_v57 = vadd.f32 %v1238_v61, %v5177_v31  ;;  %v1327_v15 = vpop.f32.mrf.mxu1  ;;  %v1741_v44 = vsel %vm1421_vm2, %v5336_v18, %v1677_v30 }
 0x201   :  { %v5360_v52 = vadd.f32 %v1179_v62, %v1091_v36  ;;  %v1718_v48 = vsel %vm1398_vm3, %v5338_v42, %v1654_v11 }
 0x202   :  { %v5362_v21 = vadd.f32 %v1327_v15, %v1239_v57  ;;  %1277 = vmatmul.bf16.gmra.mxu0 %v5164_v58 }
 0x203   :  { %v4002_v4 = vpop.eup %4001  ;;  %v1537_v28 = vmul.f32 1.442695, %v5360_v52  ;;  %1366 = vmatmul.bf16.gmra.mxu1 %v5174_v12  ;;  %v3787_v12 = vld [vmem:[%s6025_s7 + $0x20] sm:$0xff]  ;;  %vm1425_vm6 = vcmp.gt.f32.partialorder %v5360_v52, 0.0 }
 0x204   :  { %v4004_v17 = vpop.eup %4003  ;;  %v3435_v38 = vadd.f32 -1.0, %v4002_v4  ;;  %v1491_v55 = vmul.f32 1.442695, %v5362_v21  ;;  %2898 = vmatpush.bf16.msra.mxu2 %v3787_v12  ;;  %vm1402_vm7 = vcmp.gt.f32.partialorder %v5362_v21, 0.0 }
 0x205   :  { %v3412_v40 = vadd.f32 -1.0, %v4004_v17  ;;  %4005 = vpow2.f32 %v1537_v28 }
 0x206   :  { %v1679_v22 = vmul.f32 1.6732632, %v3435_v38  ;;  %v1092_v58 = vpop.f32.mrf.mxu2  ;;  %4007 = vpow2.f32 %v1491_v55 }
 0x207   :  { %v1656_v37 = vmul.f32 1.6732632, %v3412_v40  ;;  %v1093_v20 = vadd.f32 %v1092_v58, %v4850_v46  ;;  %v1240_v6 = vpop.f32.mrf.mxu0  ;;  %v1181_v2 = vpop.f32.mrf.mxu3 }
 0x208   :  { %v1241_v51 = vadd.f32 %v1240_v6, %v5177_v31  ;;  %v1329_v1 = vpop.f32.mrf.mxu1  ;;  %v1743_v9 = vsel %vm1423_vm4, %v1177_v24, %v1679_v22 }
 0x209   :  { %v1182_v0 = vadd.f32 %v1181_v2, %v1093_v20  ;;  %v1720_v13 = vsel %vm1400_vm5, %v1325_v26, %v1656_v37  ;;  %v5384_v27 = vpack.c.bf16 %v1743_v9, %v1741_v44 }
 0x20a   :  { %v1330_v49 = vadd.f32 %v1329_v1, %v1241_v51  ;;  %v5386_v18 = vpack.c.bf16 %v1720_v13, %v1718_v48 }
 0x20b   :  { %v1541_v59 = vmul.f32 1.442695, %v1182_v0  ;;  %2024 = vmatmul.bf16.gmra.mxu2 %v5216_v45  ;;  %v4006_v33 = vpop.eup %4005  ;;  %vm1427_vm8 = vcmp.gt.f32.partialorder %v1182_v0, 0.0 }
 0x20c   :  { %v1495_v14 = vmul.f32 1.442695, %v1330_v49  ;;  %2113 = vmatmul.bf16.gmra.mxu3 %v5386_v18  ;;  %v4008_v42 = vpop.eup %4007  ;;  %v3437_v5 = vadd.f32 -1.0, %v4006_v33  ;;  %vm1404_vm9 = vcmp.gt.f32.partialorder %v1330_v49, 0.0 }
 0x20d   :  { %4009 = vpow2.f32 %v1541_v59  ;;  %v3414_v61 = vadd.f32 -1.0, %v4008_v42 }
 0x20e   :  { %4011 = vpow2.f32 %v1495_v14  ;;  %v1095_v24 = vpop.f32.mrf.mxu2  ;;  %v1681_v30 = vmul.f32 1.6732632, %v3437_v5 }
 0x20f   :  { %v1096_v26 = vadd.f32 %v1095_v24, %v4850_v46  ;;  %v1243_v56 = vpop.f32.mrf.mxu0  ;;  %v1184_v41 = vpop.f32.mrf.mxu3  ;;  %v1658_v11 = vmul.f32 1.6732632, %v3414_v61 }
 0x210   :  { %v1244_v34 = vadd.f32 %v1243_v56, %v5177_v31  ;;  %v1332_v36 = vpop.f32.mrf.mxu1  ;;  %v1745_v6 = vsel %vm1425_vm6, %v5360_v52, %v1681_v30 }
 0x211   :  { %v5392_v35 = vadd.f32 %v1184_v41, %v1096_v26  ;;  %v1722_v44 = vsel %vm1402_vm7, %v5362_v21, %v1658_v11 }
 0x212   :  { %v5394_v62 = vadd.f32 %v1332_v36, %v1244_v34  ;;  %1282 = vmatmul.bf16.gmra.mxu0 %v5218_v8 }
 0x213   :  { %v4010_v57 = vpop.eup %4009  ;;  %v1545_v15 = vmul.f32 1.442695, %v5392_v35  ;;  %1371 = vmatmul.bf16.gmra.mxu1 %v5226_v54  ;;  %vm1429_vm10 = vcmp.gt.f32.partialorder %v5392_v35, 0.0 }
 0x214   :  { %v4012_v4 = vpop.eup %4011  ;;  %v3439_v28 = vadd.f32 -1.0, %v4010_v57  ;;  %v1499_v17 = vmul.f32 1.442695, %v5394_v62  ;;  %vm1406_vm11 = vcmp.gt.f32.partialorder %v5394_v62, 0.0 }
 0x215   :  { %v3416_v38 = vadd.f32 -1.0, %v4012_v4  ;;  %4013 = vpow2.f32 %v1545_v15 }
 0x216   :  { %v1683_v55 = vmul.f32 1.6732632, %v3439_v28  ;;  %v1097_v40 = vpop.f32.mrf.mxu2  ;;  %4015 = vpow2.f32 %v1499_v17 }
 0x217   :  { %v1660_v8 = vmul.f32 1.6732632, %v3416_v38  ;;  %v1098_v22 = vadd.f32 %v1097_v40, %v4850_v46  ;;  %v1245_v54 = vpop.f32.mrf.mxu0  ;;  %v1186_v58 = vpop.f32.mrf.mxu3 }
 0x218   :  { %v1246_v37 = vadd.f32 %v1245_v54, %v5177_v31  ;;  %v1334_v20 = vpop.f32.mrf.mxu1  ;;  %v1747_v12 = vsel %vm1427_vm8, %v1182_v0, %v1683_v55  ;;  %v3794_v55 = vld [vmem:[%s6025_s7 + $0x58] sm:$0xff] }
 0x219   :  { %v1187_v60 = vadd.f32 %v1186_v58, %v1098_v22  ;;  %v1724_v2 = vsel %vm1404_vm9, %v1330_v49, %v1660_v8  ;;  %v5408_v51 = vpack.c.bf16 %v1747_v12, %v1745_v6  ;;  %2988 = vmatpush.bf16.msra.mxu3 %v3794_v55 }
 0x21a   :  { %v1335_v1 = vadd.f32 %v1334_v20, %v1246_v37  ;;  %v5410_v48 = vpack.c.bf16 %v1724_v2, %v1722_v44 }
 0x21b   :  { %v1549_v9 = vmul.f32 1.442695, %v1187_v60  ;;  %2029 = vmatmul.bf16.gmra.mxu2 %v5245_v32  ;;  %v4014_v13 = vpop.eup %4013  ;;  %vm1431_vm12 = vcmp.gt.f32.partialorder %v1187_v60, 0.0 }
 0x21c   :  { %v1503_v59 = vmul.f32 1.442695, %v1335_v1  ;;  %v4016_v14 = vpop.eup %4015  ;;  %2118 = vmatmul.bf16.gmra.mxu3 %v5410_v48  ;;  %v3441_v0 = vadd.f32 -1.0, %v4014_v13  ;;  %vm1408_vm13 = vcmp.gt.f32.partialorder %v1335_v1, 0.0 }
 0x21d   :  { %4017 = vpow2.f32 %v1549_v9  ;;  %v3418_v33 = vadd.f32 -1.0, %v4016_v14 }
 0x21e   :  { %4019 = vpow2.f32 %v1503_v59  ;;  %v1100_v52 = vpop.f32.mrf.mxu2  ;;  %v1685_v34 = vmul.f32 1.6732632, %v3441_v0 }
 0x21f   :  { %v1101_v21 = vadd.f32 %v1100_v52, %v4850_v46  ;;  %v1248_v49 = vpop.f32.mrf.mxu0  ;;  %v1189_v42 = vpop.f32.mrf.mxu3  ;;  %v1662_v57 = vmul.f32 1.6732632, %v3418_v33 }
 0x220   :  { %v1249_v24 = vadd.f32 %v1248_v49, %v5177_v31  ;;  %v1337_v26 = vpop.f32.mrf.mxu1  ;;  %v1749_v40 = vsel %vm1429_vm10, %v5392_v35, %v1685_v34 }
 0x221   :  { %v5416_v56 = vadd.f32 %v1189_v42, %v1101_v21  ;;  %v1726_v58 = vsel %vm1406_vm11, %v5394_v62, %v1662_v57 }
 0x222   :  { %v5418_v5 = vadd.f32 %v1337_v26, %v1249_v24  ;;  %2177 = vmatmul.bf16.vlgmr.msra.gmra.mxu0 %v4926_v47 }
 0x223   :  { %v4018_v41 = vpop.eup %4017  ;;  %v1553_v36 = vmul.f32 1.442695, %v5416_v56  ;;  %2266 = vmatmul.bf16.vlgmr.msra.gmra.mxu1 %v5248_v23  ;;  %v3786_v23 = vld [vmem:[%s6025_s7 + $0x18] sm:$0xff]  ;;  %vm1433_vm0 = vcmp.gt.f32.partialorder %v5416_v56, 0.0 }
 0x224   :  { %v4020_v61 = vpop.eup %4019  ;;  %v3443_v15 = vadd.f32 -1.0, %v4018_v41  ;;  %v1507_v4 = vmul.f32 1.442695, %v5418_v5  ;;  %2899 = vmatpush.bf16.msra.mxu2 %v3786_v23  ;;  %vm1410_vm14 = vcmp.gt.f32.partialorder %v5418_v5, 0.0 }
 0x225   :  { %v3420_v30 = vadd.f32 -1.0, %v4020_v61  ;;  %4021 = vpow2.f32 %v1553_v36 }
 0x226   :  { %v1687_v28 = vmul.f32 1.6732632, %v3443_v15  ;;  %v1102_v47 = vpop.f32.mrf.mxu2  ;;  %4023 = vpow2.f32 %v1507_v4 }
 0x227   :  { %v1664_v17 = vmul.f32 1.6732632, %v3420_v30  ;;  %v1103_v11 = vadd.f32 %v1102_v47, %v4850_v46  ;;  %v1250_v38 = vpop.f32.mrf.mxu0  ;;  %v1191_v8 = vpop.f32.mrf.mxu3 }
 0x228   :  { %v1251_v22 = vadd.f32 %v1250_v38, %v5177_v31  ;;  %v1339_v54 = vpop.f32.mrf.mxu1  ;;  %v1751_v37 = vsel %vm1431_vm12, %v1187_v60, %v1687_v28  ;;  %v5463_v38 = vld [vmem:[%s6024_s6] sm:$0x3] }
 0x229   :  { %v1192_v20 = vadd.f32 %v1191_v8, %v1103_v11  ;;  %v1728_v6 = vsel %vm1408_vm13, %v1335_v1, %v1664_v17  ;;  %v5440_v12 = vpack.c.bf16 %v1751_v37, %v1749_v40 }
 0x22a   :  { %v1340_v44 = vadd.f32 %v1339_v54, %v1251_v22  ;;  %v5442_v35 = vpack.c.bf16 %v1728_v6, %v1726_v58  ;;  %v5475_v6 = vperm.slane %v5463_v38, 0 }
 0x22b   :  { %v1557_v2 = vmul.f32 1.442695, %v1192_v20  ;;  %2034 = vmatmul.bf16.gmra.mxu2 %v5273_v29  ;;  %v4022_v13 = vpop.eup %4021  ;;  %vm1435_vm15 = vcmp.gt.f32.partialorder %v1192_v20, 0.0 }
 0x22c   :  { %v1511_v9 = vmul.f32 1.442695, %v1340_v44  ;;  %2123 = vmatmul.bf16.gmra.mxu3 %v5442_v35  ;;  %v4024_v62 = vpop.eup %4023  ;;  %v3445_v14 = vadd.f32 -1.0, %v4022_v13  ;;  %vm1412_vm1 = vcmp.gt.f32.partialorder %v1340_v44, 0.0 }
 0x22d   :  { %4025 = vpow2.f32 %v1557_v2  ;;  %v3422_v49 = vadd.f32 -1.0, %v4024_v62 }
 0x22e   :  { %4027 = vpow2.f32 %v1511_v9  ;;  %v1105_v60 = vpop.f32.mrf.mxu2  ;;  %v1689_v34 = vmul.f32 1.6732632, %v3445_v14 }
 0x22f   :  { %v1106_v1 = vadd.f32 %v1105_v60, %v4850_v46  ;;  %v1253_v59 = vpop.f32.mrf.mxu0  ;;  %v1194_v52 = vpop.f32.mrf.mxu3  ;;  %v1666_v57 = vmul.f32 1.6732632, %v3422_v49 }
 0x230   :  { %v1254_v0 = vadd.f32 %v1253_v59, %v5177_v31  ;;  %v1342_v21 = vpop.f32.mrf.mxu1  ;;  %v1753_v23 = vsel %vm1433_vm0, %v5416_v56, %v1689_v34 }
 0x231   :  { %v5448_v33 = vadd.f32 %v1194_v52, %v1106_v1  ;;  %v1730_v8 = vsel %vm1410_vm14, %v5418_v5, %v1666_v57 }
 0x232   :  { %v5450_v42 = vadd.f32 %v1342_v21, %v1254_v0  ;;  %2182 = vmatmul.bf16.gmra.mxu0 %v5004_v16 }
 0x233   :  { %v4026_v24 = vpop.eup %4025  ;;  %v1561_v26 = vmul.f32 1.442695, %v5448_v33  ;;  %2271 = vmatmul.bf16.gmra.mxu1 %v5278_v50  ;;  %vm1437_vm2 = vcmp.gt.f32.partialorder %v5448_v33, 0.0 }
 0x234   :  { %v4028_v41 = vpop.eup %4027  ;;  %v3447_v36 = vadd.f32 -1.0, %v4026_v24  ;;  %v1515_v61 = vmul.f32 1.442695, %v5450_v42  ;;  %vm1414_vm3 = vcmp.gt.f32.partialorder %v5450_v42, 0.0 }
 0x235   :  { %v3424_v15 = vadd.f32 -1.0, %v4028_v41  ;;  %4029 = vpow2.f32 %v1561_v26 }
 0x236   :  { %v1691_v4 = vmul.f32 1.6732632, %v3447_v36  ;;  %v1107_v30 = vpop.f32.mrf.mxu2  ;;  %4031 = vpow2.f32 %v1515_v61 }
 0x237   :  { %v1668_v16 = vmul.f32 1.6732632, %v3424_v15  ;;  %v1108_v28 = vadd.f32 %v1107_v30, %v4850_v46  ;;  %v1255_v50 = vpop.f32.mrf.mxu0  ;;  %v1196_v47 = vpop.f32.mrf.mxu3  ;;  %v3793_v30 = vld [vmem:[%s6025_s7 + $0x50] sm:$0xff] }
 0x238   :  { %v1256_v17 = vadd.f32 %v1255_v50, %v5177_v31  ;;  %v1344_v11 = vpop.f32.mrf.mxu1  ;;  %v1755_v55 = vsel %vm1435_vm15, %v1192_v20, %v1691_v4  ;;  %2989 = vmatpush.bf16.msra.mxu3 %v3793_v30 }
 0x239   :  { %v1197_v40 = vadd.f32 %v1196_v47, %v1108_v28  ;;  %v1732_v46 = vsel %vm1412_vm1, %v1340_v44, %v1668_v16  ;;  %v5469_v22 = vpack.c.bf16 %v1755_v55, %v1753_v23 }
 0x23a   :  { %v1345_v54 = vadd.f32 %v1344_v11, %v1256_v17  ;;  %v5471_v58 = vpack.c.bf16 %v1732_v46, %v1730_v8 }
 0x23b   :  { %v1565_v37 = vmul.f32 1.442695, %v1197_v40  ;;  %2039 = vmatmul.bf16.gmra.mxu2 %v5297_v3  ;;  %v4030_v2 = vpop.eup %4029  ;;  %vm1439_vm4 = vcmp.gt.f32.partialorder %v1197_v40, 0.0 }
 0x23c   :  { %v1519_v56 = vmul.f32 1.442695, %v1345_v54  ;;  %v4032_v20 = vpop.eup %4031  ;;  %2128 = vmatmul.bf16.gmra.mxu3 %v5471_v58  ;;  %v3449_v44 = vadd.f32 -1.0, %v4030_v2  ;;  %vm1416_vm5 = vcmp.gt.f32.partialorder %v1345_v54, 0.0 }
 0x23d   :  { %4033 = vpow2.f32 %v1565_v37  ;;  %v3426_v62 = vadd.f32 -1.0, %v4032_v20 }
 0x23e   :  { %4035 = vpow2.f32 %v1519_v56  ;;  %v2000_v5 = vpop.f32.mrf.mxu2  ;;  %v1693_v21 = vmul.f32 1.6732632, %v3449_v44 }
 0x23f   :  { %v2001_v9 = vadd.f32 %v2000_v5, %v5475_v6  ;;  %v1258_v13 = vpop.f32.mrf.mxu0  ;;  %v2089_v59 = vpop.f32.mrf.mxu3  ;;  %v1670_v26 = vmul.f32 1.6732632, %v3426_v62 }
 0x240   :  { %v1259_v60 = vadd.f32 %v1258_v13, %v5177_v31  ;;  %v1347_v1 = vpop.f32.mrf.mxu1  ;;  %v1757_v16 = vsel %vm1437_vm2, %v5448_v33, %v1693_v21 }
 0x241   :  { %v5480_v14 = vadd.f32 %v2089_v59, %v2001_v9  ;;  %v1734_v17 = vsel %vm1414_vm3, %v5450_v42, %v1670_v26 }
 0x242   :  { %v5482_v52 = vadd.f32 %v1347_v1, %v1259_v60  ;;  %2187 = vmatmul.bf16.gmra.mxu0 %v5045_v19 }
 0x243   :  { %v4034_v0 = vpop.eup %4033  ;;  %v2411_v49 = vmul.f32 1.442695, %v5480_v14  ;;  %2276 = vmatmul.bf16.gmra.mxu1 %v5300_v25  ;;  %v3785_v25 = vld [vmem:[%s6025_s7 + $0x10] sm:$0xff]  ;;  %vm2347_vm7 = vcmp.gt.f32.partialorder %v5480_v14, 0.0 }
 0x244   :  { %v4036_v24 = vpop.eup %4035  ;;  %v3451_v41 = vadd.f32 -1.0, %v4034_v0  ;;  %v1523_v34 = vmul.f32 1.442695, %v5482_v52  ;;  %2900 = vmatpush.bf16.msra.mxu2 %v3785_v25  ;;  %vm1418_vm6 = vcmp.gt.f32.partialorder %v5482_v52, 0.0 }
 0x245   :  { %v3428_v36 = vadd.f32 -1.0, %v4036_v24  ;;  %4037 = vpow2.f32 %v2411_v49 }
 0x246   :  { %v1695_v61 = vmul.f32 1.6732632, %v3451_v41  ;;  %v2002_v19 = vpop.f32.mrf.mxu2  ;;  %4039 = vpow2.f32 %v1523_v34 }
 0x247   :  { %v1672_v57 = vmul.f32 1.6732632, %v3428_v36  ;;  %v2003_v15 = vadd.f32 %v2002_v19, %v5475_v6  ;;  %v1260_v4 = vpop.f32.mrf.mxu0  ;;  %v2091_v47 = vpop.f32.mrf.mxu3 }
 0x248   :  { %v1261_v28 = vadd.f32 %v1260_v4, %v5177_v31  ;;  %v1349_v50 = vpop.f32.mrf.mxu1  ;;  %v1759_v11 = vsel %vm1439_vm4, %v1197_v40, %v1695_v61 }
 0x249   :  { %v2092_v23 = vadd.f32 %v2091_v47, %v2003_v15  ;;  %v1736_v55 = vsel %vm1416_vm5, %v1345_v54, %v1672_v57  ;;  %v5504_v8 = vpack.c.bf16 %v1759_v11, %v1757_v16 }
 0x24a   :  { %v1350_v46 = vadd.f32 %v1349_v50, %v1261_v28  ;;  %v5506_v33 = vpack.c.bf16 %v1736_v55, %v1734_v17 }
 0x24b   :  { %v2415_v37 = vmul.f32 1.442695, %v2092_v23  ;;  %2044 = vmatmul.bf16.gmra.mxu2 %v5325_v39  ;;  %v4038_v56 = vpop.eup %4037  ;;  %vm2349_vm8 = vcmp.gt.f32.partialorder %v2092_v23, 0.0 }
 0x24c   :  { %v1527_v2 = vmul.f32 1.442695, %v1350_v46  ;;  %2133 = vmatmul.bf16.gmra.mxu3 %v5506_v33  ;;  %v4040_v42 = vpop.eup %4039  ;;  %v3581_v5 = vadd.f32 -1.0, %v4038_v56  ;;  %vm1420_vm9 = vcmp.gt.f32.partialorder %v1350_v46, 0.0 }
 0x24d   :  { %4041 = vpow2.f32 %v2415_v37  ;;  %v3430_v62 = vadd.f32 -1.0, %v4040_v42 }
 0x24e   :  { %4043 = vpow2.f32 %v1527_v2  ;;  %v2005_v40 = vpop.f32.mrf.mxu2  ;;  %v2603_v49 = vmul.f32 1.6732632, %v3581_v5 }
 0x24f   :  { %v2006_v54 = vadd.f32 %v2005_v40, %v5475_v6  ;;  %v1263_v20 = vpop.f32.mrf.mxu0  ;;  %v2094_v13 = vpop.f32.mrf.mxu3  ;;  %v1674_v41 = vmul.f32 1.6732632, %v3430_v62 }
 0x250   :  { %v1264_v44 = vadd.f32 %v1263_v20, %v5177_v31  ;;  %v1352_v9 = vpop.f32.mrf.mxu1  ;;  %v5524_v57 = vsel %vm2347_vm7, %v5480_v14, %v2603_v49 }
 0x251   :  { %v5512_v60 = vadd.f32 %v2094_v13, %v2006_v54  ;;  %v1738_v50 = vsel %vm1418_vm6, %v5482_v52, %v1674_v41 }
 0x252   :  { %v5514_v1 = vadd.f32 %v1352_v9, %v1264_v44  ;;  %2192 = vmatmul.bf16.gmra.mxu0 %v5118_v53 }
 0x253   :  { %v4042_v59 = vpop.eup %4041  ;;  %v2419_v0 = vmul.f32 1.442695, %v5512_v60  ;;  %2281 = vmatmul.bf16.gmra.mxu1 %v5330_v43  ;;  %vm2351_vm10 = vcmp.gt.f32.partialorder %v5512_v60, 0.0 }
 0x254   :  { %v4044_v21 = vpop.eup %4043  ;;  %v3583_v24 = vadd.f32 -1.0, %v4042_v59  ;;  %v1531_v26 = vmul.f32 1.442695, %v5514_v1  ;;  %vm1422_vm11 = vcmp.gt.f32.partialorder %v5514_v1, 0.0 }
 0x255   :  { %v3432_v34 = vadd.f32 -1.0, %v4044_v21  ;;  %4045 = vpow2.f32 %v2419_v0 }
 0x256   :  { %v2605_v36 = vmul.f32 1.6732632, %v3583_v24  ;;  %v2007_v61 = vpop.f32.mrf.mxu2  ;;  %4047 = vpow2.f32 %v1531_v26 }
 0x257   :  { %v1676_v53 = vmul.f32 1.6732632, %v3432_v34  ;;  %v2008_v19 = vadd.f32 %v2007_v61, %v5475_v6  ;;  %v1265_v43 = vpop.f32.mrf.mxu0  ;;  %v2096_v30 = vpop.f32.mrf.mxu3  ;;  %v3792_v61 = vld [vmem:[%s6025_s7 + $0x48] sm:$0xff] }
 0x258   :  { %v5526_v15 = vsel %vm2349_vm8, %v2092_v23, %v2605_v36  ;;  %v1266_v4 = vadd.f32 %v1265_v43, %v5177_v31  ;;  %v1354_v25 = vpop.f32.mrf.mxu1  ;;  %2990 = vmatpush.bf16.msra.mxu3 %v3792_v61 }
 0x259   :  { %v2731_v16 = vpack.c.bf16 %v5526_v15, %v5524_v57  ;;  %v2097_v28 = vadd.f32 %v2096_v30, %v2008_v19  ;;  %v1740_v47 = vsel %vm1420_vm9, %v1350_v46, %v1676_v53 }
 0x25a   :  { %v1355_v17 = vadd.f32 %v1354_v25, %v1266_v4  ;;  %v5534_v11 = vpack.c.bf16 %v1740_v47, %v1738_v50 }
 0x25b   :  { %v2423_v14 = vmul.f32 1.442695, %v2097_v28  ;;  %2049 = vmatmul.bf16.gmra.mxu2 %v5352_v7  ;;  %v4046_v23 = vpop.eup %4045  ;;  %vm2353_vm13 = vcmp.gt.f32.partialorder %v2097_v28, 0.0 }
 0x25c   :  { %v1535_v55 = vmul.f32 1.442695, %v1355_v17  ;;  %v4048_v37 = vpop.eup %4047  ;;  %2138 = vmatmul.bf16.gmra.mxu3 %v5534_v11  ;;  %v3585_v56 = vadd.f32 -1.0, %v4046_v23  ;;  %vm1424_vm12 = vcmp.gt.f32.partialorder %v1355_v17, 0.0 }
 0x25d   :  { %4049 = vpow2.f32 %v2423_v14  ;;  %v3434_v52 = vadd.f32 -1.0, %v4048_v37 }
 0x25e   :  { %4051 = vpow2.f32 %v1535_v55  ;;  %v2010_v2 = vpop.f32.mrf.mxu2  ;;  %v2607_v13 = vmul.f32 1.6732632, %v3585_v56 }
 0x25f   :  { %v2011_v42 = vadd.f32 %v2010_v2, %v5475_v6  ;;  %v1268_v40 = vpop.f32.mrf.mxu0  ;;  %v2099_v20 = vpop.f32.mrf.mxu3  ;;  %v1678_v0 = vmul.f32 1.6732632, %v3434_v52 }
 0x260   :  { %v1269_v46 = vadd.f32 %v1268_v40, %v5177_v31  ;;  %v1357_v54 = vpop.f32.mrf.mxu1  ;;  %v5558_v53 = vsel %vm2351_vm10, %v5512_v60, %v2607_v13 }
 0x261   :  { %v5540_v5 = vadd.f32 %v2099_v20, %v2011_v42  ;;  %v1742_v25 = vsel %vm1422_vm11, %v5514_v1, %v1678_v0 }
 0x262   :  { %v5542_v44 = vadd.f32 %v1357_v54, %v1269_v46  ;;  %2197 = vmatmul.bf16.gmra.mxu0 %v5158_v63 }
 0x263   :  { %v4050_v9 = vpop.eup %4049  ;;  %v2427_v62 = vmul.f32 1.442695, %v5540_v5  ;;  %2286 = vmatmul.bf16.gmra.mxu1 %v5354_v10  ;;  %v3784_v10 = vld [vmem:[%s6025_s7 + $0x8] sm:$0xff]  ;;  %vm2355_vm14 = vcmp.gt.f32.partialorder %v5540_v5, 0.0 }
 0x264   :  { %v4052_v59 = vpop.eup %4051  ;;  %v3587_v21 = vadd.f32 -1.0, %v4050_v9  ;;  %v1539_v49 = vmul.f32 1.442695, %v5542_v44  ;;  %2901 = vmatpush.bf16.msra.mxu2 %v3784_v10  ;;  %vm1426_vm0 = vcmp.gt.f32.partialorder %v5542_v44, 0.0 }
 0x265   :  { %v3436_v24 = vadd.f32 -1.0, %v4052_v59  ;;  %4053 = vpow2.f32 %v2427_v62 }
 0x266   :  { %v2609_v26 = vmul.f32 1.6732632, %v3587_v21  ;;  %v2012_v63 = vpop.f32.mrf.mxu2  ;;  %4055 = vpow2.f32 %v1539_v49 }
 0x267   :  { %v1680_v41 = vmul.f32 1.6732632, %v3436_v24  ;;  %v2013_v34 = vadd.f32 %v2012_v63, %v5475_v6  ;;  %v1270_v36 = vpop.f32.mrf.mxu0  ;;  %v2101_v4 = vpop.f32.mrf.mxu3 }
 0x268   :  { %v1271_v19 = vadd.f32 %v1270_v36, %v5177_v31  ;;  %v1359_v43 = vpop.f32.mrf.mxu1  ;;  %v5564_v30 = vsel %vm2353_vm13, %v2097_v28, %v2609_v26 }
 0x269   :  { %v2102_v50 = vadd.f32 %v2101_v4, %v2013_v34  ;;  %v1744_v47 = vsel %vm1424_vm12, %v1355_v17, %v1680_v41  ;;  %v2733_v60 = vpack.c.bf16 %v5564_v30, %v5558_v53 }
 0x26a   :  { %v1360_v14 = vadd.f32 %v1359_v43, %v1271_v19  ;;  %v5569_v23 = vpack.c.bf16 %v1744_v47, %v1742_v25 }
 0x26b   :  { %v2431_v55 = vmul.f32 1.442695, %v2102_v50  ;;  %2054 = vmatmul.bf16.gmra.mxu2 %v5384_v27  ;;  %v4054_v2 = vpop.eup %4053  ;;  %vm2357_vm15 = vcmp.gt.f32.partialorder %v2102_v50, 0.0 }
 0x26c   :  { %v1543_v37 = vmul.f32 1.442695, %v1360_v14  ;;  %2143 = vmatmul.bf16.gmra.mxu3 %v5569_v23  ;;  %v4056_v1 = vpop.eup %4055  ;;  %v3589_v42 = vadd.f32 -1.0, %v4054_v2  ;;  %vm1428_vm1 = vcmp.gt.f32.partialorder %v1360_v14, 0.0 }
 0x26d   :  { %4057 = vpow2.f32 %v2431_v55  ;;  %v3438_v54 = vadd.f32 -1.0, %v4056_v1 }
 0x26e   :  { %4059 = vpow2.f32 %v1543_v37  ;;  %v2015_v28 = vpop.f32.mrf.mxu2  ;;  %v2611_v0 = vmul.f32 1.6732632, %v3589_v42 }
 0x26f   :  { %v2016_v17 = vadd.f32 %v2015_v28, %v5475_v6  ;;  %v1273_v56 = vpop.f32.mrf.mxu0  ;;  %v2104_v46 = vpop.f32.mrf.mxu3  ;;  %v1682_v24 = vmul.f32 1.6732632, %v3438_v54 }
 0x270   :  { %v1274_v40 = vadd.f32 %v1273_v56, %v5177_v31  ;;  %v1362_v52 = vpop.f32.mrf.mxu1  ;;  %v5588_v19 = vsel %vm2355_vm14, %v5540_v5, %v2611_v0 }
 0x271   :  { %v5575_v20 = vadd.f32 %v2104_v46, %v2016_v17  ;;  %v1746_v25 = vsel %vm1426_vm0, %v5542_v44, %v1682_v24 }
 0x272   :  { %v5577_v9 = vadd.f32 %v1362_v52, %v1274_v40  ;;  %2202 = vmatmul.bf16.gmra.mxu0 %v5216_v45 }
 0x273   :  { %v4058_v13 = vpop.eup %4057  ;;  %v2435_v62 = vmul.f32 1.442695, %v5575_v20  ;;  %2291 = vmatmul.bf16.gmra.mxu1 %v5386_v18  ;;  %vm2359_vm2 = vcmp.gt.f32.partialorder %v5575_v20, 0.0 }
 0x274   :  { %v4060_v59 = vpop.eup %4059  ;;  %v3591_v21 = vadd.f32 -1.0, %v4058_v13  ;;  %v1547_v49 = vmul.f32 1.442695, %v5577_v9  ;;  %vm1430_vm3 = vcmp.gt.f32.partialorder %v5577_v9, 0.0 }
 0x275   :  { %v3440_v26 = vadd.f32 -1.0, %v4060_v59  ;;  %4061 = vpow2.f32 %v2435_v62 }
 0x276   :  { %v2613_v63 = vmul.f32 1.6732632, %v3591_v21  ;;  %v2017_v41 = vpop.f32.mrf.mxu2  ;;  %4063 = vpow2.f32 %v1547_v49 }
 0x277   :  { %v1684_v45 = vmul.f32 1.6732632, %v3440_v26  ;;  %v2018_v34 = vadd.f32 %v2017_v41, %v5475_v6  ;;  %v1275_v18 = vpop.f32.mrf.mxu0  ;;  %v2106_v61 = vpop.f32.mrf.mxu3 }
 0x278   :  { %v1276_v36 = vadd.f32 %v1275_v18, %v5177_v31  ;;  %v1364_v10 = vpop.f32.mrf.mxu1  ;;  %v5590_v43 = vsel %vm2357_vm15, %v2102_v50, %v2613_v63 }
 0x279   :  { %v2107_v4 = vadd.f32 %v2106_v61, %v2018_v34  ;;  %v1748_v47 = vsel %vm1428_vm1, %v1360_v14, %v1684_v45  ;;  %v2735_v55 = vpack.c.bf16 %v5590_v43, %v5588_v19 }
 0x27a   :  { %v1365_v37 = vadd.f32 %v1364_v10, %v1276_v36  ;;  %v5597_v2 = vpack.c.bf16 %v1748_v47, %v1746_v25  ;;  %v3791_v36 = vld [vmem:[%s6025_s7 + $0x40] sm:$0xff] }
 0x27b   :  { %v2439_v1 = vmul.f32 1.442695, %v2107_v4  ;;  %2059 = vmatmul.bf16.gmra.mxu2 %v5408_v51  ;;  %v4062_v28 = vpop.eup %4061  ;;  %vm2361_vm5 = vcmp.gt.f32.partialorder %v2107_v4, 0.0  ;;  %2991 = vmatpush.bf16.msra.mxu3 %v3791_v36 }
 0x27c   :  { %v1551_v5 = vmul.f32 1.442695, %v1365_v37  ;;  %v4064_v17 = vpop.eup %4063  ;;  %2148 = vmatmul.bf16.gmra.mxu3 %v5597_v2  ;;  %v3593_v56 = vadd.f32 -1.0, %v4062_v28  ;;  %vm1432_vm4 = vcmp.gt.f32.partialorder %v1365_v37, 0.0 }
 0x27d   :  { %4065 = vpow2.f32 %v2439_v1  ;;  %v3442_v42 = vadd.f32 -1.0, %v4064_v17 }
 0x27e   :  { %4067 = vpow2.f32 %v1551_v5  ;;  %v2020_v50 = vpop.f32.mrf.mxu2  ;;  %v2615_v59 = vmul.f32 1.6732632, %v3593_v56 }
 0x27f   :  { %v2021_v44 = vadd.f32 %v2020_v50, %v5475_v6  ;;  %v1278_v14 = vpop.f32.mrf.mxu0  ;;  %v2109_v46 = vpop.f32.mrf.mxu3  ;;  %v1686_v49 = vmul.f32 1.6732632, %v3442_v42 }
 0x280   :  { %v1279_v40 = vadd.f32 %v1278_v14, %v5177_v31  ;;  %v1367_v52 = vpop.f32.mrf.mxu1  ;;  %v5621_v10 = vsel %vm2359_vm2, %v5575_v20, %v2615_v59 }
 0x281   :  { %v5603_v54 = vadd.f32 %v2109_v46, %v2021_v44  ;;  %v1750_v1 = vsel %vm1430_vm3, %v5577_v9, %v1686_v49 }
 0x282   :  { %v5605_v13 = vadd.f32 %v1367_v52, %v1279_v40  ;;  %2207 = vmatmul.bf16.gmra.mxu0 %v5245_v32 }
 0x283   :  { %v4066_v62 = vpop.eup %4065  ;;  %v2443_v0 = vmul.f32 1.442695, %v5603_v54  ;;  %2296 = vmatmul.bf16.gmra.mxu1 %v5410_v48  ;;  %v3783_v48 = vld [vmem:[%s6025_s7] sm:$0xff]  ;;  %vm2363_vm7 = vcmp.gt.f32.partialorder %v5603_v54, 0.0 }
 0x284   :  { %v4068_v21 = vpop.eup %4067  ;;  %v3595_v24 = vadd.f32 -1.0, %v4066_v62  ;;  %v1555_v26 = vmul.f32 1.442695, %v5605_v13  ;;  %2902 = vmatpush.bf16.msra.mxu2 %v3783_v48  ;;  %vm1434_vm6 = vcmp.gt.f32.partialorder %v5605_v13, 0.0 }
 0x285   :  { %v3444_v63 = vadd.f32 -1.0, %v4068_v21  ;;  %4069 = vpow2.f32 %v2443_v0 }
 0x286   :  { %v2617_v41 = vmul.f32 1.6732632, %v3595_v24  ;;  %v2022_v32 = vpop.f32.mrf.mxu2  ;;  %4071 = vpow2.f32 %v1555_v26 }
 0x287   :  { %v1688_v45 = vmul.f32 1.6732632, %v3444_v63  ;;  %v2023_v34 = vadd.f32 %v2022_v32, %v5475_v6  ;;  %v1280_v18 = vpop.f32.mrf.mxu0  ;;  %v2111_v47 = vpop.f32.mrf.mxu3 }
 0x288   :  { %v1281_v61 = vadd.f32 %v1280_v18, %v5177_v31  ;;  %v1369_v25 = vpop.f32.mrf.mxu1  ;;  %v5627_v28 = vsel %vm2361_vm5, %v2107_v4, %v2617_v41 }
 0x289   :  { %v2112_v5 = vadd.f32 %v2111_v47, %v2023_v34  ;;  %v1752_v17 = vsel %vm1432_vm4, %v1365_v37, %v1688_v45  ;;  %v2737_v20 = vpack.c.bf16 %v5627_v28, %v5621_v10 }
 0x28a   :  { %v1370_v50 = vadd.f32 %v1369_v25, %v1281_v61  ;;  %v5632_v56 = vpack.c.bf16 %v1752_v17, %v1750_v1 }
 0x28b   :  { %v2447_v44 = vmul.f32 1.442695, %v2112_v5  ;;  %2064 = vmatmul.bf16.gmra.mxu2 %v5440_v12  ;;  %v4070_v42 = vpop.eup %4069  ;;  %vm2365_vm8 = vcmp.gt.f32.partialorder %v2112_v5, 0.0 }
 0x28c   :  { %v1559_v14 = vmul.f32 1.442695, %v1370_v50  ;;  %2153 = vmatmul.bf16.gmra.mxu3 %v5632_v56  ;;  %v4072_v9 = vpop.eup %4071  ;;  %v3597_v52 = vadd.f32 -1.0, %v4070_v42  ;;  %vm1436_vm9 = vcmp.gt.f32.partialorder %v1370_v50, 0.0 }
 0x28d   :  { %4073 = vpow2.f32 %v2447_v44  ;;  %v3446_v0 = vadd.f32 -1.0, %v4072_v9 }
 0x28e   :  { %4075 = vpow2.f32 %v1559_v14  ;;  %v2025_v4 = vpop.f32.mrf.mxu2  ;;  %v2619_v41 = vmul.f32 1.6732632, %v3597_v52 }
 0x28f   :  { %v2026_v37 = vadd.f32 %v2025_v4, %v5475_v6  ;;  %v1283_v40 = vpop.f32.mrf.mxu0  ;;  %v2114_v59 = vpop.f32.mrf.mxu3  ;;  %v1690_v34 = vmul.f32 1.6732632, %v3446_v0 }
 0x290   :  { %v1284_v46 = vadd.f32 %v1283_v40, %v5177_v31  ;;  %v1372_v62 = vpop.f32.mrf.mxu1  ;;  %v5651_v17 = vsel %vm2363_vm7, %v5603_v54, %v2619_v41  ;;  %v5664_v54 = vperm.slane %v5463_v38, 1 }
 0x291   :  { %v5638_v21 = vadd.f32 %v2114_v59, %v2026_v37  ;;  %v1754_v42 = vsel %vm1434_vm6, %v5605_v13, %v1690_v34 }
 0x292   :  { %v5640_v49 = vadd.f32 %v1372_v62, %v1284_v46  ;;  %2212 = vmatmul.bf16.gmra.mxu0 %v5273_v29 }
 0x293   :  { %v4074_v24 = vpop.eup %4073  ;;  %v2451_v26 = vmul.f32 1.442695, %v5638_v21  ;;  %2301 = vmatmul.bf16.gmra.mxu1 %v5442_v35  ;;  %vm2367_vm11 = vcmp.gt.f32.partialorder %v5638_v21, 0.0 }
 0x294   :  { %v4076_v63 = vpop.eup %4075  ;;  %v3599_v32 = vadd.f32 -1.0, %v4074_v24  ;;  %v1563_v45 = vmul.f32 1.442695, %v5640_v49  ;;  %vm1438_vm10 = vcmp.gt.f32.partialorder %v5640_v49, 0.0 }
 0x295   :  { %v3448_v18 = vadd.f32 -1.0, %v4076_v63  ;;  %4077 = vpow2.f32 %v2451_v26 }
 0x296   :  { %v2621_v48 = vmul.f32 1.6732632, %v3599_v32  ;;  %v2027_v36 = vpop.f32.mrf.mxu2  ;;  %4079 = vpow2.f32 %v1563_v45 }
 0x297   :  { %v1692_v29 = vmul.f32 1.6732632, %v3448_v18  ;;  %v2028_v61 = vadd.f32 %v2027_v36, %v5475_v6  ;;  %v1285_v35 = vpop.f32.mrf.mxu0  ;;  %v2116_v1 = vpop.f32.mrf.mxu3 }
 0x298   :  { %v1286_v25 = vadd.f32 %v1285_v35, %v5177_v31  ;;  %v1374_v47 = vpop.f32.mrf.mxu1  ;;  %v5653_v44 = vsel %vm2365_vm8, %v2112_v5, %v2621_v48 }
 0x299   :  { %v2117_v14 = vadd.f32 %v2116_v1, %v2028_v61  ;;  %v1756_v9 = vsel %vm1436_vm9, %v1370_v50, %v1692_v29  ;;  %v2739_v4 = vpack.c.bf16 %v5653_v44, %v5651_v17 }
 0x29a   :  { %v1375_v37 = vadd.f32 %v1374_v47, %v1286_v25  ;;  %v5660_v40 = vpack.c.bf16 %v1756_v9, %v1754_v42 }
 0x29b   :  { %v2455_v31 = vmul.f32 1.442695, %v2117_v14  ;;  %2069 = vmatmul.bf16.gmra.mxu2 %v5469_v22  ;;  %v4078_v5 = vpop.eup %4077  ;;  %vm2369_vm12 = vcmp.gt.f32.partialorder %v2117_v14, 0.0 }
 0x29c   :  { %v1567_v52 = vmul.f32 1.442695, %v1375_v37  ;;  %2158 = vmatmul.bf16.gmra.mxu3 %v5660_v40  ;;  %v4080_v46 = vpop.eup %4079  ;;  %v3601_v59 = vadd.f32 -1.0, %v4078_v5  ;;  %vm1440_vm13 = vcmp.gt.f32.partialorder %v1375_v37, 0.0 }
 0x29d   :  { %4081 = vpow2.f32 %v2455_v31  ;;  %v3450_v63 = vadd.f32 -1.0, %v4080_v46 }
 0x29e   :  { %4083 = vpow2.f32 %v1567_v52  ;;  %v2030_v13 = vpop.f32.mrf.mxu2  ;;  %v2623_v18 = vmul.f32 1.6732632, %v3601_v59 }
 0x29f   :  { %v2031_v50 = vadd.f32 %v2030_v13, %v5475_v6  ;;  %v2178_v62 = vpop.f32.mrf.mxu0  ;;  %v2119_v0 = vpop.f32.mrf.mxu3  ;;  %v1694_v29 = vmul.f32 1.6732632, %v3450_v63 }
 0x2a0   :  { %v2179_v24 = vadd.f32 %v2178_v62, %v5664_v54  ;;  %v2267_v26 = vpop.f32.mrf.mxu1  ;;  %v5682_v31 = vsel %vm2367_vm11, %v5638_v21, %v2623_v18 }
 0x2a1   :  { %v5669_v41 = vadd.f32 %v2119_v0, %v2031_v50  ;;  %v1758_v46 = vsel %vm1438_vm10, %v5640_v49, %v1694_v29 }
 0x2a2   :  { %v5671_v38 = vadd.f32 %v2267_v26, %v2179_v24  ;;  %2217 = vmatmul.bf16.gmra.mxu0 %v5297_v3 }
 0x2a3   :  { %v4082_v32 = vpop.eup %4081  ;;  %v2459_v45 = vmul.f32 1.442695, %v5669_v41  ;;  %2306 = vmatmul.bf16.gmra.mxu1 %v5471_v58  ;;  %vm2371_vm0 = vcmp.gt.f32.partialorder %v5669_v41, 0.0 }
 0x2a4   :  { %v4084_v34 = vpop.eup %4083  ;;  %v3603_v48 = vadd.f32 -1.0, %v4082_v32  ;;  %v2413_v36 = vmul.f32 1.442695, %v5671_v38  ;;  %vm2348_vm14 = vcmp.gt.f32.partialorder %v5671_v38, 0.0 }
 0x2a5   :  { %v3452_v61 = vadd.f32 -1.0, %v4084_v34  ;;  %4085 = vpow2.f32 %v2459_v45 }
 0x2a6   :  { %v2625_v35 = vmul.f32 1.6732632, %v3603_v48  ;;  %v2032_v25 = vpop.f32.mrf.mxu2  ;;  %4087 = vpow2.f32 %v2413_v36 }
 0x2a7   :  { %v1696_v3 = vmul.f32 1.6732632, %v3452_v61  ;;  %v2033_v47 = vadd.f32 %v2032_v25, %v5475_v6  ;;  %v2180_v58 = vpop.f32.mrf.mxu0  ;;  %v2121_v1 = vpop.f32.mrf.mxu3 }
 0x2a8   :  { %v2181_v42 = vadd.f32 %v2180_v58, %v5664_v54  ;;  %v2269_v9 = vpop.f32.mrf.mxu1  ;;  %v5684_v52 = vsel %vm2369_vm12, %v2117_v14, %v2625_v35 }
 0x2a9   :  { %v2122_v5 = vadd.f32 %v2121_v1, %v2033_v47  ;;  %v1760_v13 = vsel %vm1440_vm13, %v1375_v37, %v1696_v3  ;;  %v2741_v50 = vpack.c.bf16 %v5684_v52, %v5682_v31 }
 0x2aa   :  { %v2270_v62 = vadd.f32 %v2269_v9, %v2181_v42  ;;  %v5691_v59 = vpack.c.bf16 %v1760_v13, %v1758_v46 }
 0x2ab   :  { %v2463_v0 = vmul.f32 1.442695, %v2122_v5  ;;  %2074 = vmatmul.bf16.gmra.mxu2 %v5504_v8  ;;  %v4086_v21 = vpop.eup %4085  ;;  %vm2373_vm15 = vcmp.gt.f32.partialorder %v2122_v5, 0.0 }
 0x2ac   :  { %v2417_v24 = vmul.f32 1.442695, %v2270_v62  ;;  %2163 = vmatmul.bf16.gmra.mxu3 %v5691_v59  ;;  %v4088_v14 = vpop.eup %4087  ;;  %v3605_v63 = vadd.f32 -1.0, %v4086_v21  ;;  %vm2350_vm1 = vcmp.gt.f32.partialorder %v2270_v62, 0.0 }
 0x2ad   :  { %4089 = vpow2.f32 %v2463_v0  ;;  %v3582_v18 = vadd.f32 -1.0, %v4088_v14 }
 0x2ae   :  { %4091 = vpow2.f32 %v2417_v24  ;;  %v2035_v26 = vpop.f32.mrf.mxu2  ;;  %v2627_v25 = vmul.f32 1.6732632, %v3605_v63 }
 0x2af   :  { %v2036_v49 = vadd.f32 %v2035_v26, %v5475_v6  ;;  %v2183_v37 = vpop.f32.mrf.mxu0  ;;  %v2124_v32 = vpop.f32.mrf.mxu3  ;;  %v2604_v58 = vmul.f32 1.6732632, %v3582_v18 }
 0x2b0   :  { %v2184_v45 = vadd.f32 %v2183_v37, %v5664_v54  ;;  %v2272_v34 = vpop.f32.mrf.mxu1  ;;  %v5710_v21 = vsel %vm2371_vm0, %v5669_v41, %v2627_v25 }
 0x2b1   :  { %v5697_v48 = vadd.f32 %v2124_v32, %v2036_v49  ;;  %v2668_v26 = vsel %vm2348_vm14, %v5671_v38, %v2604_v58 }
 0x2b2   :  { %v5699_v36 = vadd.f32 %v2272_v34, %v2184_v45  ;;  %2222 = vmatmul.bf16.gmra.mxu0 %v5325_v39 }
 0x2b3   :  { %v4090_v29 = vpop.eup %4089  ;;  %v2467_v61 = vmul.f32 1.442695, %v5697_v48  ;;  %2311 = vmatmul.bf16.gmra.mxu1 %v5506_v33  ;;  %vm2375_vm2 = vcmp.gt.f32.partialorder %v5697_v48, 0.0 }
 0x2b4   :  { %v4092_v35 = vpop.eup %4091  ;;  %v3607_v3 = vadd.f32 -1.0, %v4090_v29  ;;  %v2421_v47 = vmul.f32 1.442695, %v5699_v36  ;;  %vm2352_vm3 = vcmp.gt.f32.partialorder %v5699_v36, 0.0 }
 0x2b5   :  { %v3584_v1 = vadd.f32 -1.0, %v4092_v35  ;;  %4093 = vpow2.f32 %v2467_v61 }
 0x2b6   :  { %v2629_v42 = vmul.f32 1.6732632, %v3607_v3  ;;  %v2037_v9 = vpop.f32.mrf.mxu2  ;;  %4095 = vpow2.f32 %v2421_v47 }
 0x2b7   :  { %v2606_v39 = vmul.f32 1.6732632, %v3584_v1  ;;  %v2038_v46 = vadd.f32 %v2037_v9, %v5475_v6  ;;  %v2185_v33 = vpop.f32.mrf.mxu0  ;;  %v2126_v13 = vpop.f32.mrf.mxu3 }
 0x2b8   :  { %v2186_v0 = vadd.f32 %v2185_v33, %v5664_v54  ;;  %v2274_v24 = vpop.f32.mrf.mxu1  ;;  %v5712_v14 = vsel %vm2373_vm15, %v2122_v5, %v2629_v42 }
 0x2b9   :  { %v2670_v49 = vsel %vm2350_vm1, %v2270_v62, %v2606_v39  ;;  %v2127_v37 = vadd.f32 %v2126_v13, %v2038_v46  ;;  %v2743_v63 = vpack.c.bf16 %v5712_v14, %v5710_v21 }
 0x2ba   :  { %v2732_v32 = vpack.c.bf16 %v2670_v49, %v2668_v26  ;;  %v2275_v45 = vadd.f32 %v2274_v24, %v2186_v0 }
 0x2bb   :  { %v2471_v34 = vmul.f32 1.442695, %v2127_v37  ;;  %2903 = vmatmul.bf16.vlgmr.msra.gmra.mxu2 %v2731_v16  ;;  %v4094_v29 = vpop.eup %4093  ;;  %vm2377_vm4 = vcmp.gt.f32.partialorder %v2127_v37, 0.0 }
 0x2bc   :  { %v2425_v18 = vmul.f32 1.442695, %v2275_v45  ;;  %2992 = vmatmul.bf16.vlgmr.msra.gmra.mxu3 %v2732_v32  ;;  %v4096_v41 = vpop.eup %4095  ;;  %v3609_v61 = vadd.f32 -1.0, %v4094_v29  ;;  %vm2354_vm5 = vcmp.gt.f32.partialorder %v2275_v45, 0.0 }
 0x2bd   :  { %4097 = vpow2.f32 %v2471_v34  ;;  %v3586_v47 = vadd.f32 -1.0, %v4096_v41 }
 0x2be   :  { %4099 = vpow2.f32 %v2425_v18  ;;  %v2040_v5 = vpop.f32.mrf.mxu2  ;;  %v2631_v42 = vmul.f32 1.6732632, %v3609_v61 }
 0x2bf   :  { %v2041_v38 = vadd.f32 %v2040_v5, %v5475_v6  ;;  %v2188_v62 = vpop.f32.mrf.mxu0  ;;  %v2129_v35 = vpop.f32.mrf.mxu3  ;;  %v2608_v46 = vmul.f32 1.6732632, %v3586_v47 }
 0x2c0   :  { %v2189_v25 = vadd.f32 %v2188_v62, %v5664_v54  ;;  %v2277_v3 = vpop.f32.mrf.mxu1  ;;  %v5735_v34 = vsel %vm2375_vm2, %v5697_v48, %v2631_v42 }
 0x2c1   :  { %v5722_v58 = vadd.f32 %v2129_v35, %v2041_v38  ;;  %v2672_v41 = vsel %vm2352_vm3, %v5699_v36, %v2608_v46 }
 0x2c2   :  { %v5724_v57 = vadd.f32 %v2277_v3, %v2189_v25  ;;  %2227 = vmatmul.bf16.gmra.mxu0 %v5352_v7 }
 0x2c3   :  { %v4098_v15 = vpop.eup %4097  ;;  %v2475_v16 = vmul.f32 1.442695, %v5722_v58  ;;  %2316 = vmatmul.bf16.gmra.mxu1 %v5534_v11  ;;  %vm2379_vm6 = vcmp.gt.f32.partialorder %v5722_v58, 0.0 }
 0x2c4   :  { %v4100_v1 = vpop.eup %4099  ;;  %v3611_v9 = vadd.f32 -1.0, %v4098_v15  ;;  %v2429_v39 = vmul.f32 1.442695, %v5724_v57  ;;  %vm2356_vm7 = vcmp.gt.f32.partialorder %v5724_v57, 0.0 }
 0x2c5   :  { %v3588_v33 = vadd.f32 -1.0, %v4100_v1  ;;  %4101 = vpow2.f32 %v2475_v16 }
 0x2c6   :  { %v2633_v13 = vmul.f32 1.6732632, %v3611_v9  ;;  %v2042_v0 = vpop.f32.mrf.mxu2  ;;  %4103 = vpow2.f32 %v2429_v39 }
 0x2c7   :  { %v2610_v7 = vmul.f32 1.6732632, %v3588_v33  ;;  %v2043_v24 = vadd.f32 %v2042_v0, %v5475_v6  ;;  %v2190_v11 = vpop.f32.mrf.mxu0  ;;  %v2131_v26 = vpop.f32.mrf.mxu3 }
 0x2c8   :  { %v2191_v49 = vadd.f32 %v2190_v11, %v5664_v54  ;;  %v2279_v32 = vpop.f32.mrf.mxu1  ;;  %v5737_v18 = vsel %vm2377_vm4, %v2127_v37, %v2633_v13 }
 0x2c9   :  { %v2132_v29 = vadd.f32 %v2131_v26, %v2043_v24  ;;  %v2674_v5 = vsel %vm2354_vm5, %v2275_v45, %v2610_v7  ;;  %v2745_v38 = vpack.c.bf16 %v5737_v18, %v5735_v34 }
 0x2ca   :  { %v2280_v62 = vadd.f32 %v2279_v32, %v2191_v49  ;;  %v2734_v61 = vpack.c.bf16 %v2674_v5, %v2672_v41 }
 0x2cb   :  { %v2479_v35 = vmul.f32 1.442695, %v2132_v29  ;;  %2908 = vmatmul.bf16.gmra.mxu2 %v2733_v60  ;;  %v4102_v25 = vpop.eup %4101  ;;  %vm2381_vm8 = vcmp.gt.f32.partialorder %v2132_v29, 0.0 }
 0x2cc   :  { %v2433_v48 = vmul.f32 1.442695, %v2280_v62  ;;  %2997 = vmatmul.bf16.gmra.mxu3 %v2734_v61  ;;  %v4104_v37 = vpop.eup %4103  ;;  %v3613_v47 = vadd.f32 -1.0, %v4102_v25  ;;  %vm2358_vm9 = vcmp.gt.f32.partialorder %v2280_v62, 0.0 }
 0x2cd   :  { %4105 = vpow2.f32 %v2479_v35  ;;  %v3590_v42 = vadd.f32 -1.0, %v4104_v37 }
 0x2ce   :  { %4107 = vpow2.f32 %v2433_v48  ;;  %v2045_v3 = vpop.f32.mrf.mxu2  ;;  %v2635_v46 = vmul.f32 1.6732632, %v3613_v47 }
 0x2cf   :  { %v2046_v36 = vadd.f32 %v2045_v3, %v5475_v6  ;;  %v2193_v45 = vpop.f32.mrf.mxu0  ;;  %v2134_v15 = vpop.f32.mrf.mxu3  ;;  %v2612_v0 = vmul.f32 1.6732632, %v3590_v42 }
 0x2d0   :  { %v2194_v16 = vadd.f32 %v2193_v45, %v5664_v54  ;;  %v2282_v1 = vpop.f32.mrf.mxu1  ;;  %v5762_v5 = vsel %vm2379_vm6, %v5722_v58, %v2635_v46 }
 0x2d1   :  { %v5749_v9 = vadd.f32 %v2134_v15, %v2046_v36  ;;  %v2676_v48 = vsel %vm2356_vm7, %v5724_v57, %v2612_v0 }
 0x2d2   :  { %v5751_v53 = vadd.f32 %v2282_v1, %v2194_v16  ;;  %2232 = vmatmul.bf16.gmra.mxu0 %v5384_v27 }
 0x2d3   :  { %v4106_v30 = vpop.eup %4105  ;;  %v2483_v60 = vmul.f32 1.442695, %v5749_v9  ;;  %2321 = vmatmul.bf16.gmra.mxu1 %v5569_v23  ;;  %vm2383_vm10 = vcmp.gt.f32.partialorder %v5749_v9, 0.0 }
 0x2d4   :  { %v4108_v39 = vpop.eup %4107  ;;  %v3615_v33 = vadd.f32 -1.0, %v4106_v30  ;;  %v2437_v13 = vmul.f32 1.442695, %v5751_v53  ;;  %vm2360_vm11 = vcmp.gt.f32.partialorder %v5751_v53, 0.0 }
 0x2d5   :  { %v3592_v7 = vadd.f32 -1.0, %v4108_v39  ;;  %4109 = vpow2.f32 %v2483_v60 }
 0x2d6   :  { %v2637_v24 = vmul.f32 1.6732632, %v3615_v33  ;;  %v2047_v11 = vpop.f32.mrf.mxu2  ;;  %4111 = vpow2.f32 %v2437_v13 }
 0x2d7   :  { %v2614_v27 = vmul.f32 1.6732632, %v3592_v7  ;;  %v2048_v26 = vadd.f32 %v2047_v11, %v5475_v6  ;;  %v2195_v23 = vpop.f32.mrf.mxu0  ;;  %v2136_v49 = vpop.f32.mrf.mxu3 }
 0x2d8   :  { %v2196_v32 = vadd.f32 %v2195_v23, %v5664_v54  ;;  %v2284_v41 = vpop.f32.mrf.mxu1  ;;  %v5764_v61 = vsel %vm2381_vm8, %v2132_v29, %v2637_v24 }
 0x2d9   :  { %v2137_v35 = vadd.f32 %v2136_v49, %v2048_v26  ;;  %v2678_v25 = vsel %vm2358_vm9, %v2280_v62, %v2614_v27  ;;  %v2747_v37 = vpack.c.bf16 %v5764_v61, %v5762_v5 }
 0x2da   :  { %v2285_v3 = vadd.f32 %v2284_v41, %v2196_v32  ;;  %v2736_v36 = vpack.c.bf16 %v2678_v25, %v2676_v48 }
 0x2db   :  { %v2487_v45 = vmul.f32 1.442695, %v2137_v35  ;;  %2913 = vmatmul.bf16.gmra.mxu2 %v2735_v55  ;;  %v4110_v47 = vpop.eup %4109  ;;  %vm2385_vm12 = vcmp.gt.f32.partialorder %v2137_v35, 0.0 }
 0x2dc   :  { %v2441_v58 = vmul.f32 1.442695, %v2285_v3  ;;  %3002 = vmatmul.bf16.gmra.mxu3 %v2736_v36  ;;  %v4112_v29 = vpop.eup %4111  ;;  %v3617_v16 = vadd.f32 -1.0, %v4110_v47  ;;  %vm2362_vm13 = vcmp.gt.f32.partialorder %v2285_v3, 0.0 }
 0x2dd   :  { %4113 = vpow2.f32 %v2487_v45  ;;  %v3594_v60 = vadd.f32 -1.0, %v4112_v29 }
 0x2de   :  { %4115 = vpow2.f32 %v2441_v58  ;;  %v2050_v15 = vpop.f32.mrf.mxu2  ;;  %v2639_v33 = vmul.f32 1.6732632, %v3617_v16 }
 0x2df   :  { %v2051_v57 = vadd.f32 %v2050_v15, %v5475_v6  ;;  %v2198_v62 = vpop.f32.mrf.mxu0  ;;  %v2139_v1 = vpop.f32.mrf.mxu3  ;;  %v2616_v7 = vmul.f32 1.6732632, %v3594_v60 }
 0x2e0   :  { %v2199_v42 = vadd.f32 %v2198_v62, %v5664_v54  ;;  %v2287_v30 = vpop.f32.mrf.mxu1  ;;  %v5789_v41 = vsel %vm2383_vm10, %v5749_v9, %v2639_v33 }
 0x2e1   :  { %v5776_v39 = vadd.f32 %v2139_v1, %v2051_v57  ;;  %v2680_v36 = vsel %vm2360_vm11, %v5751_v53, %v2616_v7 }
 0x2e2   :  { %v5778_v19 = vadd.f32 %v2287_v30, %v2199_v42  ;;  %2237 = vmatmul.bf16.gmra.mxu0 %v5408_v51 }
 0x2e3   :  { %v4114_v43 = vpop.eup %4113  ;;  %v2491_v55 = vmul.f32 1.442695, %v5776_v39  ;;  %2326 = vmatmul.bf16.gmra.mxu1 %v5597_v2  ;;  %vm2387_vm0 = vcmp.gt.f32.partialorder %v5776_v39, 0.0 }
 0x2e4   :  { %v4116_v46 = vpop.eup %4115  ;;  %v3619_v13 = vadd.f32 -1.0, %v4114_v43  ;;  %v2445_v0 = vmul.f32 1.442695, %v5778_v19  ;;  %vm2364_vm14 = vcmp.gt.f32.partialorder %v5778_v19, 0.0 }
 0x2e5   :  { %v3596_v24 = vadd.f32 -1.0, %v4116_v46  ;;  %4117 = vpow2.f32 %v2491_v55 }
 0x2e6   :  { %v2641_v11 = vmul.f32 1.6732632, %v3619_v13  ;;  %v2052_v27 = vpop.f32.mrf.mxu2  ;;  %4119 = vpow2.f32 %v2445_v0 }
 0x2e7   :  { %v2618_v51 = vmul.f32 1.6732632, %v3596_v24  ;;  %v2053_v26 = vadd.f32 %v2052_v27, %v5475_v6  ;;  %v2200_v2 = vpop.f32.mrf.mxu0  ;;  %v2141_v23 = vpop.f32.mrf.mxu3 }
 0x2e8   :  { %v2201_v49 = vadd.f32 %v2200_v2, %v5664_v54  ;;  %v2289_v32 = vpop.f32.mrf.mxu1  ;;  %v5791_v48 = vsel %vm2385_vm12, %v2137_v35, %v2641_v11 }
 0x2e9   :  { %v2142_v25 = vadd.f32 %v2141_v23, %v2053_v26  ;;  %v2682_v45 = vsel %vm2362_vm13, %v2285_v3, %v2618_v51  ;;  %v2749_v58 = vpack.c.bf16 %v5791_v48, %v5789_v41 }
 0x2ea   :  { %v2290_v47 = vadd.f32 %v2289_v32, %v2201_v49  ;;  %v2738_v29 = vpack.c.bf16 %v2682_v45, %v2680_v36 }
 0x2eb   :  { %v2495_v15 = vmul.f32 1.442695, %v2142_v25  ;;  %2918 = vmatmul.bf16.gmra.mxu2 %v2737_v20  ;;  %v4118_v57 = vpop.eup %4117  ;;  %vm2389_vm15 = vcmp.gt.f32.partialorder %v2142_v25, 0.0 }
 0x2ec   :  { %v2449_v9 = vmul.f32 1.442695, %v2290_v47  ;;  %3007 = vmatmul.bf16.gmra.mxu3 %v2738_v29  ;;  %v4120_v35 = vpop.eup %4119  ;;  %v3621_v16 = vadd.f32 -1.0, %v4118_v57  ;;  %vm2366_vm1 = vcmp.gt.f32.partialorder %v2290_v47, 0.0 }
 0x2ed   :  { %4121 = vpow2.f32 %v2495_v15  ;;  %v3598_v60 = vadd.f32 -1.0, %v4120_v35 }
 0x2ee   :  { %4123 = vpow2.f32 %v2449_v9  ;;  %v2055_v62 = vpop.f32.mrf.mxu2  ;;  %v2643_v46 = vmul.f32 1.6732632, %v3621_v16 }
 0x2ef   :  { %v2056_v53 = vadd.f32 %v2055_v62, %v5475_v6  ;;  %v2203_v3 = vpop.f32.mrf.mxu0  ;;  %v2144_v1 = vpop.f32.mrf.mxu3  ;;  %v2620_v0 = vmul.f32 1.6732632, %v3598_v60 }
 0x2f0   :  { %v2204_v42 = vadd.f32 %v2203_v3, %v5664_v54  ;;  %v2292_v30 = vpop.f32.mrf.mxu1  ;;  %v5816_v23 = vsel %vm2387_vm0, %v5776_v39, %v2643_v46 }
 0x2f1   :  { %v5803_v43 = vadd.f32 %v2144_v1, %v2056_v53  ;;  %v2684_v36 = vsel %vm2364_vm14, %v5778_v19, %v2620_v0 }
 0x2f2   :  { %v5805_v10 = vadd.f32 %v2292_v30, %v2204_v42  ;;  %2242 = vmatmul.bf16.gmra.mxu0 %v5440_v12 }
 0x2f3   :  { %v4122_v28 = vpop.eup %4121  ;;  %v2499_v20 = vmul.f32 1.442695, %v5803_v43  ;;  %2331 = vmatmul.bf16.gmra.mxu1 %v5632_v56  ;;  %vm2391_vm2 = vcmp.gt.f32.partialorder %v5803_v43, 0.0 }
 0x2f4   :  { %v4124_v55 = vpop.eup %4123  ;;  %v3623_v33 = vadd.f32 -1.0, %v4122_v28  ;;  %v2453_v13 = vmul.f32 1.442695, %v5805_v10  ;;  %vm2368_vm3 = vcmp.gt.f32.partialorder %v5805_v10, 0.0 }
 0x2f5   :  { %v3600_v7 = vadd.f32 -1.0, %v4124_v55  ;;  %4125 = vpow2.f32 %v2499_v20 }
 0x2f6   :  { %v2645_v24 = vmul.f32 1.6732632, %v3623_v33  ;;  %v2057_v11 = vpop.f32.mrf.mxu2  ;;  %4127 = vpow2.f32 %v2453_v13 }
 0x2f7   :  { %v2622_v12 = vmul.f32 1.6732632, %v3600_v7  ;;  %v2058_v27 = vadd.f32 %v2057_v11, %v5475_v6  ;;  %v2205_v56 = vpop.f32.mrf.mxu0  ;;  %v2146_v51 = vpop.f32.mrf.mxu3 }
 0x2f8   :  { %v2206_v26 = vadd.f32 %v2205_v56, %v5664_v54  ;;  %v2294_v2 = vpop.f32.mrf.mxu1  ;;  %v5818_v49 = vsel %vm2389_vm15, %v2142_v25, %v2645_v24 }
 0x2f9   :  { %v2147_v32 = vadd.f32 %v2146_v51, %v2058_v27  ;;  %v2686_v45 = vsel %vm2366_vm1, %v2290_v47, %v2622_v12  ;;  %v2751_v29 = vpack.c.bf16 %v5818_v49, %v5816_v23 }
 0x2fa   :  { %v2295_v15 = vadd.f32 %v2294_v2, %v2206_v26  ;;  %v2740_v9 = vpack.c.bf16 %v2686_v45, %v2684_v36 }
 0x2fb   :  { %v2503_v57 = vmul.f32 1.442695, %v2147_v32  ;;  %2923 = vmatmul.bf16.gmra.mxu2 %v2739_v4  ;;  %v4126_v35 = vpop.eup %4125  ;;  %vm2393_vm4 = vcmp.gt.f32.partialorder %v2147_v32, 0.0 }
 0x2fc   :  { %v2457_v39 = vmul.f32 1.442695, %v2295_v15  ;;  %3012 = vmatmul.bf16.gmra.mxu3 %v2740_v9  ;;  %v4128_v25 = vpop.eup %4127  ;;  %v3625_v53 = vadd.f32 -1.0, %v4126_v35  ;;  %vm2370_vm5 = vcmp.gt.f32.partialorder %v2295_v15, 0.0 }
 0x2fd   :  { %4129 = vpow2.f32 %v2503_v57  ;;  %v3602_v42 = vadd.f32 -1.0, %v4128_v25 }
 0x2fe   :  { %4131 = vpow2.f32 %v2457_v39  ;;  %v2060_v62 = vpop.f32.mrf.mxu2  ;;  %v2647_v28 = vmul.f32 1.6732632, %v3625_v53 }
 0x2ff   :  { %v2061_v19 = vadd.f32 %v2060_v62, %v5475_v6  ;;  %v2208_v47 = vpop.f32.mrf.mxu0  ;;  %v2149_v3 = vpop.f32.mrf.mxu3  ;;  %v2624_v46 = vmul.f32 1.6732632, %v3602_v42 }
 0x300   :  { %v2209_v16 = vadd.f32 %v2208_v47, %v5664_v54  ;;  %v2297_v1 = vpop.f32.mrf.mxu1  ;;  %v5843_v27 = vsel %vm2391_vm2, %v5803_v43, %v2647_v28 }
 0x301   :  { %v5830_v30 = vadd.f32 %v2149_v3, %v2061_v19  ;;  %v2688_v26 = vsel %vm2368_vm3, %v5805_v10, %v2624_v46 }
 0x302   :  { %v5832_v17 = vadd.f32 %v2297_v1, %v2209_v16  ;;  %2247 = vmatmul.bf16.gmra.mxu0 %v5469_v22 }
 0x303   :  { %v4130_v44 = vpop.eup %4129  ;;  %v2507_v4 = vmul.f32 1.442695, %v5830_v30  ;;  %2336 = vmatmul.bf16.gmra.mxu1 %v5660_v40  ;;  %vm2395_vm6 = vcmp.gt.f32.partialorder %v5830_v30, 0.0 }
 0x304   :  { %v4132_v60 = vpop.eup %4131  ;;  %v3627_v20 = vadd.f32 -1.0, %v4130_v44  ;;  %v2461_v55 = vmul.f32 1.442695, %v5832_v17  ;;  %vm2372_vm7 = vcmp.gt.f32.partialorder %v5832_v17, 0.0 }
 0x305   :  { %v3604_v33 = vadd.f32 -1.0, %v4132_v60  ;;  %4133 = vpow2.f32 %v2507_v4 }
 0x306   :  { %v2649_v13 = vmul.f32 1.6732632, %v3627_v20  ;;  %v2062_v0 = vpop.f32.mrf.mxu2  ;;  %4135 = vpow2.f32 %v2461_v55 }
 0x307   :  { %v2626_v22 = vmul.f32 1.6732632, %v3604_v33  ;;  %v2063_v7 = vadd.f32 %v2062_v0, %v5475_v6  ;;  %v2210_v40 = vpop.f32.mrf.mxu0  ;;  %v2151_v24 = vpop.f32.mrf.mxu3 }
 0x308   :  { %v2211_v11 = vadd.f32 %v2210_v40, %v5664_v54  ;;  %v2299_v12 = vpop.f32.mrf.mxu1  ;;  %v5845_v56 = vsel %vm2393_vm4, %v2147_v32, %v2649_v13 }
 0x309   :  { %v2152_v51 = vadd.f32 %v2151_v24, %v2063_v7  ;;  %v2690_v2 = vsel %vm2370_vm5, %v2295_v15, %v2626_v22  ;;  %v2753_v36 = vpack.c.bf16 %v5845_v56, %v5843_v27 }
 0x30a   :  { %v2300_v45 = vadd.f32 %v2299_v12, %v2211_v11  ;;  %v2742_v9 = vpack.c.bf16 %v2690_v2, %v2688_v26 }
 0x30b   :  { %v2511_v57 = vmul.f32 1.442695, %v2152_v51  ;;  %2928 = vmatmul.bf16.gmra.mxu2 %v2741_v50  ;;  %v4134_v39 = vpop.eup %4133  ;;  %vm2397_vm8 = vcmp.gt.f32.partialorder %v2152_v51, 0.0 }
 0x30c   :  { %v2465_v43 = vmul.f32 1.442695, %v2300_v45  ;;  %3017 = vmatmul.bf16.gmra.mxu3 %v2742_v9  ;;  %v4136_v32 = vpop.eup %4135  ;;  %v3629_v25 = vadd.f32 -1.0, %v4134_v39  ;;  %vm2374_vm9 = vcmp.gt.f32.partialorder %v2300_v45, 0.0 }
 0x30d   :  { %4137 = vpow2.f32 %v2511_v57  ;;  %v3606_v53 = vadd.f32 -1.0, %v4136_v32 }
 0x30e   :  { %4139 = vpow2.f32 %v2465_v43  ;;  %v2065_v35 = vpop.f32.mrf.mxu2  ;;  %v2651_v1 = vmul.f32 1.6732632, %v3629_v25 }
 0x30f   :  { %v2066_v10 = vadd.f32 %v2065_v35, %v5475_v6  ;;  %v2213_v15 = vpop.f32.mrf.mxu0  ;;  %v2154_v62 = vpop.f32.mrf.mxu3  ;;  %v2628_v4 = vmul.f32 1.6732632, %v3606_v53 }
 0x310   :  { %v2214_v19 = vadd.f32 %v2213_v15, %v5664_v54  ;;  %v2302_v47 = vpop.f32.mrf.mxu1  ;;  %v5870_v0 = vsel %vm2395_vm6, %v5830_v30, %v2651_v1 }
 0x311   :  { %v5857_v3 = vadd.f32 %v2154_v62, %v2066_v10  ;;  %v2692_v40 = vsel %vm2372_vm7, %v5832_v17, %v2628_v4 }
 0x312   :  { %v5859_v31 = vadd.f32 %v2302_v47, %v2214_v19  ;;  %2252 = vmatmul.bf16.gmra.mxu0 %v5504_v8 }
 0x313   :  { %v4138_v52 = vpop.eup %4137  ;;  %v2515_v50 = vmul.f32 1.442695, %v5857_v3  ;;  %2341 = vmatmul.bf16.gmra.mxu1 %v5691_v59  ;;  %vm2399_vm10 = vcmp.gt.f32.partialorder %v5857_v3, 0.0 }
 0x314   :  { %v4140_v16 = vpop.eup %4139  ;;  %v3631_v42 = vadd.f32 -1.0, %v4138_v52  ;;  %v2469_v44 = vmul.f32 1.442695, %v5859_v31  ;;  %vm2376_vm11 = vcmp.gt.f32.partialorder %v5859_v31, 0.0 }
 0x315   :  { %v3608_v60 = vadd.f32 -1.0, %v4140_v16  ;;  %4141 = vpow2.f32 %v2515_v50 }
 0x316   :  { %v2653_v28 = vmul.f32 1.6732632, %v3631_v42  ;;  %v2067_v20 = vpop.f32.mrf.mxu2  ;;  %4143 = vpow2.f32 %v2469_v44 }
 0x317   :  { %v2630_v8 = vmul.f32 1.6732632, %v3608_v60  ;;  %v2068_v55 = vadd.f32 %v2067_v20, %v5475_v6  ;;  %v2215_v59 = vpop.f32.mrf.mxu0  ;;  %v2156_v46 = vpop.f32.mrf.mxu3 }
 0x318   :  { %v2216_v33 = vadd.f32 %v2215_v59, %v5664_v54  ;;  %v2304_v13 = vpop.f32.mrf.mxu1  ;;  %v5872_v22 = vsel %vm2397_vm8, %v2152_v51, %v2653_v28 }
 0x319   :  { %v2157_v7 = vadd.f32 %v2156_v46, %v2068_v55  ;;  %v2694_v24 = vsel %vm2374_vm9, %v2300_v45, %v2630_v8  ;;  %v2755_v11 = vpack.c.bf16 %v5872_v22, %v5870_v0 }
 0x31a   :  { %v2305_v12 = vadd.f32 %v2304_v13, %v2216_v33  ;;  %v2744_v26 = vpack.c.bf16 %v2694_v24, %v2692_v40 }
 0x31b   :  { %v2519_v2 = vmul.f32 1.442695, %v2157_v7  ;;  %2933 = vmatmul.bf16.gmra.mxu2 %v2743_v63  ;;  %v4142_v9 = vpop.eup %4141  ;;  %vm2401_vm12 = vcmp.gt.f32.partialorder %v2157_v7, 0.0 }
 0x31c   :  { %v2473_v30 = vmul.f32 1.442695, %v2305_v12  ;;  %3022 = vmatmul.bf16.gmra.mxu3 %v2744_v26  ;;  %v4144_v51 = vpop.eup %4143  ;;  %v3633_v43 = vadd.f32 -1.0, %v4142_v9  ;;  %vm2378_vm13 = vcmp.gt.f32.partialorder %v2305_v12, 0.0 }
 0x31d   :  { %4145 = vpow2.f32 %v2519_v2  ;;  %v3610_v10 = vadd.f32 -1.0, %v4144_v51 }
 0x31e   :  { %4147 = vpow2.f32 %v2473_v30  ;;  %v2070_v57 = vpop.f32.mrf.mxu2  ;;  %v2655_v62 = vmul.f32 1.6732632, %v3633_v43 }
 0x31f   :  { %v2071_v17 = vadd.f32 %v2070_v57, %v5475_v6  ;;  %v2218_v45 = vpop.f32.mrf.mxu0  ;;  %v2159_v39 = vpop.f32.mrf.mxu3  ;;  %v2632_v53 = vmul.f32 1.6732632, %v3610_v10 }
 0x320   :  { %v2219_v32 = vadd.f32 %v2218_v45, %v5664_v54  ;;  %v2307_v35 = vpop.f32.mrf.mxu1  ;;  %v5895_v20 = vsel %vm2399_vm10, %v5857_v3, %v2655_v62 }
 0x321   :  { %v5884_v15 = vadd.f32 %v2159_v39, %v2071_v17  ;;  %v2696_v59 = vsel %vm2376_vm11, %v5859_v31, %v2632_v53 }
 0x322   :  { %v5886_v21 = vadd.f32 %v2307_v35, %v2219_v32 }
 0x323   :  { %v4146_v14 = vpop.eup %4145  ;;  %v2523_v63 = vmul.f32 1.442695, %v5884_v15  ;;  %vm2403_vm0 = vcmp.gt.f32.partialorder %v5884_v15, 0.0 }
 0x324   :  { %v4148_v25 = vpop.eup %4147  ;;  %v3635_v19 = vadd.f32 -1.0, %v4146_v14  ;;  %v2477_v47 = vmul.f32 1.442695, %v5886_v21  ;;  %vm2380_vm14 = vcmp.gt.f32.partialorder %v5886_v21, 0.0 }
 0x325   :  { %v3612_v52 = vadd.f32 -1.0, %v4148_v25  ;;  %4149 = vpow2.f32 %v2523_v63 }
 0x326   :  { %v2657_v50 = vmul.f32 1.6732632, %v3635_v19  ;;  %v2072_v16 = vpop.f32.mrf.mxu2  ;;  %4151 = vpow2.f32 %v2477_v47 }
 0x327   :  { %v2634_v1 = vmul.f32 1.6732632, %v3612_v52  ;;  %v2073_v42 = vadd.f32 %v2072_v16, %v5475_v6  ;;  %v2220_v44 = vpop.f32.mrf.mxu0  ;;  %v2161_v4 = vpop.f32.mrf.mxu3 }
 0x328   :  { %v2221_v60 = vadd.f32 %v2220_v44, %v5664_v54  ;;  %v2309_v28 = vpop.f32.mrf.mxu1  ;;  %v5897_v8 = vsel %vm2401_vm12, %v2157_v7, %v2657_v50 }
 0x329   :  { %v2162_v55 = vadd.f32 %v2161_v4, %v2073_v42  ;;  %v2698_v46 = vsel %vm2378_vm13, %v2305_v12, %v2634_v1  ;;  %v2757_v33 = vpack.c.bf16 %v5897_v8, %v5895_v20 }
 0x32a   :  { %v2310_v13 = vadd.f32 %v2309_v28, %v2221_v60  ;;  %v2746_v40 = vpack.c.bf16 %v2698_v46, %v2696_v59 }
 0x32b   :  { %v2527_v24 = vmul.f32 1.442695, %v2162_v55  ;;  %2938 = vmatmul.bf16.gmra.mxu2 %v2745_v38  ;;  %v4150_v26 = vpop.eup %4149  ;;  %vm2405_vm15 = vcmp.gt.f32.partialorder %v2162_v55, 0.0 }
 0x32c   :  { %v2481_v3 = vmul.f32 1.442695, %v2310_v13  ;;  %3027 = vmatmul.bf16.gmra.mxu3 %v2746_v40  ;;  %v4152_v7 = vpop.eup %4151  ;;  %v3637_v30 = vadd.f32 -1.0, %v4150_v26  ;;  %vm2382_vm1 = vcmp.gt.f32.partialorder %v2310_v13, 0.0 }
 0x32d   :  { %4153 = vpow2.f32 %v2527_v24  ;;  %v3614_v17 = vadd.f32 -1.0, %v4152_v7 }
 0x32e   :  { %4155 = vpow2.f32 %v2481_v3  ;;  %v2075_v2 = vpop.f32.mrf.mxu2  ;;  %v2659_v39 = vmul.f32 1.6732632, %v3637_v30 }
 0x32f   :  { %v2076_v31 = vadd.f32 %v2075_v2, %v5475_v6  ;;  %v2223_v12 = vpop.f32.mrf.mxu0  ;;  %v2164_v9 = vpop.f32.mrf.mxu3  ;;  %v2636_v10 = vmul.f32 1.6732632, %v3614_v17 }
 0x330   :  { %v2224_v51 = vadd.f32 %v2223_v12, %v5664_v54  ;;  %v2312_v57 = vpop.f32.mrf.mxu1  ;;  %v5920_v16 = vsel %vm2403_vm0, %v5884_v15, %v2659_v39  ;;  %v5935_v15 = vld [vmem:[%s6026_s8] ss:$0 sm:$0xff]  ;;  %s4271_s8 = smov [#allocation7]  }
 0x331   :  { %v5909_v45 = vadd.f32 %v2164_v9, %v2076_v31  ;;  %v2700_v44 = vsel %vm2380_vm14, %v5886_v21, %v2636_v10  ;;  %s3109_s29 = sshll.u32 %s4271_s8, 4  ;;  %s3110_s29 = int_to_ptr.vmem [resolvable:$true] %s3109_s29 }
 0x332   :  { %v5911_v34 = vadd.f32 %v2312_v57, %v2224_v51 }
 0x333   :  { %v4154_v18 = vpop.eup %4153  ;;  %v2531_v38 = vmul.f32 1.442695, %v5909_v45  ;;  %vm2407_vm2 = vcmp.gt.f32.partialorder %v5909_v45, 0.0 }
 0x334   :  { %v4156_v43 = vpop.eup %4155  ;;  %v3639_v32 = vadd.f32 -1.0, %v4154_v18  ;;  %v2485_v35 = vmul.f32 1.442695, %v5911_v34  ;;  %vm2384_vm3 = vcmp.gt.f32.partialorder %v5911_v34, 0.0 }
 0x335   :  { %v3616_v14 = vadd.f32 -1.0, %v4156_v43  ;;  %4157 = vpow2.f32 %v2531_v38 }
 0x336   :  { %v2661_v63 = vmul.f32 1.6732632, %v3639_v32  ;;  %v2077_v25 = vpop.f32.mrf.mxu2  ;;  %4159 = vpow2.f32 %v2485_v35 }
 0x337   :  { %v2638_v62 = vmul.f32 1.6732632, %v3616_v14  ;;  %v2078_v19 = vadd.f32 %v2077_v25, %v5475_v6  ;;  %v2225_v47 = vpop.f32.mrf.mxu0  ;;  %v2166_v53 = vpop.f32.mrf.mxu3 }
 0x338   :  { %v2226_v52 = vadd.f32 %v2225_v47, %v5664_v54  ;;  %v2314_v50 = vpop.f32.mrf.mxu1  ;;  %v5922_v1 = vsel %vm2405_vm15, %v2162_v55, %v2661_v63 }
 0x339   :  { %v2167_v42 = vadd.f32 %v2166_v53, %v2078_v19  ;;  %v2702_v4 = vsel %vm2382_vm1, %v2310_v13, %v2638_v62  ;;  %v2759_v6 = vpack.c.bf16 %v5922_v1, %v5920_v16 }
 0x33a   :  { %v2315_v60 = vadd.f32 %v2314_v50, %v2226_v52  ;;  %v2748_v28 = vpack.c.bf16 %v2702_v4, %v2700_v44 }
 0x33b   :  { %v2535_v59 = vmul.f32 1.442695, %v2167_v42  ;;  %2943 = vmatmul.bf16.gmra.mxu2 %v2747_v37  ;;  %v4158_v46 = vpop.eup %4157  ;;  %vm2409_vm4 = vcmp.gt.f32.partialorder %v2167_v42, 0.0 }
 0x33c   :  { %v2489_v55 = vmul.f32 1.442695, %v2315_v60  ;;  %3032 = vmatmul.bf16.gmra.mxu3 %v2748_v28  ;;  %v4160_v21 = vpop.eup %4159  ;;  %v3641_v3 = vadd.f32 -1.0, %v4158_v46  ;;  %vm2386_vm5 = vcmp.gt.f32.partialorder %v2315_v60, 0.0 }
 0x33d   :  { %4161 = vpow2.f32 %v2535_v59  ;;  %v3618_v37 = vadd.f32 -1.0, %v4160_v21 }
 0x33e   :  { %4163 = vpow2.f32 %v2489_v55  ;;  %v2904_v13 = vpop.f32.mrf.mxu2  ;;  %v2663_v30 = vmul.f32 1.6732632, %v3641_v3 }
 0x33f   :  { %v2905_v40 = vadd.f32 %v5935_v15, %v2904_v13  ;;  %v2228_v24 = vpop.f32.mrf.mxu0  ;;  %v2993_v61 = vpop.f32.mrf.mxu3  ;;  %v2640_v57 = vmul.f32 1.6732632, %v3618_v37 }
 0x340   :  { %v2229_v26 = vadd.f32 %v2228_v24, %v5664_v54  ;;  %v2317_v5 = vpop.f32.mrf.mxu1  ;;  %v5944_v63 = vsel %vm2407_vm2, %v5909_v45, %v2663_v30 }
 0x341   :  { %v2994_v7 = vadd.f32 %v2993_v61, %v2905_v40  ;;  %v2704_v19 = vsel %vm2384_vm3, %v5911_v34, %v2640_v57 }
 0x342   :  { %v2318_v2 = vadd.f32 %v2317_v5, %v2229_v26 }
 0x343   :  { %v4162_v31 = vpop.eup %4161  ;;  %3073 = vst [vmem:[#allocation7] sm:$0xff] %v2994_v7 }
 0x344   :  { %v4164_v12 = vpop.eup %4163  ;;  %v3643_v9 = vadd.f32 -1.0, %v4162_v31  ;;  %v2493_v51 = vmul.f32 1.442695, %v2318_v2  ;;  %vm2388_vm6 = vcmp.gt.f32.partialorder %v2318_v2, 0.0 }
 0x345   :  { %v3620_v17 = vadd.f32 -1.0, %v4164_v12 }
 0x346   :  { %v2665_v18 = vmul.f32 1.6732632, %v3643_v9  ;;  %v2906_v38 = vpop.f32.mrf.mxu2  ;;  %4165 = vpow2.f32 %v2493_v51 }
 0x347   :  { %v2642_v43 = vmul.f32 1.6732632, %v3620_v17  ;;  %v2907_v39 = vadd.f32 %v5935_v15, %v2906_v38  ;;  %v2230_v32 = vpop.f32.mrf.mxu0  ;;  %v2995_v14 = vpop.f32.mrf.mxu3 }
 0x348   :  { %v2231_v35 = vadd.f32 %v2230_v32, %v5664_v54  ;;  %v2319_v10 = vpop.f32.mrf.mxu1  ;;  %v5946_v25 = vsel %vm2409_vm4, %v2167_v42, %v2665_v18 }
 0x349   :  { %v2996_v62 = vadd.f32 %v2995_v14, %v2907_v39  ;;  %v2706_v47 = vsel %vm2386_vm5, %v2315_v60, %v2642_v43  ;;  %v2761_v53 = vpack.c.bf16 %v5946_v25, %v5944_v63 }
 0x34a   :  { %v2320_v52 = vadd.f32 %v2319_v10, %v2231_v35  ;;  %v2750_v50 = vpack.c.bf16 %v2706_v47, %v2704_v19 }
 0x34b   :  { %3074 = vst [vmem:[#allocation7 + $0x8] sm:$0xff] %v2996_v62  ;;  %2948 = vmatmul.bf16.gmra.mxu2 %v2749_v58 }
 0x34c   :  { %v2497_v44 = vmul.f32 1.442695, %v2320_v52  ;;  %3037 = vmatmul.bf16.gmra.mxu3 %v2750_v50  ;;  %v4166_v45 = vpop.eup %4165  ;;  %vm2390_vm7 = vcmp.gt.f32.partialorder %v2320_v52, 0.0 }
 0x34d   :  { %v3622_v55 = vadd.f32 -1.0, %v4166_v45 }
 0x34e   :  { %4167 = vpow2.f32 %v2497_v44  ;;  %v2909_v42 = vpop.f32.mrf.mxu2 }
 0x34f   :  { %v2910_v4 = vadd.f32 %v5935_v15, %v2909_v42  ;;  %v2233_v28 = vpop.f32.mrf.mxu0  ;;  %v2998_v59 = vpop.f32.mrf.mxu3  ;;  %v2644_v41 = vmul.f32 1.6732632, %v3622_v55 }
 0x350   :  { %v2234_v34 = vadd.f32 %v2233_v28, %v5664_v54  ;;  %v2322_v60 = vpop.f32.mrf.mxu1 }
 0x351   :  { %v2999_v46 = vadd.f32 %v2998_v59, %v2910_v4  ;;  %v2708_v31 = vsel %vm2388_vm6, %v2318_v2, %v2644_v41 }
 0x352   :  { %v2323_v21 = vadd.f32 %v2322_v60, %v2234_v34 }
 0x353   :  { %3075 = vst [vmem:[#allocation7 + $0x10] sm:$0xff] %v2999_v46 }
 0x354   :  { %v4168_v13 = vpop.eup %4167  ;;  %v2501_v40 = vmul.f32 1.442695, %v2323_v21  ;;  %vm2392_vm8 = vcmp.gt.f32.partialorder %v2323_v21, 0.0 }
 0x355   :  { %v3624_v48 = vadd.f32 -1.0, %v4168_v13 }
 0x356   :  { %v2911_v58 = vpop.f32.mrf.mxu2  ;;  %4169 = vpow2.f32 %v2501_v40 }
 0x357   :  { %v2646_v24 = vmul.f32 1.6732632, %v3624_v48  ;;  %v2912_v3 = vadd.f32 %v5935_v15, %v2911_v58  ;;  %v2235_v26 = vpop.f32.mrf.mxu0  ;;  %v3000_v37 = vpop.f32.mrf.mxu3 }
 0x358   :  { %v2236_v5 = vadd.f32 %v2235_v26, %v5664_v54  ;;  %v2324_v61 = vpop.f32.mrf.mxu1 }
 0x359   :  { %v3001_v7 = vadd.f32 %v3000_v37, %v2912_v3  ;;  %v2710_v12 = vsel %vm2390_vm7, %v2320_v52, %v2646_v24 }
 0x35a   :  { %v2325_v30 = vadd.f32 %v2324_v61, %v2236_v5  ;;  %v2752_v9 = vpack.c.bf16 %v2710_v12, %v2708_v31 }
 0x35b   :  { %3076 = vst [vmem:[#allocation7 + $0x18] sm:$0xff] %v3001_v7  ;;  %2953 = vmatmul.bf16.gmra.mxu2 %v2751_v29 }
 0x35c   :  { %v2505_v51 = vmul.f32 1.442695, %v2325_v30  ;;  %3042 = vmatmul.bf16.gmra.mxu3 %v2752_v9  ;;  %v4170_v57 = vpop.eup %4169  ;;  %vm2394_vm9 = vcmp.gt.f32.partialorder %v2325_v30, 0.0 }
 0x35d   :  { %v3626_v32 = vadd.f32 -1.0, %v4170_v57 }
 0x35e   :  { %4171 = vpow2.f32 %v2505_v51  ;;  %v2914_v17 = vpop.f32.mrf.mxu2 }
 0x35f   :  { %v2915_v18 = vadd.f32 %v5935_v15, %v2914_v17  ;;  %v2238_v38 = vpop.f32.mrf.mxu0  ;;  %v3003_v2 = vpop.f32.mrf.mxu3  ;;  %v2648_v23 = vmul.f32 1.6732632, %v3626_v32 }
 0x360   :  { %v2239_v43 = vadd.f32 %v2238_v38, %v5664_v54  ;;  %v2327_v39 = vpop.f32.mrf.mxu1 }
 0x361   :  { %v3004_v35 = vadd.f32 %v3003_v2, %v2915_v18  ;;  %v2712_v4 = vsel %vm2392_vm8, %v2323_v21, %v2648_v23 }
 0x362   :  { %v2328_v10 = vadd.f32 %v2327_v39, %v2239_v43 }
 0x363   :  { %3077 = vst [vmem:[#allocation7 + $0x20] sm:$0xff] %v3004_v35 }
 0x364   :  { %v4172_v14 = vpop.eup %4171  ;;  %v2509_v62 = vmul.f32 1.442695, %v2328_v10  ;;  %vm2396_vm10 = vcmp.gt.f32.partialorder %v2328_v10, 0.0 }
 0x365   :  { %v3628_v49 = vadd.f32 -1.0, %v4172_v14 }
 0x366   :  { %v2916_v29 = vpop.f32.mrf.mxu2  ;;  %4173 = vpow2.f32 %v2509_v62 }
 0x367   :  { %v2650_v19 = vmul.f32 1.6732632, %v3628_v49  ;;  %v2917_v47 = vadd.f32 %v5935_v15, %v2916_v29  ;;  %v2240_v52 = vpop.f32.mrf.mxu0  ;;  %v3005_v45 = vpop.f32.mrf.mxu3 }
 0x368   :  { %v2241_v50 = vadd.f32 %v2240_v52, %v5664_v54  ;;  %v2329_v44 = vpop.f32.mrf.mxu1 }
 0x369   :  { %v3006_v42 = vadd.f32 %v3005_v45, %v2917_v47  ;;  %v2714_v28 = vsel %vm2394_vm9, %v2325_v30, %v2650_v19 }
 0x36a   :  { %v2330_v34 = vadd.f32 %v2329_v44, %v2241_v50  ;;  %v2754_v60 = vpack.c.bf16 %v2714_v28, %v2712_v4 }
 0x36b   :  { %3078 = vst [vmem:[#allocation7 + $0x28] sm:$0xff] %v3006_v42  ;;  %2958 = vmatmul.bf16.gmra.mxu2 %v2753_v36 }
 0x36c   :  { %v2513_v59 = vmul.f32 1.442695, %v2330_v34  ;;  %3047 = vmatmul.bf16.gmra.mxu3 %v2754_v60  ;;  %v4174_v55 = vpop.eup %4173  ;;  %vm2398_vm11 = vcmp.gt.f32.partialorder %v2330_v34, 0.0 }
 0x36d   :  { %v3630_v58 = vadd.f32 -1.0, %v4174_v55 }
 0x36e   :  { %4175 = vpow2.f32 %v2513_v59  ;;  %v2919_v46 = vpop.f32.mrf.mxu2 }
 0x36f   :  { %v2920_v13 = vadd.f32 %v5935_v15, %v2919_v46  ;;  %v2243_v40 = vpop.f32.mrf.mxu0  ;;  %v3008_v21 = vpop.f32.mrf.mxu3  ;;  %v2652_v27 = vmul.f32 1.6732632, %v3630_v58 }
 0x370   :  { %v2244_v41 = vadd.f32 %v2243_v40, %v5664_v54  ;;  %v2332_v48 = vpop.f32.mrf.mxu1 }
 0x371   :  { %v3009_v24 = vadd.f32 %v3008_v21, %v2920_v13  ;;  %v2716_v51 = vsel %vm2396_vm10, %v2328_v10, %v2652_v27 }
 0x372   :  { %v2333_v3 = vadd.f32 %v2332_v48, %v2244_v41 }
 0x373   :  { %3079 = vst [vmem:[#allocation7 + $0x30] sm:$0xff] %v3009_v24 }
 0x374   :  { %v4176_v26 = vpop.eup %4175  ;;  %v2517_v5 = vmul.f32 1.442695, %v2333_v3  ;;  %vm2400_vm12 = vcmp.gt.f32.partialorder %v2333_v3, 0.0 }
 0x375   :  { %v3632_v56 = vadd.f32 -1.0, %v4176_v26 }
 0x376   :  { %v2921_v36 = vpop.f32.mrf.mxu2  ;;  %4177 = vpow2.f32 %v2517_v5 }
 0x377   :  { %v2654_v61 = vmul.f32 1.6732632, %v3632_v56  ;;  %v2922_v37 = vadd.f32 %v5935_v15, %v2921_v36  ;;  %v2245_v7 = vpop.f32.mrf.mxu0  ;;  %v3010_v30 = vpop.f32.mrf.mxu3 }
 0x378   :  { %v2246_v31 = vadd.f32 %v2245_v7, %v5664_v54  ;;  %v2334_v12 = vpop.f32.mrf.mxu1 }
 0x379   :  { %v3011_v9 = vadd.f32 %v3010_v30, %v2922_v37  ;;  %v2718_v57 = vsel %vm2398_vm11, %v2330_v34, %v2654_v61 }
 0x37a   :  { %v2335_v17 = vadd.f32 %v2334_v12, %v2246_v31  ;;  %v2756_v18 = vpack.c.bf16 %v2718_v57, %v2716_v51 }
 0x37b   :  { %3080 = vst [vmem:[#allocation7 + $0x38] sm:$0xff] %v3011_v9  ;;  %2963 = vmatmul.bf16.gmra.mxu2 %v2755_v11 }
 0x37c   :  { %v2521_v38 = vmul.f32 1.442695, %v2335_v17  ;;  %3052 = vmatmul.bf16.gmra.mxu3 %v2756_v18  ;;  %v4178_v43 = vpop.eup %4177  ;;  %vm2402_vm13 = vcmp.gt.f32.partialorder %v2335_v17, 0.0 }
 0x37d   :  { %v3634_v62 = vadd.f32 -1.0, %v4178_v43 }
 0x37e   :  { %4179 = vpow2.f32 %v2521_v38  ;;  %v2924_v39 = vpop.f32.mrf.mxu2 }
 0x37f   :  { %v2925_v2 = vadd.f32 %v5935_v15, %v2924_v39  ;;  %v2248_v32 = vpop.f32.mrf.mxu0  ;;  %v3013_v10 = vpop.f32.mrf.mxu3  ;;  %v2656_v0 = vmul.f32 1.6732632, %v3634_v62 }
 0x380   :  { %v2249_v35 = vadd.f32 %v2248_v32, %v5664_v54  ;;  %v2337_v14 = vpop.f32.mrf.mxu1 }
 0x381   :  { %v3014_v23 = vadd.f32 %v3013_v10, %v2925_v2  ;;  %v2720_v28 = vsel %vm2400_vm12, %v2333_v3, %v2656_v0 }
 0x382   :  { %v2338_v49 = vadd.f32 %v2337_v14, %v2249_v35 }
 0x383   :  { %3081 = vst [vmem:[#allocation7 + $0x40] sm:$0xff] %v3014_v23 }
 0x384   :  { %v4180_v29 = vpop.eup %4179  ;;  %v2525_v19 = vmul.f32 1.442695, %v2338_v49  ;;  %vm2404_vm0 = vcmp.gt.f32.partialorder %v2338_v49, 0.0 }
 0x385   :  { %v3636_v22 = vadd.f32 -1.0, %v4180_v29 }
 0x386   :  { %v2926_v11 = vpop.f32.mrf.mxu2  ;;  %4181 = vpow2.f32 %v2525_v19 }
 0x387   :  { %v2658_v47 = vmul.f32 1.6732632, %v3636_v22  ;;  %v2927_v52 = vadd.f32 %v5935_v15, %v2926_v11  ;;  %v2250_v50 = vpop.f32.mrf.mxu0  ;;  %v3015_v42 = vpop.f32.mrf.mxu3 }
 0x388   :  { %v2251_v44 = vadd.f32 %v2250_v50, %v5664_v54  ;;  %v2339_v45 = vpop.f32.mrf.mxu1 }
 0x389   :  { %v3016_v4 = vadd.f32 %v3015_v42, %v2927_v52  ;;  %v2722_v34 = vsel %vm2402_vm13, %v2335_v17, %v2658_v47 }
 0x38a   :  { %v2340_v60 = vadd.f32 %v2339_v45, %v2251_v44  ;;  %v2758_v59 = vpack.c.bf16 %v2722_v34, %v2720_v28 }
 0x38b   :  { %3082 = vst [vmem:[#allocation7 + $0x48] sm:$0xff] %v3016_v4  ;;  %2968 = vmatmul.bf16.gmra.mxu2 %v2757_v33 }
 0x38c   :  { %v2529_v55 = vmul.f32 1.442695, %v2340_v60  ;;  %3057 = vmatmul.bf16.gmra.mxu3 %v2758_v59  ;;  %v4182_v46 = vpop.eup %4181  ;;  %vm2406_vm14 = vcmp.gt.f32.partialorder %v2340_v60, 0.0 }
 0x38d   :  { %v3638_v24 = vadd.f32 -1.0, %v4182_v46 }
 0x38e   :  { %4183 = vpow2.f32 %v2529_v55  ;;  %v2929_v13 = vpop.f32.mrf.mxu2 }
 0x38f   :  { %v2930_v40 = vadd.f32 %v5935_v15, %v2929_v13  ;;  %v2253_v41 = vpop.f32.mrf.mxu0  ;;  %v3018_v58 = vpop.f32.mrf.mxu3  ;;  %v2660_v20 = vmul.f32 1.6732632, %v3638_v24 }
 0x390   :  { %v2254_v48 = vadd.f32 %v2253_v41, %v5664_v54  ;;  %v2342_v21 = vpop.f32.mrf.mxu1 }
 0x391   :  { %v3019_v3 = vadd.f32 %v3018_v58, %v2930_v40  ;;  %v2724_v30 = vsel %vm2404_vm0, %v2338_v49, %v2660_v20 }
 0x392   :  { %v2343_v26 = vadd.f32 %v2342_v21, %v2254_v48 }
 0x393   :  { %3083 = vst [vmem:[#allocation7 + $0x50] sm:$0xff] %v3019_v3 }
 0x394   :  { %v4184_v5 = vpop.eup %4183  ;;  %v2533_v27 = vmul.f32 1.442695, %v2343_v26  ;;  %vm2408_vm15 = vcmp.gt.f32.partialorder %v2343_v26, 0.0 }
 0x395   :  { %v3640_v8 = vadd.f32 -1.0, %v4184_v5 }
 0x396   :  { %v2931_v33 = vpop.f32.mrf.mxu2  ;;  %4185 = vpow2.f32 %v2533_v27 }
 0x397   :  { %v2662_v56 = vmul.f32 1.6732632, %v3640_v8  ;;  %v2932_v36 = vadd.f32 %v5935_v15, %v2931_v33  ;;  %v2255_v61 = vpop.f32.mrf.mxu0  ;;  %v3020_v7 = vpop.f32.mrf.mxu3 }
 0x398   :  { %v2256_v37 = vadd.f32 %v2255_v61, %v5664_v54  ;;  %v2344_v31 = vpop.f32.mrf.mxu1 }
 0x399   :  { %v3021_v12 = vadd.f32 %v3020_v7, %v2932_v36  ;;  %v2726_v9 = vsel %vm2406_vm14, %v2340_v60, %v2662_v56 }
 0x39a   :  { %v2345_v51 = vadd.f32 %v2344_v31, %v2256_v37  ;;  %v2760_v57 = vpack.c.bf16 %v2726_v9, %v2724_v30 }
 0x39b   :  { %3084 = vst [vmem:[#allocation7 + $0x58] sm:$0xff] %v3021_v12  ;;  %2973 = vmatmul.bf16.gmra.mxu2 %v2759_v6 }
 0x39c   :  { %v2537_v17 = vmul.f32 1.442695, %v2345_v51  ;;  %3062 = vmatmul.bf16.gmra.mxu3 %v2760_v57  ;;  %v4186_v18 = vpop.eup %4185  ;;  %vm2410_vm1 = vcmp.gt.f32.partialorder %v2345_v51, 0.0 }
 0x39d   :  { %v3642_v39 = vadd.f32 -1.0, %v4186_v18 }
 0x39e   :  { %4187 = vpow2.f32 %v2537_v17  ;;  %v2934_v38 = vpop.f32.mrf.mxu2 }
 0x39f   :  { %v2935_v43 = vadd.f32 %v5935_v15, %v2934_v38  ;;  %v3023_v54 = vpop.f32.mrf.mxu3  ;;  %v2664_v35 = vmul.f32 1.6732632, %v3642_v39 }
 0x3a1   :  { %v3024_v2 = vadd.f32 %v3023_v54, %v2935_v43  ;;  %v2728_v6 = vsel %vm2408_vm15, %v2343_v26, %v2664_v35 }
 0x3a3   :  { %3085 = vst [vmem:[#allocation7 + $0x60] sm:$0xff] %v3024_v2 }
 0x3a4   :  { %v4188_v32 = vpop.eup %4187 }
 0x3a5   :  { %v3644_v14 = vadd.f32 -1.0, %v4188_v32 }
 0x3a6   :  { %v2936_v10 = vpop.f32.mrf.mxu2 }
 0x3a7   :  { %v2666_v62 = vmul.f32 1.6732632, %v3644_v14  ;;  %v2937_v23 = vadd.f32 %v5935_v15, %v2936_v10  ;;  %v3025_v16 = vpop.f32.mrf.mxu3 }
 0x3a9   :  { %v3026_v1 = vadd.f32 %v3025_v16, %v2937_v23  ;;  %v2730_v49 = vsel %vm2410_vm1, %v2345_v51, %v2666_v62 }
 0x3aa   :  { %v2762_v29 = vpack.c.bf16 %v2730_v49, %v2728_v6 }
 0x3ab   :  { %3086 = vst [vmem:[#allocation7 + $0x68] sm:$0xff] %v3026_v1  ;;  %2978 = vmatmul.bf16.gmra.mxu2 %v2761_v53 }
 0x3ac   :  { %3067 = vmatmul.bf16.gmra.mxu3 %v2762_v29 }
 0x3ae   :  { %v2939_v19 = vpop.f32.mrf.mxu2 }
 0x3af   :  { %v2940_v0 = vadd.f32 %v5935_v15, %v2939_v19  ;;  %v3028_v22 = vpop.f32.mrf.mxu3 }
 0x3b1   :  { %v3029_v11 = vadd.f32 %v3028_v22, %v2940_v0 }
 0x3b3   :  { %3087 = vst [vmem:[#allocation7 + $0x70] sm:$0xff] %v3029_v11 }
 0x3b6   :  { %v2941_v47 = vpop.f32.mrf.mxu2 }
 0x3b7   :  { %v2942_v52 = vadd.f32 %v5935_v15, %v2941_v47  ;;  %v3030_v50 = vpop.f32.mrf.mxu3 }
 0x3b9   :  { %v3031_v44 = vadd.f32 %v3030_v50, %v2942_v52 }
 0x3bb   :  { %3088 = vst [vmem:[#allocation7 + $0x78] sm:$0xff] %v3031_v44 }
 0x3be   :  { %v2944_v45 = vpop.f32.mrf.mxu2 }
 0x3bf   :  { %v2945_v42 = vadd.f32 %v5935_v15, %v2944_v45  ;;  %v3033_v4 = vpop.f32.mrf.mxu3 }
 0x3c1   :  { %v3034_v28 = vadd.f32 %v3033_v4, %v2945_v42 }
 0x3c3   :  { %3089 = vst [vmem:[#allocation7 + $0x80] sm:$0xff] %v3034_v28 }
 0x3c6   :  { %v2946_v63 = vpop.f32.mrf.mxu2 }
 0x3c7   :  { %v2947_v25 = vadd.f32 %v5935_v15, %v2946_v63  ;;  %v3035_v53 = vpop.f32.mrf.mxu3 }
 0x3c9   :  { %v3036_v34 = vadd.f32 %v3035_v53, %v2947_v25 }
 0x3cb   :  { %3090 = vst [vmem:[#allocation7 + $0x88] sm:$0xff] %v3036_v34 }
 0x3ce   :  { %v2949_v60 = vpop.f32.mrf.mxu2 }
 0x3cf   :  { %v2950_v59 = vadd.f32 %v5935_v15, %v2949_v60  ;;  %v3038_v55 = vpop.f32.mrf.mxu3 }
 0x3d1   :  { %v3039_v46 = vadd.f32 %v3038_v55, %v2950_v59 }
 0x3d3   :  { %3091 = vst [vmem:[#allocation7 + $0x90] sm:$0xff] %v3039_v46 }
 0x3d6   :  { %v2951_v13 = vpop.f32.mrf.mxu2 }
 0x3d7   :  { %v2952_v40 = vadd.f32 %v5935_v15, %v2951_v13  ;;  %v3040_v41 = vpop.f32.mrf.mxu3 }
 0x3d9   :  { %v3041_v48 = vadd.f32 %v3040_v41, %v2952_v40 }
 0x3db   :  { %3092 = vst [vmem:[#allocation7 + $0x98] sm:$0xff] %v3041_v48 }
 0x3de   :  { %v2954_v21 = vpop.f32.mrf.mxu2 }
 0x3df   :  { %v2955_v58 = vadd.f32 %v5935_v15, %v2954_v21  ;;  %v3043_v24 = vpop.f32.mrf.mxu3 }
 0x3e1   :  { %v3044_v3 = vadd.f32 %v3043_v24, %v2955_v58 }
 0x3e3   :  { %3093 = vst [vmem:[#allocation7 + $0xa0] sm:$0xff] %v3044_v3 }
 0x3e6   :  { %v2956_v26 = vpop.f32.mrf.mxu2 }
 0x3e7   :  { %v2957_v5 = vadd.f32 %v5935_v15, %v2956_v26  ;;  %v3045_v27 = vpop.f32.mrf.mxu3 }
 0x3e9   :  { %v3046_v20 = vadd.f32 %v3045_v27, %v2957_v5 }
 0x3eb   :  { %3094 = vst [vmem:[#allocation7 + $0xa8] sm:$0xff] %v3046_v20 }
 0x3ee   :  { %v2959_v8 = vpop.f32.mrf.mxu2 }
 0x3ef   :  { %v2960_v33 = vadd.f32 %v5935_v15, %v2959_v8  ;;  %v3048_v56 = vpop.f32.mrf.mxu3 }
 0x3f1   :  { %v3049_v36 = vadd.f32 %v3048_v56, %v2960_v33 }
 0x3f3   :  { %3095 = vst [vmem:[#allocation7 + $0xb0] sm:$0xff] %v3049_v36 }
 0x3f6   :  { %v2961_v61 = vpop.f32.mrf.mxu2 }
 0x3f7   :  { %v2962_v37 = vadd.f32 %v5935_v15, %v2961_v61  ;;  %v3050_v7 = vpop.f32.mrf.mxu3 }
 0x3f9   :  { %v3051_v31 = vadd.f32 %v3050_v7, %v2962_v37 }
 0x3fb   :  { %3096 = vst [vmem:[#allocation7 + $0xb8] sm:$0xff] %v3051_v31 }
 0x3fe   :  { %v2964_v12 = vpop.f32.mrf.mxu2 }
 0x3ff   :  { %v2965_v30 = vadd.f32 %v5935_v15, %v2964_v12  ;;  %v3053_v9 = vpop.f32.mrf.mxu3 }
 0x401   :  { %v3054_v51 = vadd.f32 %v3053_v9, %v2965_v30 }
 0x403   :  { %3097 = vst [vmem:[#allocation7 + $0xc0] sm:$0xff] %v3054_v51 }
 0x406   :  { %v2966_v57 = vpop.f32.mrf.mxu2 }
 0x407   :  { %v2967_v17 = vadd.f32 %v5935_v15, %v2966_v57  ;;  %v3055_v18 = vpop.f32.mrf.mxu3 }
 0x409   :  { %v3056_v38 = vadd.f32 %v3055_v18, %v2967_v17 }
 0x40b   :  { %3098 = vst [vmem:[#allocation7 + $0xc8] sm:$0xff] %v3056_v38 }
 0x40e   :  { %v2969_v43 = vpop.f32.mrf.mxu2 }
 0x40f   :  { %v2970_v54 = vadd.f32 %v5935_v15, %v2969_v43  ;;  %v3058_v39 = vpop.f32.mrf.mxu3 }
 0x411   :  { %v3059_v2 = vadd.f32 %v3058_v39, %v2970_v54 }
 0x413   :  { %3099 = vst [vmem:[#allocation7 + $0xd0] sm:$0xff] %v3059_v2 }
 0x416   :  { %v2971_v32 = vpop.f32.mrf.mxu2 }
 0x417   :  { %v2972_v35 = vadd.f32 %v5935_v15, %v2971_v32  ;;  %v3060_v14 = vpop.f32.mrf.mxu3 }
 0x419   :  { %v3061_v10 = vadd.f32 %v3060_v14, %v2972_v35 }
 0x41b   :  { %3100 = vst [vmem:[#allocation7 + $0xd8] sm:$0xff] %v3061_v10 }
 0x41e   :  { %v2974_v62 = vpop.f32.mrf.mxu2 }
 0x41f   :  { %v2975_v23 = vadd.f32 %v5935_v15, %v2974_v62  ;;  %v3063_v16 = vpop.f32.mrf.mxu3 }
 0x421   :  { %v3064_v1 = vadd.f32 %v3063_v16, %v2975_v23 }
 0x423   :  { %3101 = vst [vmem:[#allocation7 + $0xe0] sm:$0xff] %v3064_v1 }
 0x426   :  { %v2976_v6 = vpop.f32.mrf.mxu2 }
 0x427   :  { %v2977_v49 = vadd.f32 %v5935_v15, %v2976_v6  ;;  %v3065_v29 = vpop.f32.mrf.mxu3 }
 0x429   :  { %v3066_v19 = vadd.f32 %v3065_v29, %v2977_v49 }
 0x42b   :  { %3102 = vst [vmem:[#allocation7 + $0xe8] sm:$0xff] %v3066_v19 }
 0x42e   :  { %v2979_v0 = vpop.f32.mrf.mxu2 }
 0x42f   :  { %v2980_v22 = vadd.f32 %v5935_v15, %v2979_v0  ;;  %v3068_v11 = vpop.f32.mrf.mxu3 }
 0x431   :  { %v3069_v47 = vadd.f32 %v3068_v11, %v2980_v22 }
 0x433   :  { %3103 = vst [vmem:[#allocation7 + $0xf0] sm:$0xff] %v3069_v47 }
 0x436   :  { %v2981_v52 = vpop.f32.mrf.mxu2 }
 0x437   :  { %v2982_v50 = vadd.f32 %v5935_v15, %v2981_v52  ;;  %v3070_v44 = vpop.f32.mrf.mxu3 }
 0x439   :  { %v3071_v45 = vadd.f32 %v3070_v44, %v2982_v50 }
 0x43b   :  { %3104 = vst [vmem:[#allocation7 + $0xf8] sm:$0xff] %v3071_v45 }
 0x43c   :  { %3117 = dma.vmem_to_hbm [thread:$0]  %s3110_s29, 4096, %s3112_s11, [#allocation4], %s4268_s17, %s4268_s17, %s4269_s18  }
 0x43d   :  { %4265 = dma.done.wait [#allocation4], 4096  }
 0x43e   :  { %4266 = vsyncadd [#allocation4], 4294963200 }
 0x43f   :  { %3122 = vsyncpa [#allocation3], 1 }
 0x440   :  { %3123 = vsyncpa [#allocation6], 1 }
 0x441   :  { %3124 = vsyncpa [#allocation4], 1 }

</bundles_post_ra>
